<compile_context>
chip_gen: v7x
topology: tpu7x:2x2x1
jax: 0.10.0
libtpu: 0.0.40
codegen_flags: <defaults>
</compile_context>

<pallas_src>
import jax
import jax.numpy as jnp
from jax.experimental import pallas as pl
from jax.experimental.pallas import tpu as pltpu

# nn.Unfold(kernel=3) position order is (kh, kw) row-major; the module's
# `neighbor_indices` buffer drops index 4 (the centre tap).
_NEIGHBOR_OFFSETS = (
    (-1, -1), (-1, 0), (-1, 1),
    (0, -1),           (0, 1),
    (1, -1),  (1, 0),  (1, 1),
)


def _cdiv(a, b):
    return -(-a // b)


def _pad_up(n, m):
    return _cdiv(n, m) * m


def _neighbor_kernel(top_ref, mid_ref, bot_ref, out_ref):
    """One batch element, one strip of TH patch-grid rows.

      top_ref: (1, 1,  W, L, D)    row above the strip (clamped; zeroed at the top edge)
      mid_ref: (1, TH, W, L, D)    the strip itself
      bot_ref: (1, 1,  W, L, D)    row below the strip (clamped; zeroed at the bottom edge)
      out_ref: (1, TH, W, L, 8*D)  neighbour k occupies lanes [k*D, (k+1)*D)
    """
    TH, W, L, D = mid_ref.shape[1:]
    dt = mid_ref.dtype

    s = pl.program_id(1)
    last = pl.num_programs(1) - 1

    mid = mid_ref[0]                                           # (TH, W, L, D)
    # Select (NOT multiply-by-flag) so Inf/NaN in the clamped edge rows cannot
    # leak NaN into positions the reference fills with exact zeros.
    top = jnp.where(s > 0, top_ref[0], 0)                      # (1, W, L, D)
    bot = jnp.where(s < last, bot_ref[0], 0)                   # (1, W, L, D)

    # Row bands for the vertical offsets dh = -1 / 0 / +1, built directly from
    # the three input blocks (no (TH+2, W+2) halo copy).
    if TH > 1:
        up = jnp.concatenate([top, mid[:TH - 1]], axis=0)      # source rows r-1
        dn = jnp.concatenate([mid[1:], bot], axis=0)           # source rows r+1
    else:
        up, dn = top, bot
    bands = {-1: up, 0: mid, 1: dn}

    zcol = jnp.zeros((TH, 1, L, D), dt)

    def shift_w(x, dw):
        # y[:, w] = x[:, w + dw]; zero outside the [0, W) border.
        if dw == 0:
            return x
        if W == 1:
            return jnp.zeros_like(x)
        if dw < 0:
            return jnp.concatenate([zcol, x[:, :W - 1]], axis=1)
        return jnp.concatenate([x[:, 1:], zcol], axis=1)

    # Neighbour k of feature (l, d) lands at minor position l*8*D + k*D + d,
    # i.e. exactly slot (l*8+k, d) of the final (L*8, D) layout.  Building the
    # whole (TH, W, L, 8*D) value and storing it once keeps every store
    # lane-dense and unmasked (one contiguous HBM writeback per strip).
    parts = [shift_w(bands[dh], dw) for dh, dw in _NEIGHBOR_OFFSETS]
    out_ref[0] = jnp.concatenate(parts, axis=-1)               # (TH, W, L, 8*D)


def _strip_vmem_bytes(th, W, L, D, itemsize):
    """Rough per-grid-step VMEM upper bound: double-buffered in/out blocks plus
    the in-kernel band / concatenation temporaries."""
    sub = {4: 8, 2: 16, 1: 32}.get(itemsize, 8)
    l_p = _pad_up(L, sub)
    d_p = _pad_up(D, 128)
    o_p = _pad_up(8 * D, 128)
    in_blk = (th + 2) * W * l_p * d_p * itemsize       # mid + top + bot blocks
    out_blk = th * W * l_p * o_p * itemsize
    strip = th * W * l_p * d_p * itemsize
    # 2x double-buffered pipeline blocks + 2 band temporaries + concat value.
    return 2 * (in_blk + out_blk) + 2 * strip + 2 * out_blk


def _vmem_capacity_bytes():
    try:
        info = pltpu.get_tpu_info()
        cap = getattr(info, "vmem_capacity_bytes", None)
        if cap:
            return int(cap)
    except Exception:
        pass
    return 64 * 1024 * 1024        # conservative default (v7x-sized VMEM)


def _pick_strip_rows(B, H, W, L, D, itemsize, budget_bytes, prefer_even_steps):
    """Largest strip height TH whose per-step VMEM footprint fits the budget.

    Prefers divisors of H (no padded tail); otherwise picks a non-divisor TH
    (the wrapper zero-pads the row axis) instead of degrading to tiny strips.
    Keeps >= 2 total grid steps and, on 2-TensorCore parts, prefers an even
    step count so both cores get equal work.
    """
    def fits(t):
        return _strip_vmem_bytes(t, W, L, D, itemsize) <= budget_bytes

    def steps(t):
        return B * _cdiv(H, t)

    th_any = max([t for t in range(1, H + 1) if fits(t)], default=1)
    th_div = max([t for t in range(1, H + 1) if H % t == 0 and fits(t)], default=1)
    th = th_div if 2 * th_div >= th_any else th_any

    # Keep >= 2 grid steps so the pipeline / megacore has work.
    if steps(th) < 2 and H > 1:
        th = max(1, _cdiv(H, 2))

    # v7x: both TensorCores share the grid; prefer an even total step count
    # (only consider divisors so we never trade this for a padded tail).
    if prefer_even_steps and steps(th) % 2 == 1:
        cands = [t for t in range(1, th + 1)
                 if H % t == 0 and fits(t) and steps(t) % 2 == 0 and 2 * t >= th]
        if cands:
            th = max(cands)
    return th


def patch_neighbor_searcher(e_flat: jax.Array, H: int, W: int, *,
                            strip_rows: int | None = None,
                            vmem_budget_bytes: int | None = None) -> jax.Array:
    """Pallas implementation of PatchNeighborSearcher.forward."""
    B, P, L, D = e_flat.shape
    assert P == H * W, f"patches ({P}) must equal H*W ({H}*{W}={H * W})"
    itemsize = jnp.dtype(e_flat.dtype).itemsize

    vmem_cap = _vmem_capacity_bytes()
    two_cores = vmem_cap <= 64 * 1024 * 1024        # v7x-class: 64 MiB VMEM, 2 TCs
    if vmem_budget_bytes is None:
        vmem_budget_bytes = (28 * 1024 * 1024) if two_cores else (64 * 1024 * 1024)

    if strip_rows is None:
        TH = _pick_strip_rows(B, H, W, L, D, itemsize, vmem_budget_bytes, two_cores)
    else:
        TH = max(1, min(int(strip_rows), H))

    S = _cdiv(H, TH)
    Hp = S * TH

    # Free reshape (pure row-major split): restore the patch grid.
    x = e_flat.reshape(B, H, W, L, D)
    if Hp != H:
        # Ragged last strip: zero-pad the *input* row axis so every input strip
        # is full (pad rows behave exactly like the grid border).  The output
        # stays un-padded; Pallas drops the out-of-bounds rows of the last
        # partial output block on writeback.
        x = jnp.pad(x, ((0, 0), (0, Hp - H), (0, 0), (0, 0), (0, 0)))

    est = _strip_vmem_bytes(TH, W, L, D, itemsize)   # already includes double-buffering
    limit_cap = (40 * 1024 * 1024) if two_cores else (96 * 1024 * 1024)
    vmem_limit = int(min(max(est + 8 * 1024 * 1024, 16 * 1024 * 1024), limit_cap))

    # Pure data movement: ~1x read (+2 halo rows per strip) and 8x write.
    in_bytes = x.size * itemsize + 2 * B * S * W * L * D * itemsize
    out_bytes = B * H * W * L * 8 * D * itemsize
    cost = pl.CostEstimate(flops=0, transcendentals=0,
                           bytes_accessed=int(in_bytes + out_bytes))

    # TODO(synk): for D < 128 a lane-dense (L*D)-minor input layout would cut the
    # lane-padded input VMEM ~4x on v7x; skipped to keep the (l,k,d) interleave simple.
    out = pl.pallas_call(
        _neighbor_kernel,
        out_shape=jax.ShapeDtypeStruct((B, H, W, L, 8 * D), e_flat.dtype),
        grid=(B, S),
        in_specs=[
            # Row just above the strip (clamped at the top edge; zeroed in-kernel).
            pl.BlockSpec((1, 1, W, L, D),
                         lambda b, s: (b, jnp.maximum(s * TH - 1, 0), 0, 0, 0)),
            # The TH-row strip.
            pl.BlockSpec((1, TH, W, L, D),
                         lambda b, s: (b, s, 0, 0, 0)),
            # Row just below the strip (clamped at the bottom edge; zeroed in-kernel).
            pl.BlockSpec((1, 1, W, L, D),
                         lambda b, s: (b, jnp.minimum(s * TH + TH, Hp - 1), 0, 0, 0)),
        ],
        out_specs=pl.BlockSpec((1, TH, W, L, 8 * D),
                               lambda b, s: (b, s, 0, 0, 0)),
        compiler_params=pltpu.CompilerParams(
            dimension_semantics=("parallel", "parallel"),
            vmem_limit_bytes=vmem_limit),
        cost_estimate=cost,
    )(x, x, x)

    # Free reshape (pure row-major merge/split): (B,H,W,L,8D) -> (B, P, L*8, D).
    return out.reshape(B, H * W, L * 8, D)


def _reference(e_flat: jax.Array, H: int, W: int) -> jax.Array:
    """Pure-JAX reference of the PyTorch forward (for validation)."""
    B, P, L, D = e_flat.shape
    g = e_flat.reshape(B, H, W, L, D)
    gp = jnp.pad(g, ((0, 0), (1, 1), (1, 1), (0, 0), (0, 0)))
    neighs = [gp[:, 1 + dh:1 + dh + H, 1 + dw:1 + dw + W]
              for dh, dw in _NEIGHBOR_OFFSETS]
    n = jnp.stack(neighs, axis=4)          # (B, H, W, L, 8, D)
    return n.reshape(B, H * W, L * 8, D)


if __name__ == "__main__":
    key = jax.random.PRNGKey(0)
    k1, k2 = jax.random.split(key)

    # Case 1: B=2, 16x8 patch grid, length=8, input_size=32 (auto strip size).
    B, H, W, L, D = 2, 16, 8, 8, 32
    e1 = jax.random.normal(k1, (B, H * W, L, D), dtype=jnp.float32)
    ref1 = _reference(e1, H, W)
    out1 = jax.block_until_ready(patch_neighbor_searcher(e1, H, W))
    assert out1.shape == (B, H * W, L * 8, D), out1.shape
    assert jnp.array_equal(out1, ref1), "case 1 mismatch"

    # Case 2: forced 4-row strips -> inter-strip halo rows exercised.
    out2 = jax.block_until_ready(patch_neighbor_searcher(e1, H, W, strip_rows=4))
    assert jnp.array_equal(out2, ref1), "case 2 mismatch"

    # Case 3: forced non-divisor strips (16 % 3 != 0) -> padded-tail path.
    out3 = jax.block_until_ready(patch_neighbor_searcher(e1, H, W, strip_rows=3))
    assert jnp.array_equal(out3, ref1), "case 3 mismatch"

    # Case 4: Inf on the top/bottom grid rows must not leak NaN into the
    # border zeros (select-based halo zeroing instead of 0*x).
    e4 = e1.at[:, :W].set(jnp.inf).at[:, -W:].set(jnp.inf)
    out4 = jax.block_until_ready(patch_neighbor_searcher(e4, H, W, strip_rows=4))
    assert jnp.array_equal(out4, _reference(e4, H, W)), "case 4 (Inf border) mismatch"
    assert not jnp.isnan(out4).any(), "case 4 produced NaNs"

    # Case 5: B=1, odd-height grid (auto picker; >=2 grid steps, ragged tail).
    B5, H5, W5, L5, D5 = 1, 5, 4, 8, 32
    e5 = jax.random.normal(k2, (B5, H5 * W5, L5, D5), dtype=jnp.float32)
    out5 = jax.block_until_ready(patch_neighbor_searcher(e5, H5, W5))
    assert out5.shape == (B5, H5 * W5, L5 * 8, D5), out5.shape
    assert jnp.array_equal(out5, _reference(e5, H5, W5)), "case 5 mismatch"

    print("KERNEL_OK")
</pallas_src>

<mosaic_0001>
module attributes {stable_mosaic.version = 11 : i64} {
  func.func @_neighbor_kernel(%arg0: i32, %arg1: i32, %arg2: memref<1x1x8x8x32xf32, #tpu.memory_space<vmem>>, %arg3: memref<1x16x8x8x32xf32, #tpu.memory_space<vmem>>, %arg4: memref<1x1x8x8x32xf32, #tpu.memory_space<vmem>>, %arg5: memref<1x16x8x8x256xf32, #tpu.memory_space<vmem>>) attributes {dimension_semantics = [#tpu.dimension_semantics<parallel>, #tpu.dimension_semantics<parallel>], iteration_bounds = array<i64: 2, 1>, scalar_prefetch = 0 : i64, scratch_operands = 0 : i64, tpu.core_type = #tpu.core_type<tc>, window_params = [{transform_indices = @transform_0, window_bounds = array<i64: 1, 1, 8, 8, 32>}, {transform_indices = @transform_1, window_bounds = array<i64: 1, 16, 8, 8, 32>}, {transform_indices = @transform_2, window_bounds = array<i64: 1, 1, 8, 8, 32>}, {transform_indices = @transform_3, window_bounds = array<i64: 1, 16, 8, 8, 256>}]} {
    %c0 = arith.constant 0 : index
    %c0_0 = arith.constant 0 : index
    %c0_1 = arith.constant 0 : index
    %c0_2 = arith.constant 0 : index
    %c0_3 = arith.constant 0 : index
    %0 = vector.load %arg3[%c0, %c0_0, %c0_1, %c0_2, %c0_3] : memref<1x16x8x8x32xf32, #tpu.memory_space<vmem>>, vector<1x16x8x8x32xf32>
    %1 = vector.shape_cast %0 : vector<1x16x8x8x32xf32> to vector<16x8x8x32xf32>
    %c0_i32 = arith.constant 0 : i32
    %2 = arith.cmpi sgt, %arg1, %c0_i32 : i32
    %c0_4 = arith.constant 0 : index
    %c0_5 = arith.constant 0 : index
    %c0_6 = arith.constant 0 : index
    %c0_7 = arith.constant 0 : index
    %c0_8 = arith.constant 0 : index
    %3 = vector.load %arg2[%c0_4, %c0_5, %c0_6, %c0_7, %c0_8] : memref<1x1x8x8x32xf32, #tpu.memory_space<vmem>>, vector<1x1x8x8x32xf32>
    %4 = vector.shape_cast %3 : vector<1x1x8x8x32xf32> to vector<1x8x8x32xf32>
    %c0_i32_9 = arith.constant 0 : i32
    %5 = arith.sitofp %c0_i32_9 : i32 to f32
    %6 = vector.broadcast %5 : f32 to vector<1x8x8x32xf32>
    %7 = arith.select %2, %4, %6 : vector<1x8x8x32xf32>
    %c0_i32_10 = arith.constant 0 : i32
    %8 = arith.cmpi slt, %arg1, %c0_i32_10 : i32
    %c0_11 = arith.constant 0 : index
    %c0_12 = arith.constant 0 : index
    %c0_13 = arith.constant 0 : index
    %c0_14 = arith.constant 0 : index
    %c0_15 = arith.constant 0 : index
    %9 = vector.load %arg4[%c0_11, %c0_12, %c0_13, %c0_14, %c0_15] : memref<1x1x8x8x32xf32, #tpu.memory_space<vmem>>, vector<1x1x8x8x32xf32>
    %10 = vector.shape_cast %9 : vector<1x1x8x8x32xf32> to vector<1x8x8x32xf32>
    %c0_i32_16 = arith.constant 0 : i32
    %11 = arith.sitofp %c0_i32_16 : i32 to f32
    %12 = vector.broadcast %11 : f32 to vector<1x8x8x32xf32>
    %13 = arith.select %8, %10, %12 : vector<1x8x8x32xf32>
    %14 = vector.extract_strided_slice %1 {offsets = [0, 0, 0, 0], sizes = [15, 8, 8, 32], strides = [1, 1, 1, 1]} : vector<16x8x8x32xf32> to vector<15x8x8x32xf32>
    %15 = tpu.concatenate %7, %14 in 0 : vector<1x8x8x32xf32>, vector<15x8x8x32xf32> -> vector<16x8x8x32xf32>
    %16 = vector.extract_strided_slice %1 {offsets = [1, 0, 0, 0], sizes = [15, 8, 8, 32], strides = [1, 1, 1, 1]} : vector<16x8x8x32xf32> to vector<15x8x8x32xf32>
    %17 = tpu.concatenate %16, %13 in 0 : vector<15x8x8x32xf32>, vector<1x8x8x32xf32> -> vector<16x8x8x32xf32>
    %cst = arith.constant 0.000000e+00 : f32
    %18 = vector.broadcast %cst : f32 to vector<16x1x8x32xf32>
    %19 = vector.extract_strided_slice %15 {offsets = [0, 0, 0, 0], sizes = [16, 7, 8, 32], strides = [1, 1, 1, 1]} : vector<16x8x8x32xf32> to vector<16x7x8x32xf32>
    %20 = tpu.concatenate %18, %19 in 1 : vector<16x1x8x32xf32>, vector<16x7x8x32xf32> -> vector<16x8x8x32xf32>
    %21 = vector.extract_strided_slice %15 {offsets = [0, 1, 0, 0], sizes = [16, 7, 8, 32], strides = [1, 1, 1, 1]} : vector<16x8x8x32xf32> to vector<16x7x8x32xf32>
    %22 = tpu.concatenate %21, %18 in 1 : vector<16x7x8x32xf32>, vector<16x1x8x32xf32> -> vector<16x8x8x32xf32>
    %23 = vector.extract_strided_slice %1 {offsets = [0, 0, 0, 0], sizes = [16, 7, 8, 32], strides = [1, 1, 1, 1]} : vector<16x8x8x32xf32> to vector<16x7x8x32xf32>
    %24 = tpu.concatenate %18, %23 in 1 : vector<16x1x8x32xf32>, vector<16x7x8x32xf32> -> vector<16x8x8x32xf32>
    %25 = vector.extract_strided_slice %1 {offsets = [0, 1, 0, 0], sizes = [16, 7, 8, 32], strides = [1, 1, 1, 1]} : vector<16x8x8x32xf32> to vector<16x7x8x32xf32>
    %26 = tpu.concatenate %25, %18 in 1 : vector<16x7x8x32xf32>, vector<16x1x8x32xf32> -> vector<16x8x8x32xf32>
    %27 = vector.extract_strided_slice %17 {offsets = [0, 0, 0, 0], sizes = [16, 7, 8, 32], strides = [1, 1, 1, 1]} : vector<16x8x8x32xf32> to vector<16x7x8x32xf32>
    %28 = tpu.concatenate %18, %27 in 1 : vector<16x1x8x32xf32>, vector<16x7x8x32xf32> -> vector<16x8x8x32xf32>
    %29 = vector.extract_strided_slice %17 {offsets = [0, 1, 0, 0], sizes = [16, 7, 8, 32], strides = [1, 1, 1, 1]} : vector<16x8x8x32xf32> to vector<16x7x8x32xf32>
    %30 = tpu.concatenate %29, %18 in 1 : vector<16x7x8x32xf32>, vector<16x1x8x32xf32> -> vector<16x8x8x32xf32>
    %31 = tpu.concatenate %20, %15, %22, %24, %26, %28, %17, %30 in 3 : vector<16x8x8x32xf32>, vector<16x8x8x32xf32>, vector<16x8x8x32xf32>, vector<16x8x8x32xf32>, vector<16x8x8x32xf32>, vector<16x8x8x32xf32>, vector<16x8x8x32xf32>, vector<16x8x8x32xf32> -> vector<16x8x8x256xf32>
    %c0_17 = arith.constant 0 : index
    %c0_18 = arith.constant 0 : index
    %c0_19 = arith.constant 0 : index
    %c0_20 = arith.constant 0 : index
    %c0_21 = arith.constant 0 : index
    %32 = vector.load %arg5[%c0_17, %c0_18, %c0_19, %c0_20, %c0_21] : memref<1x16x8x8x256xf32, #tpu.memory_space<vmem>>, vector<1x16x8x8x256xf32>
    %33 = vector.shape_cast %32 : vector<1x16x8x8x256xf32> to vector<16x8x8x256xf32>
    %34 = vector.shape_cast %31 : vector<16x8x8x256xf32> to vector<1x16x8x8x256xf32>
    tpu.vector_store %arg5[%c0_17, %c0_18, %c0_19, %c0_20, %c0_21], %34 {strides = array<i32>} : memref<1x16x8x8x256xf32, #tpu.memory_space<vmem>>, vector<1x16x8x8x256xf32>,
    return
  }
  func.func @transform_0(%arg0: i32, %arg1: i32) -> (i32, i32, i32, i32, i32) {
    %c16_i32 = arith.constant 16 : i32
    %0 = arith.muli %arg1, %c16_i32 : i32
    %c1_i32 = arith.constant 1 : i32
    %1 = arith.subi %0, %c1_i32 : i32
    %c0_i32 = arith.constant 0 : i32
    %2 = arith.maxsi %1, %c0_i32 : i32
    %c0_i32_0 = arith.constant 0 : i32
    %c0_i32_1 = arith.constant 0 : i32
    %c0_i32_2 = arith.constant 0 : i32
    %c0_i32_3 = arith.constant 0 : i32
    return %arg0, %2, %c0_i32_0, %c0_i32_1, %c0_i32_2 : i32, i32, i32, i32, i32
  }
  func.func @transform_1(%arg0: i32, %arg1: i32) -> (i32, i32, i32, i32, i32) {
    %c0_i32 = arith.constant 0 : i32
    %c0_i32_0 = arith.constant 0 : i32
    %c0_i32_1 = arith.constant 0 : i32
    %c0_i32_2 = arith.constant 0 : i32
    return %arg0, %arg1, %c0_i32, %c0_i32_0, %c0_i32_1 : i32, i32, i32, i32, i32
  }
  func.func @transform_2(%arg0: i32, %arg1: i32) -> (i32, i32, i32, i32, i32) {
    %c16_i32 = arith.constant 16 : i32
    %0 = arith.muli %arg1, %c16_i32 : i32
    %c16_i32_0 = arith.constant 16 : i32
    %1 = arith.addi %0, %c16_i32_0 : i32
    %c15_i32 = arith.constant 15 : i32
    %2 = arith.minsi %1, %c15_i32 : i32
    %c0_i32 = arith.constant 0 : i32
    %c0_i32_1 = arith.constant 0 : i32
    %c0_i32_2 = arith.constant 0 : i32
    %c0_i32_3 = arith.constant 0 : i32
    return %arg0, %2, %c0_i32, %c0_i32_1, %c0_i32_2 : i32, i32, i32, i32, i32
  }
  func.func @transform_3(%arg0: i32, %arg1: i32) -> (i32, i32, i32, i32, i32) {
    %c0_i32 = arith.constant 0 : i32
    %c0_i32_0 = arith.constant 0 : i32
    %c0_i32_1 = arith.constant 0 : i32
    %c0_i32_2 = arith.constant 0 : i32
    return %arg0, %arg1, %c0_i32, %c0_i32_0, %c0_i32_1 : i32, i32, i32, i32, i32
  }
}

</mosaic_0001>

<bundles_post_ra>
// kernel: tpu_custom_call.1
= control target key start
LH: loop header
LB: loop body
LE: loop exit
PB: predicated region body
PF: predicated region fallthrough
CT: control target
= control target key end

     0   :  { %s7706_s0 = inlined_call_operand.hbm [shape: f32[2,16,8,8,32], index: 0, kind: input, shape index: {}]   ;;  %s7707_s1 = inlined_call_operand.hbm [shape: f32[2,16,8,8,32], index: 1, kind: input, shape index: {}]   ;;  %s7708_s2 = inlined_call_operand.hbm [shape: f32[2,16,8,8,32], index: 2, kind: input, shape index: {}]   ;;  %s7709_s3 = inlined_call_operand.hbm [shape: f32[2,16,8,8,256], index: 3, kind: output, shape index: {}]  }
   0x1   :  { %8025 = sst [smem:[#allocation259_spill]] %s7707_s1 }
   0x2   :  { %8 = vsyncpa [#allocation3], 0 }
   0x3   :  { %10 = vsyncpa [#allocation3 + $0x1], 0 }
   0x4   :  { %11 = vsyncpa [#allocation6], 0 }
   0x5   :  { %13 = vsyncpa [#allocation6 + $0x1], 0 }
   0x6   :  { %14 = vsyncpa [#allocation4], 0 }
   0x7   :  { %16 = vsyncpa [#allocation4 + $0x1], 0  ;;  %s3712_s12 = smov 0   ;;  %s3714_s13 = smov 0  }
   0x8   :  { %s3716_s14 = smov 0   ;;  %s3718_s15 = smov 0  }
   0x9   :  { %s3720_s16 = smov 0   ;;  %s3722_s17 = smov 0  }
   0xa LB: > { %8026 = sst [smem:[#allocation12_spill]] %s3674_s16  ;;  %s3743_s18 = sadd.s32 4294967295, %s3678_s17   ;;  %s3678_s17 = sphi %s3722_s17, %s22_s17   ;;  %s3674_s16 = sphi %s3720_s16, %s8717_s16   ;;  %s3670_s15 = sphi %s3718_s15, %s8716_s15   ;;  %s3666_s14 = sphi %s3716_s14, %s8720_s14   ;;  %s3662_s13 = sphi %s3714_s13, %s8719_s13   ;;  %s3658_s12 = sphi %s3712_s12, %s8718_s12  }
   0xb   : > { %s3084_s19 = sadd.s32 4294967294, %s3678_s17   ;;  %s34_s20 = sadd.s32 1, %s3674_s16 }
   0xc   : > { %s51_s21 = sadd.s32 1, %s3666_s14  ;;  %p36_p0 = scmp.ge.s32.totalorder %s34_s20, 2 }
   0xd   : > { %p58_p1 = scmp.ne.s32.totalorder %s3666_s14, %s3662_s13  ;;  %p59_p2 = scmp.eq.s32.totalorder %s3678_s17, 0 }
   0xe   : > { %p64_p3 = scmp.ne.s32.totalorder %s3662_s13, %s3658_s12  ;;  %s8722_s20 = smov (%p36_p0, %s34_s20), 0 }
   0xf   : > { %8027 = sst [smem:[#allocation13_spill]] %s8722_s20  ;;  %p3755_p4 = por %p59_p2, %p58_p1 }
  0x10   : > { %p65_p5 = scmp.eq.s32.totalorder %s3743_s18, 0  ;;  %s46_s23 = ssub.s32 %s3674_s16, %s8722_s20 }
  0x11   : > { %p154_p6 = scmp.eq.s32.totalorder %s3743_s18, 1  ;;  %p49_p7 = scmp.eq.s32.totalorder %s46_s23, 0 }
  0x12   : > { %p3763_p8 = por %p65_p5, %p64_p3  ;;  %p160_p10 = scmp.eq.s32.totalorder %s3084_s19, 1 }
  0x13   : > { %p3767_p9 = por %p154_p6, %p58_p1  ;;  %p3134_p13 = scmp.lt.s32.totalorder %s3678_s17, 2 }
  0x14   : > { %s8029_s24 = scalar_select %p3763_p8, 1, 0 }
  0x15   : > { %s8030_s25 = scalar_select %p3767_p9, 1, 0 }
  0x16   : > { %s3772_s26 = scalar_select %p49_p7, %s3666_s14, %s51_s21  }
  0x17   : > { %p3774_p11 = por %p160_p10, %p64_p3  ;;  %s3781_s28 = sand.u32 1, %s3666_s14  }
  0x18   : > { %8031 = sst [smem:[#allocation14_spill]] %s3772_s26  ;;  %s3784_s29 = sshll.u32 %s3674_s16, 14 }
  0x19   : > { %s8032_s27 = scalar_select %p3774_p11, 1, 0 }
  0x1a   : > { %p3788_p0 = pnand %p3134_p13, %p3755_p4  ;;  %s207_s4 = sand.u32 1, %s3678_s17  }
  0x1b   : > { %s3090_s5 = sshll.u32 %s3781_s28, 10  ;;  %s8034_s1 = sld [smem:[#allocation259_spill]] }
  0x1c   : > { %s211_s9 = scalar_lea.vmem [#allocation5], %s3090_s5  ;;  %s3804_s11 = scalar_lea.sflag [#allocation6], %s207_s4 }
  0x1d   : > { %s221_s10 = sshll.u32 %s211_s9, 4  ;;  %p3810_p4 = pneg %p3788_p0  ;;  %s3801_s10 = int_to_ptr.vmem [resolvable:$true] %s221_s10 }
  0x21   : > { %s3798_s8 = scalar_lea.hbm %s8034_s1, %s3784_s29  ;;  %s3507_s5 = scalar_lea.hbm %s8034_s1, 32768 }
  0x22   : > { %s3502_s19 = scalar_lea.hbm %s3798_s8, 16384  ;;  %p3508_p7 = scmp.lt.u32.totalorder %s3798_s8, %s8034_s1 }
  0x23   : > { %p3503_p3 = scmp.ne.s32.totalorder %s3798_s8, %s3502_s19  ;;  %p3509_p10 = scmp.lt.u32.totalorder %s3507_s5, %s3502_s19 }
  0x24   : > { %p3511_p12 = scmp.lt.u32.totalorder %s3502_s19, %s3798_s8 }
  0x25   : > { %p3505_p5 = pnand %p3810_p4, %p3503_p3  ;;  %p3510_p13 = por %p3509_p10, %p3508_p7 }
  0x27   : > { %p3506_p6 = pneg %p3505_p5  ;;  %p3512_p1 = por %p3511_p12, %p3510_p13 }
  0x29   : > { %p3513_p2 = pnand %p3512_p1, %p3506_p6 }
  0x2b   : > { %3516 = shalt.err (!%p3513_p2)
}
  0x2c   : > { %s3517_s4 = scalar_lea.vmem %s3801_s10, 16384  ;;  %s3680_s9 = smov [#allocation5]  }
  0x2d   : > { %p3518_p3 = scmp.ne.s32.totalorder %s3801_s10, %s3517_s4  ;;  %s3522_s22 = sshll.u32 %s3680_s9, 4  ;;  %s3523_s22 = int_to_ptr.vmem [resolvable:$false] %s3522_s22 }
  0x2e   : > { %s3524_s23 = scalar_lea.vmem %s3523_s22, 32768  ;;  %p3525_p9 = scmp.lt.s32.totalorder %s3801_s10, %s3523_s22 }
  0x2f   : > { %p3520_p5 = pnand %p3518_p3, %p3810_p4  ;;  %p3526_p8 = scmp.lt.s32.totalorder %s3524_s23, %s3517_s4 }
  0x31   : > { %p3521_p11 = pneg %p3520_p5  ;;  %p3527_p7 = por %p3526_p8, %p3525_p9 }
  0x33   : > { %p3528_p10 = pnand %p3527_p7, %p3521_p11 }
  0x35   : > { %3531 = shalt.err (!%p3528_p10)
}
  0x36   : > { %s7713_s19 = smov 128   ;;  %s7715_s5 = smov 8  }
  0x37   : > { %3126 = dma.hbm_to_vmem [thread:$0]  (!%p3788_p0), %s3798_s8, 16384, %s3801_s10, %s3804_s11, %s7713_s19, %s7713_s19, %s7715_s5  }
  0x38   : > { %p8036_p8 = scmp.lt.s32.totalorder %s3678_s17, 3  ;;  %p8037_p9 = scmp.ge.s32.totalorder %s3678_s17, 1 }
  0x39   : > { %s3087_s7 = sshll.u32 %s3781_s28, 6  ;;  %s3850_s22 = scalar_lea.hbm %s7706_s0, %s3784_s29 }
  0x3a   : > { %p3841_p11 = pnand %p8037_p9, %p8036_p8  ;;  %s184_s23 = scalar_lea.vmem [#allocation2], %s3087_s7 }
  0x3b   : > { %s197_s1 = sshll.u32 %s184_s23, 4  ;;  %s235_s20 = scalar_lea.vmem [#allocation7], %s3087_s7  ;;  %s3852_s1 = int_to_ptr.vmem [resolvable:$true] %s197_s1 }
  0x3c   : > { %s8038_s6 = scalar_select %p3841_p11, 1, 0 }
  0x3d   : > { %s248_s8 = sshll.u32 %s235_s20, 4  ;;  %s181_s10 = scalar_lea.sflag [#allocation3], %s3781_s28  ;;  %s3854_s8 = int_to_ptr.vmem [resolvable:$true] %s248_s8 }
  0x3e   : > { %s3532_s19 = scalar_lea.hbm %s3850_s22, 1024  ;;  %s3537_s5 = scalar_lea.hbm %s7706_s0, 32768 }
  0x3f   : > { %p3533_p12 = scmp.ne.s32.totalorder %s3850_s22, %s3532_s19  ;;  %p3538_p6 = scmp.lt.u32.totalorder %s3850_s22, %s7706_s0 }
  0x40   : > { %p3539_p13 = scmp.lt.u32.totalorder %s3537_s5, %s3532_s19  ;;  %p3541_p5 = scmp.lt.u32.totalorder %s3532_s19, %s3850_s22 }
  0x41   : > { %p3535_p1 = pnand %p3533_p12, %p3810_p4 }
  0x42   : > { %p3540_p3 = por %p3539_p13, %p3538_p6 }
  0x43   : > { %p3536_p2 = pneg %p3535_p1 }
  0x44   : > { %p3542_p7 = por %p3541_p5, %p3540_p3 }
  0x46   : > { %p3543_p10 = pnand %p3542_p7, %p3536_p2 }
  0x48   : > { %3546 = shalt.err (!%p3543_p10)
}
  0x49   : > { %s3547_s20 = scalar_lea.vmem %s3852_s1, 1024  ;;  %s3683_s7 = smov [#allocation2]  }
  0x4a   : > { %p3548_p8 = scmp.ne.s32.totalorder %s3852_s1, %s3547_s20  ;;  %s3552_s23 = sshll.u32 %s3683_s7, 4  ;;  %s3553_s23 = int_to_ptr.vmem [resolvable:$false] %s3552_s23 }
  0x4b   : > { %s3554_s16 = scalar_lea.vmem %s3553_s23, 2048  ;;  %p3555_p1 = scmp.lt.s32.totalorder %s3852_s1, %s3553_s23 }
  0x4c   : > { %p3550_p9 = pnand %p3548_p8, %p3810_p4  ;;  %p3556_p11 = scmp.lt.s32.totalorder %s3554_s16, %s3547_s20 }
  0x4e   : > { %p3551_p12 = pneg %p3550_p9  ;;  %p3557_p6 = por %p3556_p11, %p3555_p1 }
  0x50   : > { %p3558_p13 = pnand %p3557_p6, %p3551_p12 }
  0x52   : > { %3561 = shalt.err (!%p3558_p13)
}
  0x53   : > { %s8039_s26 = smov 8   ;;  %s8040_s19 = smov 128  }
  0x54   : > { %3123 = dma.hbm_to_vmem [thread:$0]  (!%p3788_p0), %s3850_s22, 1024, %s3852_s1, %s181_s10, %s8040_s19, %s8040_s19, %s8039_s26  }
  0x55   : > { %s3109_s5 = sadd.s32 15360, %s3784_s29  ;;  %s3567_s16 = scalar_lea.hbm %s7708_s2, 32768 }
  0x56   : > { %s3887_s20 = scalar_lea.hbm %s7708_s2, %s3109_s5 }
  0x57   : > { %s3562_s7 = scalar_lea.hbm %s3887_s20, 1024  ;;  %p3568_p5 = scmp.lt.u32.totalorder %s3887_s20, %s7708_s2 }
  0x58   : > { %p3563_p11 = scmp.ne.s32.totalorder %s3887_s20, %s3562_s7  ;;  %p3569_p7 = scmp.lt.u32.totalorder %s3567_s16, %s3562_s7 }
  0x59   : > { %p3571_p8 = scmp.lt.u32.totalorder %s3562_s7, %s3887_s20 }
  0x5a   : > { %p3565_p2 = pnand %p3563_p11, %p3810_p4  ;;  %p3570_p10 = por %p3569_p7, %p3568_p5 }
  0x5c   : > { %p3566_p3 = pneg %p3565_p2  ;;  %p3572_p9 = por %p3571_p8, %p3570_p10 }
  0x5e   : > { %p3573_p12 = pnand %p3572_p9, %p3566_p3 }
  0x60   : > { %3576 = shalt.err (!%p3573_p12)
}
  0x61   : > { %s3577_s22 = scalar_lea.vmem %s3854_s8, 1024  ;;  %s3684_s10 = smov [#allocation7]  }
  0x62   : > { %p3578_p1 = scmp.ne.s32.totalorder %s3854_s8, %s3577_s22  ;;  %s3582_s5 = sshll.u32 %s3684_s10, 4  ;;  %s3583_s5 = int_to_ptr.vmem [resolvable:$false] %s3582_s5 }
  0x63   : > { %s3584_s4 = scalar_lea.vmem %s3583_s5, 2048  ;;  %p3585_p11 = scmp.lt.s32.totalorder %s3854_s8, %s3583_s5 }
  0x64   : > { %p3580_p6 = pnand %p3578_p1, %p3810_p4  ;;  %p3586_p2 = scmp.lt.s32.totalorder %s3584_s4, %s3577_s22 }
  0x66   : > { %p3581_p13 = pneg %p3580_p6  ;;  %p3587_p5 = por %p3586_p2, %p3585_p11 }
  0x68   : > { %p3588_p7 = pnand %p3587_p5, %p3581_p13 }
  0x6a   : > { %3591 = shalt.err (!%p3588_p7)
}
  0x6b   : > { %3129 = dma.hbm_to_vmem [thread:$0]  (!%p3788_p0), %s3887_s20, 1024, %s3854_s8, %s3804_s11, %s8040_s19, %s8040_s19, %s8039_s26  }
  0x6c   : > { %p8041_p4 = scmp.ne.s32.totalorder %s8038_s6, 0 }
  0x6e   : > { %260 = sbr.rel (%p8041_p4) target bundleno = 1059 (0x423), region = 32 }
  0x75   : > { %s3917_s21 = sand.u32 1, %s3662_s13   ;;  %p8042_p3 = scmp.ne.s32.totalorder %s8029_s24, 0 }
  0x76   : > { %s263_s9 = scalar_lea.sflag [#allocation3], %s3917_s21 }
  0x77   : > { %3645 = dma.done.wait (%p8042_p3), %s263_s9, 1024  }
  0x78   : > { %3647 = vsyncadd (%p8042_p3), %s263_s9, 4294966272  ;;  %s271_s30 = sand.u32 1, %s3743_s18   ;;  %s3098_s7 = sshll.u32 %s3917_s21, 10 }
  0x79   : > { %s272_s11 = scalar_lea.sflag [#allocation6], %s271_s30  ;;  %s3926_s8 = scalar_lea.vmem [#allocation5], %s3098_s7 }
  0x7a   : > { %3649 = dma.done.wait (%p8042_p3), %s272_s11, 17408  }
  0x7b   : > { %3651 = vsyncadd (%p8042_p3), %s272_s11, 4294949888  ;;  %v7718_v0 = vmov 0.0   ;;  %s3686_s6 = smov 32   ;;  %v3941_v1 = vld [vmem:[%s3926_s8 + $0x8] sm:$0xff]  ;;  %v327_v2 = vld [vmem:[%s3926_s8] sm:$0xff]  ;;  %s3687_s18 = smov 64  }
  0x7c   : > { %3203 = vrot.lane.b32.xlu1 %v7718_v0, %s3686_s6  ;;  %3193 = vrot.lane.b32.xlu0 %v7718_v0, %s3686_s6  ;;  %v3948_v3 = vld [vmem:[%s3926_s8 + $0x18] sm:$0xff]  ;;  %v3951_v4 = vld [vmem:[%s3926_s8 + $0x10] sm:$0xff]  ;;  %s3688_s24 = smov 96   ;;  %vm1903_vm0 = vcmask 261120   ;;  %vm2032_vm1 = vcmask 523264   ;;  %vm2161_vm2 = vcmask 785408  }
  0x7d   : > { %v3958_v5 = vld [vmem:[%s3926_s8 + $0x28] sm:$0xff]  ;;  %v3961_v6 = vld [vmem:[%s3926_s8 + $0x20] sm:$0xff]  ;;  %v3968_v7 = vld [vmem:[%s3926_s8 + $0x38] sm:$0xff]  ;;  %s3100_s26 = sshll.u32 %s3917_s21, 11  ;;  %s3110_s20 = sshll.u32 %s3670_s15, 15 }
  0x7e   : > { %v3971_v8 = vld [vmem:[%s3926_s8 + $0x30] sm:$0xff]  ;;  %v3978_v9 = vld [vmem:[%s3926_s8 + $0x48] sm:$0xff]  ;;  %v335_v10 = vld [vmem:[%s3926_s8 + $0x40] sm:$0xff]  ;;  %s5602_s19 = scalar_lea.vmem [#allocation8], %s3100_s26  ;;  %s7649_s16 = scalar_lea.hbm %s7709_s3, %s3110_s20 }
  0x7f   : > { %v3985_v11 = vld [vmem:[%s3926_s8 + $0x58] sm:$0xff]  ;;  %v3988_v12 = vld [vmem:[%s3926_s8 + $0x50] sm:$0xff]  ;;  %v3995_v13 = vld [vmem:[%s3926_s8 + $0x68] sm:$0xff]  ;;  %s2947_s28 = sshll.u32 %s5602_s19, 4  ;;  %s2931_s1 = scalar_lea.sflag [#allocation4], %s3917_s21  ;;  %s7651_s28 = int_to_ptr.vmem [resolvable:$true] %s2947_s28 }
  0x80   : > { %3208 = vrot.lane.b32.xlu1 %v7718_v0, %s3686_s6  ;;  %3198 = vrot.lane.b32.xlu0 %v7718_v0, %s3686_s6  ;;  %v3998_v14 = vld [vmem:[%s3926_s8 + $0x60] sm:$0xff]  ;;  %v4005_v15 = vld [vmem:[%s3926_s8 + $0x78] sm:$0xff]  ;;  %s3592_s29 = scalar_lea.vmem %s7651_s28, 32768  ;;  %p8712_p10 = scmp.ne.s32.totalorder %s8030_s25, 0 }
  0x81   : > { %v4008_v16 = vld [vmem:[%s3926_s8 + $0x70] sm:$0xff]  ;;  %v4015_v17 = vld [vmem:[%s3926_s8 + $0x88] sm:$0xff]  ;;  %v343_v18 = vld [vmem:[%s3926_s8 + $0x80] sm:$0xff]  ;;  %p3593_p0 = scmp.ne.s32.totalorder %s7651_s28, %s3592_s29  ;;  %s3689_s22 = smov [#allocation8]  }
  0x82   : > { %v4022_v19 = vld [vmem:[%s3926_s8 + $0x98] sm:$0xff]  ;;  %v4025_v20 = vld [vmem:[%s3926_s8 + $0x90] sm:$0xff]  ;;  %v4032_v21 = vld [vmem:[%s3926_s8 + $0xa8] sm:$0xff]  ;;  %s3596_s10 = sshll.u32 %s3689_s22, 4  ;;  %s3597_s10 = int_to_ptr.vmem [resolvable:$false] %s3596_s10 }
  0x83   : > { %v4035_v22 = vld [vmem:[%s3926_s8 + $0xa0] sm:$0xff]  ;;  %v4042_v23 = vld [vmem:[%s3926_s8 + $0xb8] sm:$0xff]  ;;  %v4045_v24 = vld [vmem:[%s3926_s8 + $0xb0] sm:$0xff]  ;;  %p3594_p8 = pnand %p3593_p0, %p8712_p10  ;;  %s3598_s5 = scalar_lea.vmem %s3597_s10, 65536 }
  0x84   : > { %641 = vrot.lane.b32.xlu1 %v3941_v1, %s3686_s6  ;;  %639 = vrot.lane.b32.xlu0 %v327_v2, %s3686_s6  ;;  %v4052_v25 = vld [vmem:[%s3926_s8 + $0xc8] sm:$0xff]  ;;  %v351_v26 = vld [vmem:[%s3926_s8 + $0xc0] sm:$0xff]  ;;  %p3599_p12 = scmp.lt.s32.totalorder %s7651_s28, %s3597_s10  ;;  %p3600_p1 = scmp.lt.s32.totalorder %s3598_s5, %s3592_s29 }
  0x85   : > { %v4059_v27 = vld [vmem:[%s3926_s8 + $0xd8] sm:$0xff]  ;;  %v4062_v28 = vld [vmem:[%s3926_s8 + $0xd0] sm:$0xff]  ;;  %v4069_v29 = vld [vmem:[%s3926_s8 + $0xe8] sm:$0xff]  ;;  %p3595_p9 = pneg %p3594_p8 }
  0x86   : > { %v4072_v30 = vld [vmem:[%s3926_s8 + $0xe0] sm:$0xff]  ;;  %v4079_v31 = vld [vmem:[%s3926_s8 + $0xf8] sm:$0xff]  ;;  %v4082_v32 = vld [vmem:[%s3926_s8 + $0xf0] sm:$0xff]  ;;  %p3601_p6 = por %p3600_p1, %p3599_p12 }
  0x87   : > { %v4089_v33 = vld [vmem:[%s3926_s8 + $0x108] sm:$0xff]  ;;  %v359_v34 = vld [vmem:[%s3926_s8 + $0x100] sm:$0xff]  ;;  %v4096_v35 = vld [vmem:[%s3926_s8 + $0x118] sm:$0xff] }
  0x88   : > { %645 = vrot.lane.b32.xlu1 %v3948_v3, %s3686_s6  ;;  %643 = vrot.lane.b32.xlu0 %v3951_v4, %s3686_s6  ;;  %v4099_v36 = vld [vmem:[%s3926_s8 + $0x110] sm:$0xff]  ;;  %v4106_v37 = vld [vmem:[%s3926_s8 + $0x128] sm:$0xff]  ;;  %p3602_p13 = pnand %p3601_p6, %p3595_p9 }
  0x89   : > { %v4109_v38 = vld [vmem:[%s3926_s8 + $0x120] sm:$0xff]  ;;  %v4116_v39 = vld [vmem:[%s3926_s8 + $0x138] sm:$0xff]  ;;  %v4119_v40 = vld [vmem:[%s3926_s8 + $0x130] sm:$0xff] }
  0x8a   : > { %v4126_v41 = vld [vmem:[%s3926_s8 + $0x148] sm:$0xff]  ;;  %v367_v42 = vld [vmem:[%s3926_s8 + $0x140] sm:$0xff]  ;;  %v4133_v43 = vld [vmem:[%s3926_s8 + $0x158] sm:$0xff] }
  0x8b   : > { %v4136_v44 = vld [vmem:[%s3926_s8 + $0x150] sm:$0xff]  ;;  %v4143_v45 = vld [vmem:[%s3926_s8 + $0x168] sm:$0xff]  ;;  %v4146_v46 = vld [vmem:[%s3926_s8 + $0x160] sm:$0xff] }
  0x8c   : > { %649 = vrot.lane.b32.xlu1 %v3958_v5, %s3686_s6  ;;  %647 = vrot.lane.b32.xlu0 %v3961_v6, %s3686_s6  ;;  %v4153_v47 = vld [vmem:[%s3926_s8 + $0x178] sm:$0xff]  ;;  %v4156_v48 = vld [vmem:[%s3926_s8 + $0x170] sm:$0xff] }
  0x8d   : > { %v4163_v49 = vld [vmem:[%s3926_s8 + $0x188] sm:$0xff]  ;;  %v375_v50 = vld [vmem:[%s3926_s8 + $0x180] sm:$0xff]  ;;  %v4170_v51 = vld [vmem:[%s3926_s8 + $0x198] sm:$0xff] }
  0x8e   : > { %v4173_v52 = vld [vmem:[%s3926_s8 + $0x190] sm:$0xff]  ;;  %v4180_v53 = vld [vmem:[%s3926_s8 + $0x1a8] sm:$0xff]  ;;  %v4183_v54 = vld [vmem:[%s3926_s8 + $0x1a0] sm:$0xff] }
  0x8f   : > { %v4190_v55 = vld [vmem:[%s3926_s8 + $0x1b8] sm:$0xff]  ;;  %v4193_v56 = vld [vmem:[%s3926_s8 + $0x1b0] sm:$0xff]  ;;  %v4204_v59 = vld [vmem:[%s3926_s8 + $0x1c8] sm:$0xff] }
  0x90   : > { %653 = vrot.lane.b32.xlu1 %v3968_v7, %s3686_s6  ;;  %651 = vrot.lane.b32.xlu0 %v3971_v8, %s3686_s6  ;;  %v383_v60 = vld [vmem:[%s3926_s8 + $0x1c0] sm:$0xff]  ;;  %v4215_v63 = vld [vmem:[%s3926_s8 + $0x1d8] sm:$0xff] }
  0x91   : > { %v4218_v2 = vld [vmem:[%s3926_s8 + $0x1d0] sm:$0xff] }
  0x92   : > { %v4246_v0 = vld [vmem:[%s3926_s8 + $0x1f0] sm:$0xff] }
  0x94   : > { %657 = vrot.lane.b32.xlu1 %v3978_v9, %s3686_s6  ;;  %655 = vrot.lane.b32.xlu0 %v335_v10, %s3686_s6 }
  0x98   : > { %661 = vrot.lane.b32.xlu1 %v3985_v11, %s3686_s6  ;;  %659 = vrot.lane.b32.xlu0 %v3988_v12, %s3686_s6 }
  0x9c   : > { %665 = vrot.lane.b32.xlu1 %v3995_v13, %s3686_s6  ;;  %663 = vrot.lane.b32.xlu0 %v3998_v14, %s3686_s6 }
  0xa0   : > { %669 = vrot.lane.b32.xlu1 %v4005_v15, %s3686_s6  ;;  %667 = vrot.lane.b32.xlu0 %v4008_v16, %s3686_s6 }
  0xa4   : > { %673 = vrot.lane.b32.xlu1 %v4015_v17, %s3686_s6  ;;  %671 = vrot.lane.b32.xlu0 %v343_v18, %s3686_s6 }
  0xa8   : > { %677 = vrot.lane.b32.xlu1 %v4022_v19, %s3686_s6  ;;  %675 = vrot.lane.b32.xlu0 %v4025_v20, %s3686_s6 }
  0xac   : > { %681 = vrot.lane.b32.xlu1 %v4032_v21, %s3686_s6  ;;  %679 = vrot.lane.b32.xlu0 %v4035_v22, %s3686_s6 }
  0xb0   : > { %685 = vrot.lane.b32.xlu1 %v4042_v23, %s3686_s6  ;;  %683 = vrot.lane.b32.xlu0 %v4045_v24, %s3686_s6 }
  0xb4   : > { %689 = vrot.lane.b32.xlu1 %v4052_v25, %s3686_s6  ;;  %687 = vrot.lane.b32.xlu0 %v351_v26, %s3686_s6  ;;  %v4229_v26 = vld [vmem:[%s3926_s8 + $0x1e8] sm:$0xff] }
  0xb8   : > { %693 = vrot.lane.b32.xlu1 %v4059_v27, %s3686_s6  ;;  %691 = vrot.lane.b32.xlu0 %v4062_v28, %s3686_s6 }
  0xbc   : > { %697 = vrot.lane.b32.xlu1 %v4069_v29, %s3686_s6  ;;  %695 = vrot.lane.b32.xlu0 %v4072_v30, %s3686_s6 }
  0xc0   : > { %701 = vrot.lane.b32.xlu1 %v4079_v31, %s3686_s6  ;;  %699 = vrot.lane.b32.xlu0 %v4082_v32, %s3686_s6 }
  0xc4   : > { %705 = vrot.lane.b32.xlu1 %v4089_v33, %s3686_s6  ;;  %703 = vrot.lane.b32.xlu0 %v359_v34, %s3686_s6  ;;  %v4232_v34 = vld [vmem:[%s3926_s8 + $0x1e0] sm:$0xff] }
  0xc8   : > { %709 = vrot.lane.b32.xlu1 %v4096_v35, %s3686_s6  ;;  %707 = vrot.lane.b32.xlu0 %v4099_v36, %s3686_s6 }
  0xcc   : > { %713 = vrot.lane.b32.xlu1 %v4106_v37, %s3686_s6  ;;  %711 = vrot.lane.b32.xlu0 %v4109_v38, %s3686_s6 }
  0xd0   : > { %717 = vrot.lane.b32.xlu1 %v4116_v39, %s3686_s6  ;;  %715 = vrot.lane.b32.xlu0 %v4119_v40, %s3686_s6 }
  0xd4   : > { %721 = vrot.lane.b32.xlu1 %v4126_v41, %s3686_s6  ;;  %719 = vrot.lane.b32.xlu0 %v367_v42, %s3686_s6 }
  0xd8   : > { %725 = vrot.lane.b32.xlu1 %v4133_v43, %s3686_s6  ;;  %723 = vrot.lane.b32.xlu0 %v4136_v44, %s3686_s6 }
  0xdc   : > { %729 = vrot.lane.b32.xlu1 %v4143_v45, %s3686_s6  ;;  %727 = vrot.lane.b32.xlu0 %v4146_v46, %s3686_s6 }
  0xe0   : > { %733 = vrot.lane.b32.xlu1 %v4153_v47, %s3686_s6  ;;  %731 = vrot.lane.b32.xlu0 %v4156_v48, %s3686_s6 }
  0xe4   : > { %737 = vrot.lane.b32.xlu1 %v4163_v49, %s3686_s6  ;;  %735 = vrot.lane.b32.xlu0 %v375_v50, %s3686_s6 }
  0xe8   : > { %741 = vrot.lane.b32.xlu1 %v4170_v51, %s3686_s6  ;;  %739 = vrot.lane.b32.xlu0 %v4173_v52, %s3686_s6 }
  0xec   : > { %745 = vrot.lane.b32.xlu1 %v4180_v53, %s3686_s6  ;;  %743 = vrot.lane.b32.xlu0 %v4183_v54, %s3686_s6 }
  0xee   : > { %v4195_v57 = vpop.permute.xlu1 %3203  ;;  %v4197_v58 = vpop.permute.xlu0 %3193 }
  0xef   : > { %8043 = vst [vmem:[#allocation15_spill] sm:$0xff] %v4195_v57  ;;  %8044 = vst [vmem:[#allocation16_spill] sm:$0xff] %v4197_v58 }
  0xf0   : > { %749 = vrot.lane.b32.xlu1 %v4190_v55, %s3686_s6  ;;  %747 = vrot.lane.b32.xlu0 %v4193_v56, %s3686_s6 }
  0xf2   : > { %v4207_v61 = vpop.permute.xlu1 %3208  ;;  %v4209_v62 = vpop.permute.xlu0 %3198 }
  0xf3   : > { %8045 = vst [vmem:[#allocation17_spill] sm:$0xff] %v4207_v61  ;;  %8046 = vst [vmem:[#allocation18_spill] sm:$0xff] %v4209_v62 }
  0xf4   : > { %753 = vrot.lane.b32.xlu1 %v4204_v59, %s3686_s6  ;;  %751 = vrot.lane.b32.xlu0 %v383_v60, %s3686_s6  ;;  %v4243_v60 = vld [vmem:[%s3926_s8 + $0x1f8] sm:$0xff] }
  0xf6   : > { %v4220_v10 = vpop.permute.xlu1 %641  ;;  %v4222_v18 = vpop.permute.xlu0 %639 }
  0xf7   : > { %8047 = vst [vmem:[#allocation19_spill] sm:$0xff] %v4220_v10  ;;  %8048 = vst [vmem:[#allocation20_spill] sm:$0xff] %v4222_v18 }
  0xf8   : > { %757 = vrot.lane.b32.xlu1 %v4215_v63, %s3686_s6  ;;  %755 = vrot.lane.b32.xlu0 %v4218_v2, %s3686_s6 }
  0xfa   : > { %v4234_v42 = vpop.permute.xlu1 %645  ;;  %v4236_v50 = vpop.permute.xlu0 %643 }
  0xfb   : > { %8049 = vst [vmem:[#allocation21_spill] sm:$0xff] %v4234_v42  ;;  %8050 = vst [vmem:[#allocation22_spill] sm:$0xff] %v4236_v50  ;;  %v4257_v50 = vld [vmem:[%s3926_s8 + $0x208] sm:$0xff]  ;;  %v391_v42 = vld [vmem:[%s3926_s8 + $0x200] sm:$0xff] }
  0xfc   : > { %761 = vrot.lane.b32.xlu1 %v4229_v26, %s3686_s6  ;;  %759 = vrot.lane.b32.xlu0 %v4232_v34, %s3686_s6  ;;  %8053 = vst [vmem:[#allocation25_spill] sm:$0xff] %v4257_v50 }
  0xfe   : > { %v4248_v10 = vpop.permute.xlu1 %649  ;;  %v4250_v18 = vpop.permute.xlu0 %647 }
  0xff   : > { %8051 = vst [vmem:[#allocation23_spill] sm:$0xff] %v4248_v10  ;;  %8052 = vst [vmem:[#allocation24_spill] sm:$0xff] %v4250_v18  ;;  %v4268_v18 = vld [vmem:[%s3926_s8 + $0x218] sm:$0xff]  ;;  %v4271_v10 = vld [vmem:[%s3926_s8 + $0x210] sm:$0xff] }
 0x100   : > { %765 = vrot.lane.b32.xlu1 %v4243_v60, %s3686_s6  ;;  %763 = vrot.lane.b32.xlu0 %v4246_v0, %s3686_s6  ;;  %8056 = vst [vmem:[#allocation28_spill] sm:$0xff] %v4268_v18  ;;  %8057 = vst [vmem:[#allocation29_spill] sm:$0xff] %v4271_v10 }
 0x102   : > { %v4260_v61 = vpop.permute.xlu1 %653  ;;  %v4262_v62 = vpop.permute.xlu0 %651 }
 0x103   : > { %8054 = vst [vmem:[#allocation26_spill] sm:$0xff] %v4260_v61  ;;  %8055 = vst [vmem:[#allocation27_spill] sm:$0xff] %v4262_v62  ;;  %v4282_v62 = vld [vmem:[%s3926_s8 + $0x228] sm:$0xff]  ;;  %v4285_v61 = vld [vmem:[%s3926_s8 + $0x220] sm:$0xff] }
 0x104   : > { %769 = vrot.lane.b32.xlu1 %v4257_v50, %s3686_s6  ;;  %767 = vrot.lane.b32.xlu0 %v391_v42, %s3686_s6  ;;  %8060 = vst [vmem:[#allocation32_spill] sm:$0xff] %v4282_v62  ;;  %8061 = vst [vmem:[#allocation33_spill] sm:$0xff] %v4285_v61 }
 0x106   : > { %v4273_v58 = vpop.permute.xlu1 %657  ;;  %v4275_v57 = vpop.permute.xlu0 %655 }
 0x107   : > { %8058 = vst [vmem:[#allocation30_spill] sm:$0xff] %v4273_v58  ;;  %8059 = vst [vmem:[#allocation31_spill] sm:$0xff] %v4275_v57  ;;  %v4296_v58 = vld [vmem:[%s3926_s8 + $0x238] sm:$0xff]  ;;  %v4299_v57 = vld [vmem:[%s3926_s8 + $0x230] sm:$0xff] }
 0x108   : > { %773 = vrot.lane.b32.xlu1 %v4268_v18, %s3686_s6  ;;  %771 = vrot.lane.b32.xlu0 %v4271_v10, %s3686_s6  ;;  %8064 = vst [vmem:[#allocation36_spill] sm:$0xff] %v4296_v58  ;;  %8065 = vst [vmem:[#allocation37_spill] sm:$0xff] %v4299_v57 }
 0x10a   : > { %v4287_v42 = vpop.permute.xlu1 %661  ;;  %v4289_v50 = vpop.permute.xlu0 %659 }
 0x10b   : > { %8062 = vst [vmem:[#allocation34_spill] sm:$0xff] %v4287_v42  ;;  %8063 = vst [vmem:[#allocation35_spill] sm:$0xff] %v4289_v50  ;;  %v4310_v42 = vld [vmem:[%s3926_s8 + $0x248] sm:$0xff]  ;;  %v399_v50 = vld [vmem:[%s3926_s8 + $0x240] sm:$0xff] }
 0x10c   : > { %777 = vrot.lane.b32.xlu1 %v4282_v62, %s3686_s6  ;;  %775 = vrot.lane.b32.xlu0 %v4285_v61, %s3686_s6  ;;  %8068 = vst [vmem:[#allocation40_spill] sm:$0xff] %v4310_v42 }
 0x10e   : > { %v4301_v18 = vpop.permute.xlu1 %665  ;;  %v4303_v10 = vpop.permute.xlu0 %663 }
 0x10f   : > { %8066 = vst [vmem:[#allocation38_spill] sm:$0xff] %v4301_v18  ;;  %8067 = vst [vmem:[#allocation39_spill] sm:$0xff] %v4303_v10  ;;  %v4321_v18 = vld [vmem:[%s3926_s8 + $0x258] sm:$0xff]  ;;  %v4324_v10 = vld [vmem:[%s3926_s8 + $0x250] sm:$0xff] }
 0x110   : > { %781 = vrot.lane.b32.xlu1 %v4296_v58, %s3686_s6  ;;  %779 = vrot.lane.b32.xlu0 %v4299_v57, %s3686_s6  ;;  %8071 = vst [vmem:[#allocation43_spill] sm:$0xff] %v4321_v18  ;;  %8072 = vst [vmem:[#allocation44_spill] sm:$0xff] %v4324_v10 }
 0x112   : > { %v4313_v62 = vpop.permute.xlu1 %669  ;;  %v4315_v61 = vpop.permute.xlu0 %667 }
 0x113   : > { %8069 = vst [vmem:[#allocation41_spill] sm:$0xff] %v4313_v62  ;;  %8070 = vst [vmem:[#allocation42_spill] sm:$0xff] %v4315_v61  ;;  %v4335_v62 = vld [vmem:[%s3926_s8 + $0x268] sm:$0xff]  ;;  %v4338_v61 = vld [vmem:[%s3926_s8 + $0x260] sm:$0xff] }
 0x114   : > { %785 = vrot.lane.b32.xlu1 %v4310_v42, %s3686_s6  ;;  %783 = vrot.lane.b32.xlu0 %v399_v50, %s3686_s6  ;;  %8075 = vst [vmem:[#allocation47_spill] sm:$0xff] %v4335_v62  ;;  %8076 = vst [vmem:[#allocation48_spill] sm:$0xff] %v4338_v61 }
 0x116   : > { %v4326_v58 = vpop.permute.xlu1 %673  ;;  %v4328_v57 = vpop.permute.xlu0 %671 }
 0x117   : > { %8073 = vst [vmem:[#allocation45_spill] sm:$0xff] %v4326_v58  ;;  %8074 = vst [vmem:[#allocation46_spill] sm:$0xff] %v4328_v57  ;;  %v4349_v58 = vld [vmem:[%s3926_s8 + $0x278] sm:$0xff]  ;;  %v4352_v57 = vld [vmem:[%s3926_s8 + $0x270] sm:$0xff] }
 0x118   : > { %789 = vrot.lane.b32.xlu1 %v4321_v18, %s3686_s6  ;;  %787 = vrot.lane.b32.xlu0 %v4324_v10, %s3686_s6  ;;  %8079 = vst [vmem:[#allocation51_spill] sm:$0xff] %v4349_v58  ;;  %8080 = vst [vmem:[#allocation52_spill] sm:$0xff] %v4352_v57 }
 0x11a   : > { %v4340_v50 = vpop.permute.xlu1 %677  ;;  %v4342_v42 = vpop.permute.xlu0 %675 }
 0x11b   : > { %8077 = vst [vmem:[#allocation49_spill] sm:$0xff] %v4340_v50  ;;  %8078 = vst [vmem:[#allocation50_spill] sm:$0xff] %v4342_v42  ;;  %v4363_v42 = vld [vmem:[%s3926_s8 + $0x288] sm:$0xff]  ;;  %v407_v50 = vld [vmem:[%s3926_s8 + $0x280] sm:$0xff] }
 0x11c   : > { %793 = vrot.lane.b32.xlu1 %v4335_v62, %s3686_s6  ;;  %791 = vrot.lane.b32.xlu0 %v4338_v61, %s3686_s6  ;;  %8083 = vst [vmem:[#allocation55_spill] sm:$0xff] %v4363_v42 }
 0x11e   : > { %v4354_v10 = vpop.permute.xlu1 %681  ;;  %v4356_v18 = vpop.permute.xlu0 %679 }
 0x11f   : > { %8081 = vst [vmem:[#allocation53_spill] sm:$0xff] %v4354_v10  ;;  %8082 = vst [vmem:[#allocation54_spill] sm:$0xff] %v4356_v18  ;;  %v4374_v10 = vld [vmem:[%s3926_s8 + $0x298] sm:$0xff]  ;;  %v4377_v18 = vld [vmem:[%s3926_s8 + $0x290] sm:$0xff] }
 0x120   : > { %797 = vrot.lane.b32.xlu1 %v4349_v58, %s3686_s6  ;;  %795 = vrot.lane.b32.xlu0 %v4352_v57, %s3686_s6  ;;  %8086 = vst [vmem:[#allocation58_spill] sm:$0xff] %v4374_v10  ;;  %8087 = vst [vmem:[#allocation59_spill] sm:$0xff] %v4377_v18 }
 0x122   : > { %v4366_v61 = vpop.permute.xlu1 %685  ;;  %v4368_v62 = vpop.permute.xlu0 %683 }
 0x123   : > { %8084 = vst [vmem:[#allocation56_spill] sm:$0xff] %v4366_v61  ;;  %8085 = vst [vmem:[#allocation57_spill] sm:$0xff] %v4368_v62  ;;  %v4388_v61 = vld [vmem:[%s3926_s8 + $0x2a8] sm:$0xff]  ;;  %v4391_v62 = vld [vmem:[%s3926_s8 + $0x2a0] sm:$0xff] }
 0x124   : > { %801 = vrot.lane.b32.xlu1 %v4363_v42, %s3686_s6  ;;  %799 = vrot.lane.b32.xlu0 %v407_v50, %s3686_s6  ;;  %8090 = vst [vmem:[#allocation62_spill] sm:$0xff] %v4388_v61  ;;  %8091 = vst [vmem:[#allocation63_spill] sm:$0xff] %v4391_v62 }
 0x126   : > { %v4379_v58 = vpop.permute.xlu1 %689  ;;  %v4381_v57 = vpop.permute.xlu0 %687 }
 0x127   : > { %8088 = vst [vmem:[#allocation60_spill] sm:$0xff] %v4379_v58  ;;  %8089 = vst [vmem:[#allocation61_spill] sm:$0xff] %v4381_v57  ;;  %v4402_v58 = vld [vmem:[%s3926_s8 + $0x2b8] sm:$0xff]  ;;  %v4405_v57 = vld [vmem:[%s3926_s8 + $0x2b0] sm:$0xff] }
 0x128   : > { %805 = vrot.lane.b32.xlu1 %v4374_v10, %s3686_s6  ;;  %803 = vrot.lane.b32.xlu0 %v4377_v18, %s3686_s6  ;;  %8094 = vst [vmem:[#allocation66_spill] sm:$0xff] %v4402_v58  ;;  %8095 = vst [vmem:[#allocation67_spill] sm:$0xff] %v4405_v57 }
 0x12a   : > { %v4393_v50 = vpop.permute.xlu1 %693  ;;  %v4395_v42 = vpop.permute.xlu0 %691 }
 0x12b   : > { %8092 = vst [vmem:[#allocation64_spill] sm:$0xff] %v4393_v50  ;;  %8093 = vst [vmem:[#allocation65_spill] sm:$0xff] %v4395_v42  ;;  %v4416_v50 = vld [vmem:[%s3926_s8 + $0x2c8] sm:$0xff]  ;;  %v415_v42 = vld [vmem:[%s3926_s8 + $0x2c0] sm:$0xff] }
 0x12c   : > { %809 = vrot.lane.b32.xlu1 %v4388_v61, %s3686_s6  ;;  %807 = vrot.lane.b32.xlu0 %v4391_v62, %s3686_s6  ;;  %8098 = vst [vmem:[#allocation70_spill] sm:$0xff] %v4416_v50 }
 0x12e   : > { %v4407_v10 = vpop.permute.xlu1 %697  ;;  %v4409_v18 = vpop.permute.xlu0 %695 }
 0x12f   : > { %8096 = vst [vmem:[#allocation68_spill] sm:$0xff] %v4407_v10  ;;  %8097 = vst [vmem:[#allocation69_spill] sm:$0xff] %v4409_v18  ;;  %v4427_v10 = vld [vmem:[%s3926_s8 + $0x2d8] sm:$0xff]  ;;  %v4430_v18 = vld [vmem:[%s3926_s8 + $0x2d0] sm:$0xff] }
 0x130   : > { %813 = vrot.lane.b32.xlu1 %v4402_v58, %s3686_s6  ;;  %811 = vrot.lane.b32.xlu0 %v4405_v57, %s3686_s6  ;;  %8101 = vst [vmem:[#allocation73_spill] sm:$0xff] %v4427_v10  ;;  %8102 = vst [vmem:[#allocation74_spill] sm:$0xff] %v4430_v18 }
 0x132   : > { %v4419_v61 = vpop.permute.xlu1 %701  ;;  %v4421_v62 = vpop.permute.xlu0 %699 }
 0x133   : > { %8099 = vst [vmem:[#allocation71_spill] sm:$0xff] %v4419_v61  ;;  %8100 = vst [vmem:[#allocation72_spill] sm:$0xff] %v4421_v62  ;;  %v4441_v61 = vld [vmem:[%s3926_s8 + $0x2e8] sm:$0xff]  ;;  %v4444_v62 = vld [vmem:[%s3926_s8 + $0x2e0] sm:$0xff] }
 0x134   : > { %817 = vrot.lane.b32.xlu1 %v4416_v50, %s3686_s6  ;;  %815 = vrot.lane.b32.xlu0 %v415_v42, %s3686_s6  ;;  %8105 = vst [vmem:[#allocation77_spill] sm:$0xff] %v4441_v61  ;;  %8106 = vst [vmem:[#allocation78_spill] sm:$0xff] %v4444_v62 }
 0x136   : > { %v4432_v58 = vpop.permute.xlu1 %705  ;;  %v4434_v57 = vpop.permute.xlu0 %703 }
 0x137   : > { %8103 = vst [vmem:[#allocation75_spill] sm:$0xff] %v4432_v58  ;;  %8104 = vst [vmem:[#allocation76_spill] sm:$0xff] %v4434_v57  ;;  %v4455_v58 = vld [vmem:[%s3926_s8 + $0x2f8] sm:$0xff]  ;;  %v4458_v57 = vld [vmem:[%s3926_s8 + $0x2f0] sm:$0xff] }
 0x138   : > { %821 = vrot.lane.b32.xlu1 %v4427_v10, %s3686_s6  ;;  %819 = vrot.lane.b32.xlu0 %v4430_v18, %s3686_s6  ;;  %8109 = vst [vmem:[#allocation81_spill] sm:$0xff] %v4455_v58  ;;  %8110 = vst [vmem:[#allocation82_spill] sm:$0xff] %v4458_v57 }
 0x13a   : > { %v4446_v42 = vpop.permute.xlu1 %709  ;;  %v4448_v50 = vpop.permute.xlu0 %707 }
 0x13b   : > { %8107 = vst [vmem:[#allocation79_spill] sm:$0xff] %v4446_v42  ;;  %8108 = vst [vmem:[#allocation80_spill] sm:$0xff] %v4448_v50  ;;  %v4469_v50 = vld [vmem:[%s3926_s8 + $0x308] sm:$0xff]  ;;  %v423_v42 = vld [vmem:[%s3926_s8 + $0x300] sm:$0xff] }
 0x13c   : > { %825 = vrot.lane.b32.xlu1 %v4441_v61, %s3686_s6  ;;  %823 = vrot.lane.b32.xlu0 %v4444_v62, %s3686_s6  ;;  %8113 = vst [vmem:[#allocation85_spill] sm:$0xff] %v4469_v50 }
 0x13e   : > { %v4460_v18 = vpop.permute.xlu1 %713  ;;  %v4462_v10 = vpop.permute.xlu0 %711 }
 0x13f   : > { %8111 = vst [vmem:[#allocation83_spill] sm:$0xff] %v4460_v18  ;;  %8112 = vst [vmem:[#allocation84_spill] sm:$0xff] %v4462_v10  ;;  %v4480_v18 = vld [vmem:[%s3926_s8 + $0x318] sm:$0xff]  ;;  %v4483_v10 = vld [vmem:[%s3926_s8 + $0x310] sm:$0xff] }
 0x140   : > { %829 = vrot.lane.b32.xlu1 %v4455_v58, %s3686_s6  ;;  %827 = vrot.lane.b32.xlu0 %v4458_v57, %s3686_s6  ;;  %8116 = vst [vmem:[#allocation88_spill] sm:$0xff] %v4480_v18  ;;  %8117 = vst [vmem:[#allocation89_spill] sm:$0xff] %v4483_v10 }
 0x142   : > { %v4472_v62 = vpop.permute.xlu1 %717  ;;  %v4474_v61 = vpop.permute.xlu0 %715 }
 0x143   : > { %8114 = vst [vmem:[#allocation86_spill] sm:$0xff] %v4472_v62  ;;  %8115 = vst [vmem:[#allocation87_spill] sm:$0xff] %v4474_v61  ;;  %v4494_v62 = vld [vmem:[%s3926_s8 + $0x328] sm:$0xff]  ;;  %v4497_v61 = vld [vmem:[%s3926_s8 + $0x320] sm:$0xff] }
 0x144   : > { %833 = vrot.lane.b32.xlu1 %v4469_v50, %s3686_s6  ;;  %831 = vrot.lane.b32.xlu0 %v423_v42, %s3686_s6  ;;  %8120 = vst [vmem:[#allocation92_spill] sm:$0xff] %v4494_v62  ;;  %8121 = vst [vmem:[#allocation93_spill] sm:$0xff] %v4497_v61 }
 0x146   : > { %v4485_v58 = vpop.permute.xlu1 %721  ;;  %v4487_v57 = vpop.permute.xlu0 %719 }
 0x147   : > { %8118 = vst [vmem:[#allocation90_spill] sm:$0xff] %v4485_v58  ;;  %8119 = vst [vmem:[#allocation91_spill] sm:$0xff] %v4487_v57  ;;  %v4508_v58 = vld [vmem:[%s3926_s8 + $0x338] sm:$0xff]  ;;  %v4511_v57 = vld [vmem:[%s3926_s8 + $0x330] sm:$0xff] }
 0x148   : > { %837 = vrot.lane.b32.xlu1 %v4480_v18, %s3686_s6  ;;  %835 = vrot.lane.b32.xlu0 %v4483_v10, %s3686_s6  ;;  %8124 = vst [vmem:[#allocation96_spill] sm:$0xff] %v4508_v58  ;;  %8125 = vst [vmem:[#allocation97_spill] sm:$0xff] %v4511_v57 }
 0x14a   : > { %v4499_v42 = vpop.permute.xlu1 %725  ;;  %v4501_v50 = vpop.permute.xlu0 %723 }
 0x14b   : > { %8122 = vst [vmem:[#allocation94_spill] sm:$0xff] %v4499_v42  ;;  %8123 = vst [vmem:[#allocation95_spill] sm:$0xff] %v4501_v50  ;;  %v4522_v42 = vld [vmem:[%s3926_s8 + $0x348] sm:$0xff]  ;;  %v431_v50 = vld [vmem:[%s3926_s8 + $0x340] sm:$0xff] }
 0x14c   : > { %841 = vrot.lane.b32.xlu1 %v4494_v62, %s3686_s6  ;;  %839 = vrot.lane.b32.xlu0 %v4497_v61, %s3686_s6  ;;  %8128 = vst [vmem:[#allocation100_spill] sm:$0xff] %v4522_v42 }
 0x14e   : > { %v4513_v18 = vpop.permute.xlu1 %729  ;;  %v4515_v10 = vpop.permute.xlu0 %727 }
 0x14f   : > { %8126 = vst [vmem:[#allocation98_spill] sm:$0xff] %v4513_v18  ;;  %8127 = vst [vmem:[#allocation99_spill] sm:$0xff] %v4515_v10  ;;  %v4533_v18 = vld [vmem:[%s3926_s8 + $0x358] sm:$0xff]  ;;  %v4536_v10 = vld [vmem:[%s3926_s8 + $0x350] sm:$0xff] }
 0x150   : > { %845 = vrot.lane.b32.xlu1 %v4508_v58, %s3686_s6  ;;  %843 = vrot.lane.b32.xlu0 %v4511_v57, %s3686_s6  ;;  %8131 = vst [vmem:[#allocation103_spill] sm:$0xff] %v4533_v18  ;;  %8132 = vst [vmem:[#allocation104_spill] sm:$0xff] %v4536_v10 }
 0x152   : > { %v4525_v62 = vpop.permute.xlu1 %733  ;;  %v4527_v61 = vpop.permute.xlu0 %731 }
 0x153   : > { %8129 = vst [vmem:[#allocation101_spill] sm:$0xff] %v4525_v62  ;;  %8130 = vst [vmem:[#allocation102_spill] sm:$0xff] %v4527_v61  ;;  %v4547_v62 = vld [vmem:[%s3926_s8 + $0x368] sm:$0xff]  ;;  %v4550_v61 = vld [vmem:[%s3926_s8 + $0x360] sm:$0xff] }
 0x154   : > { %849 = vrot.lane.b32.xlu1 %v4522_v42, %s3686_s6  ;;  %847 = vrot.lane.b32.xlu0 %v431_v50, %s3686_s6  ;;  %8135 = vst [vmem:[#allocation107_spill] sm:$0xff] %v4547_v62  ;;  %8136 = vst [vmem:[#allocation108_spill] sm:$0xff] %v4550_v61 }
 0x156   : > { %v4538_v58 = vpop.permute.xlu1 %737  ;;  %v4540_v57 = vpop.permute.xlu0 %735 }
 0x157   : > { %8133 = vst [vmem:[#allocation105_spill] sm:$0xff] %v4538_v58  ;;  %8134 = vst [vmem:[#allocation106_spill] sm:$0xff] %v4540_v57  ;;  %v4561_v58 = vld [vmem:[%s3926_s8 + $0x378] sm:$0xff]  ;;  %v4564_v57 = vld [vmem:[%s3926_s8 + $0x370] sm:$0xff] }
 0x158   : > { %853 = vrot.lane.b32.xlu1 %v4533_v18, %s3686_s6  ;;  %851 = vrot.lane.b32.xlu0 %v4536_v10, %s3686_s6  ;;  %8139 = vst [vmem:[#allocation111_spill] sm:$0xff] %v4561_v58  ;;  %8140 = vst [vmem:[#allocation112_spill] sm:$0xff] %v4564_v57 }
 0x15a   : > { %v4552_v50 = vpop.permute.xlu1 %741  ;;  %v4554_v42 = vpop.permute.xlu0 %739 }
 0x15b   : > { %8137 = vst [vmem:[#allocation109_spill] sm:$0xff] %v4552_v50  ;;  %8138 = vst [vmem:[#allocation110_spill] sm:$0xff] %v4554_v42  ;;  %v4575_v42 = vld [vmem:[%s3926_s8 + $0x388] sm:$0xff]  ;;  %v439_v50 = vld [vmem:[%s3926_s8 + $0x380] sm:$0xff] }
 0x15c   : > { %857 = vrot.lane.b32.xlu1 %v4547_v62, %s3686_s6  ;;  %855 = vrot.lane.b32.xlu0 %v4550_v61, %s3686_s6  ;;  %8143 = vst [vmem:[#allocation115_spill] sm:$0xff] %v4575_v42 }
 0x15e   : > { %v4566_v10 = vpop.permute.xlu1 %745  ;;  %v4568_v18 = vpop.permute.xlu0 %743 }
 0x15f   : > { %8141 = vst [vmem:[#allocation113_spill] sm:$0xff] %v4566_v10  ;;  %8142 = vst [vmem:[#allocation114_spill] sm:$0xff] %v4568_v18  ;;  %v4586_v10 = vld [vmem:[%s3926_s8 + $0x398] sm:$0xff]  ;;  %v4589_v18 = vld [vmem:[%s3926_s8 + $0x390] sm:$0xff] }
 0x160   : > { %861 = vrot.lane.b32.xlu1 %v4561_v58, %s3686_s6  ;;  %859 = vrot.lane.b32.xlu0 %v4564_v57, %s3686_s6  ;;  %8146 = vst [vmem:[#allocation118_spill] sm:$0xff] %v4586_v10  ;;  %8147 = vst [vmem:[#allocation119_spill] sm:$0xff] %v4589_v18 }
 0x162   : > { %v4578_v61 = vpop.permute.xlu1 %749  ;;  %v4580_v62 = vpop.permute.xlu0 %747 }
 0x163   : > { %8144 = vst [vmem:[#allocation116_spill] sm:$0xff] %v4578_v61  ;;  %8145 = vst [vmem:[#allocation117_spill] sm:$0xff] %v4580_v62  ;;  %v4600_v61 = vld [vmem:[%s3926_s8 + $0x3a8] sm:$0xff]  ;;  %v4603_v62 = vld [vmem:[%s3926_s8 + $0x3a0] sm:$0xff] }
 0x164   : > { %865 = vrot.lane.b32.xlu1 %v4575_v42, %s3686_s6  ;;  %863 = vrot.lane.b32.xlu0 %v439_v50, %s3686_s6  ;;  %8150 = vst [vmem:[#allocation122_spill] sm:$0xff] %v4600_v61 }
 0x166   : > { %v4591_v58 = vpop.permute.xlu1 %753  ;;  %v4593_v57 = vpop.permute.xlu0 %751 }
 0x167   : > { %8148 = vst [vmem:[#allocation120_spill] sm:$0xff] %v4591_v58  ;;  %8149 = vst [vmem:[#allocation121_spill] sm:$0xff] %v4593_v57  ;;  %v4614_v58 = vld [vmem:[%s3926_s8 + $0x3b8] sm:$0xff]  ;;  %v4617_v57 = vld [vmem:[%s3926_s8 + $0x3b0] sm:$0xff] }
 0x168   : > { %869 = vrot.lane.b32.xlu1 %v4586_v10, %s3686_s6  ;;  %867 = vrot.lane.b32.xlu0 %v4589_v18, %s3686_s6  ;;  %8153 = vst [vmem:[#allocation125_spill] sm:$0xff] %v4614_v58 }
 0x16a   : > { %v4605_v42 = vpop.permute.xlu1 %757  ;;  %v4607_v50 = vpop.permute.xlu0 %755 }
 0x16b   : > { %8151 = vst [vmem:[#allocation123_spill] sm:$0xff] %v4605_v42  ;;  %8152 = vst [vmem:[#allocation124_spill] sm:$0xff] %v4607_v50 }
 0x16c   : > { %873 = vrot.lane.b32.xlu1 %v4600_v61, %s3686_s6  ;;  %871 = vrot.lane.b32.xlu0 %v4603_v62, %s3686_s6  ;;  %v8158_v61 = vmov 0.0  }
 0x16e   : > { %v4619_v10 = vpop.permute.xlu1 %761  ;;  %v4621_v18 = vpop.permute.xlu0 %759 }
 0x16f   : > { %8154 = vst [vmem:[#allocation126_spill] sm:$0xff] %v4619_v10  ;;  %8155 = vst [vmem:[#allocation127_spill] sm:$0xff] %v4621_v18 }
 0x170   : > { %877 = vrot.lane.b32.xlu1 %v4614_v58, %s3686_s6  ;;  %875 = vrot.lane.b32.xlu0 %v4617_v57, %s3686_s6 }
 0x172   : > { %v4627_v42 = vpop.permute.xlu1 %765  ;;  %v4629_v50 = vpop.permute.xlu0 %763 }
 0x173   : > { %8156 = vst [vmem:[#allocation128_spill] sm:$0xff] %v4627_v42  ;;  %8157 = vst [vmem:[#allocation129_spill] sm:$0xff] %v4629_v50 }
 0x174   : > { %3218 = vrot.lane.b32.xlu1 %v8158_v61, %s3687_s18  ;;  %3213 = vrot.lane.b32.xlu0 %v8158_v61, %s3687_s18 }
 0x176   : > { %v4635_v10 = vpop.permute.xlu1 %769  ;;  %v4637_v18 = vpop.permute.xlu0 %767 }
 0x177   : > { %8159 = vst [vmem:[#allocation130_spill] sm:$0xff] %v4635_v10  ;;  %8160 = vst [vmem:[#allocation131_spill] sm:$0xff] %v4637_v18 }
 0x178   : > { %3228 = vrot.lane.b32.xlu1 %v8158_v61, %s3687_s18  ;;  %3223 = vrot.lane.b32.xlu0 %v8158_v61, %s3687_s18 }
 0x17a   : > { %v4643_v42 = vpop.permute.xlu1 %773  ;;  %v4645_v50 = vpop.permute.xlu0 %771 }
 0x17b   : > { %8161 = vst [vmem:[#allocation132_spill] sm:$0xff] %v4643_v42  ;;  %8162 = vst [vmem:[#allocation133_spill] sm:$0xff] %v4645_v50 }
 0x17c   : > { %1026 = vrot.lane.b32.xlu1 %v3951_v4, %s3687_s18  ;;  %1024 = vrot.lane.b32.xlu0 %v3941_v1, %s3687_s18 }
 0x17e   : > { %v4651_v58 = vpop.permute.xlu1 %777  ;;  %v4653_v10 = vpop.permute.xlu0 %775 }
 0x17f   : > { %8163 = vst [vmem:[#allocation134_spill] sm:$0xff] %v4651_v58  ;;  %8164 = vst [vmem:[#allocation135_spill] sm:$0xff] %v4653_v10  ;;  %v8282_v10 = vld [vmem:[#allocation107_spill] sm:$0xff] }
 0x180   : > { %1030 = vrot.lane.b32.xlu1 %v3961_v6, %s3687_s18  ;;  %1028 = vrot.lane.b32.xlu0 %v3948_v3, %s3687_s18 }
 0x182   : > { %v4659_v18 = vpop.permute.xlu1 %781  ;;  %v4661_v42 = vpop.permute.xlu0 %779 }
 0x183   : > { %8165 = vst [vmem:[#allocation136_spill] sm:$0xff] %v4659_v18  ;;  %8166 = vst [vmem:[#allocation137_spill] sm:$0xff] %v4661_v42  ;;  %v8276_v18 = vld [vmem:[#allocation100_spill] sm:$0xff] }
 0x184   : > { %1034 = vrot.lane.b32.xlu1 %v3971_v8, %s3687_s18  ;;  %1032 = vrot.lane.b32.xlu0 %v3958_v5, %s3687_s18 }
 0x186   : > { %v4667_v1 = vpop.permute.xlu1 %785  ;;  %v4669_v4 = vpop.permute.xlu0 %783 }
 0x187   : > { %8167 = vst [vmem:[#allocation138_spill] sm:$0xff] %v4667_v1  ;;  %8168 = vst [vmem:[#allocation139_spill] sm:$0xff] %v4669_v4 }
 0x188   : > { %1038 = vrot.lane.b32.xlu1 %v3978_v9, %s3687_s18  ;;  %1036 = vrot.lane.b32.xlu0 %v3968_v7, %s3687_s18 }
 0x18a   : > { %v4675_v3 = vpop.permute.xlu1 %789  ;;  %v4677_v6 = vpop.permute.xlu0 %787 }
 0x18b   : > { %8169 = vst [vmem:[#allocation140_spill] sm:$0xff] %v4675_v3  ;;  %8170 = vst [vmem:[#allocation141_spill] sm:$0xff] %v4677_v6  ;;  %v8272_v3 = vld [vmem:[#allocation97_spill] sm:$0xff]  ;;  %v8278_v6 = vld [vmem:[#allocation103_spill] sm:$0xff] }
 0x18c   : > { %1042 = vrot.lane.b32.xlu1 %v3985_v11, %s3687_s18  ;;  %1040 = vrot.lane.b32.xlu0 %v3988_v12, %s3687_s18 }
 0x18e   : > { %v4683_v5 = vpop.permute.xlu1 %793  ;;  %v4685_v8 = vpop.permute.xlu0 %791 }
 0x18f   : > { %8171 = vst [vmem:[#allocation142_spill] sm:$0xff] %v4683_v5  ;;  %8172 = vst [vmem:[#allocation143_spill] sm:$0xff] %v4685_v8 }
 0x190   : > { %1046 = vrot.lane.b32.xlu1 %v3995_v13, %s3687_s18  ;;  %1044 = vrot.lane.b32.xlu0 %v3998_v14, %s3687_s18 }
 0x192   : > { %v4691_v7 = vpop.permute.xlu1 %797  ;;  %v4693_v9 = vpop.permute.xlu0 %795 }
 0x193   : > { %8173 = vst [vmem:[#allocation144_spill] sm:$0xff] %v4691_v7  ;;  %8174 = vst [vmem:[#allocation145_spill] sm:$0xff] %v4693_v9 }
 0x194   : > { %1050 = vrot.lane.b32.xlu1 %v4005_v15, %s3687_s18  ;;  %1048 = vrot.lane.b32.xlu0 %v4008_v16, %s3687_s18 }
 0x196   : > { %v4699_v11 = vpop.permute.xlu1 %801  ;;  %v4701_v12 = vpop.permute.xlu0 %799 }
 0x197   : > { %8175 = vst [vmem:[#allocation146_spill] sm:$0xff] %v4699_v11  ;;  %8176 = vst [vmem:[#allocation147_spill] sm:$0xff] %v4701_v12 }
 0x198   : > { %1054 = vrot.lane.b32.xlu1 %v4025_v20, %s3687_s18  ;;  %1052 = vrot.lane.b32.xlu0 %v4015_v17, %s3687_s18 }
 0x19a   : > { %v4707_v13 = vpop.permute.xlu1 %805  ;;  %v4709_v14 = vpop.permute.xlu0 %803 }
 0x19b   : > { %8177 = vst [vmem:[#allocation148_spill] sm:$0xff] %v4707_v13  ;;  %8178 = vst [vmem:[#allocation149_spill] sm:$0xff] %v4709_v14  ;;  %v8265_v14 = vld [vmem:[#allocation89_spill] sm:$0xff] }
 0x19c   : > { %1058 = vrot.lane.b32.xlu1 %v4035_v22, %s3687_s18  ;;  %1056 = vrot.lane.b32.xlu0 %v4022_v19, %s3687_s18  ;;  %v8268_v13 = vld [vmem:[#allocation93_spill] sm:$0xff] }
 0x19e   : > { %v4715_v15 = vpop.permute.xlu1 %809  ;;  %v4717_v16 = vpop.permute.xlu0 %807 }
 0x19f   : > { %8179 = vst [vmem:[#allocation150_spill] sm:$0xff] %v4715_v15  ;;  %8180 = vst [vmem:[#allocation151_spill] sm:$0xff] %v4717_v16  ;;  %v8262_v16 = vld [vmem:[#allocation81_spill] sm:$0xff] }
 0x1a0   : > { %1062 = vrot.lane.b32.xlu1 %v4045_v24, %s3687_s18  ;;  %1060 = vrot.lane.b32.xlu0 %v4032_v21, %s3687_s18 }
 0x1a2   : > { %v4723_v17 = vpop.permute.xlu1 %813  ;;  %v4725_v20 = vpop.permute.xlu0 %811 }
 0x1a3   : > { %8181 = vst [vmem:[#allocation152_spill] sm:$0xff] %v4723_v17  ;;  %8182 = vst [vmem:[#allocation153_spill] sm:$0xff] %v4725_v20  ;;  %v8254_v17 = vld [vmem:[#allocation73_spill] sm:$0xff] }
 0x1a4   : > { %1066 = vrot.lane.b32.xlu1 %v4052_v25, %s3687_s18  ;;  %1064 = vrot.lane.b32.xlu0 %v4042_v23, %s3687_s18 }
 0x1a6   : > { %v4731_v19 = vpop.permute.xlu1 %817  ;;  %v4733_v22 = vpop.permute.xlu0 %815 }
 0x1a7   : > { %8183 = vst [vmem:[#allocation154_spill] sm:$0xff] %v4731_v19  ;;  %8184 = vst [vmem:[#allocation155_spill] sm:$0xff] %v4733_v22 }
 0x1a8   : > { %1070 = vrot.lane.b32.xlu1 %v4059_v27, %s3687_s18  ;;  %1068 = vrot.lane.b32.xlu0 %v4062_v28, %s3687_s18 }
 0x1aa   : > { %v4739_v21 = vpop.permute.xlu1 %821  ;;  %v4741_v24 = vpop.permute.xlu0 %819 }
 0x1ab   : > { %8185 = vst [vmem:[#allocation156_spill] sm:$0xff] %v4739_v21  ;;  %8186 = vst [vmem:[#allocation157_spill] sm:$0xff] %v4741_v24  ;;  %v8252_v21 = vld [vmem:[#allocation70_spill] sm:$0xff]  ;;  %v8258_v24 = vld [vmem:[#allocation77_spill] sm:$0xff] }
 0x1ac   : > { %1074 = vrot.lane.b32.xlu1 %v4069_v29, %s3687_s18  ;;  %1072 = vrot.lane.b32.xlu0 %v4072_v30, %s3687_s18 }
 0x1ae   : > { %v4747_v23 = vpop.permute.xlu1 %825  ;;  %v4749_v25 = vpop.permute.xlu0 %823 }
 0x1af   : > { %8187 = vst [vmem:[#allocation158_spill] sm:$0xff] %v4747_v23  ;;  %8188 = vst [vmem:[#allocation159_spill] sm:$0xff] %v4749_v25 }
 0x1b0   : > { %1078 = vrot.lane.b32.xlu1 %v4079_v31, %s3687_s18  ;;  %1076 = vrot.lane.b32.xlu0 %v4082_v32, %s3687_s18 }
 0x1b2   : > { %v4755_v27 = vpop.permute.xlu1 %829  ;;  %v4757_v28 = vpop.permute.xlu0 %827 }
 0x1b3   : > { %8189 = vst [vmem:[#allocation160_spill] sm:$0xff] %v4755_v27  ;;  %8190 = vst [vmem:[#allocation161_spill] sm:$0xff] %v4757_v28 }
 0x1b4   : > { %1082 = vrot.lane.b32.xlu1 %v4099_v36, %s3687_s18  ;;  %1080 = vrot.lane.b32.xlu0 %v4089_v33, %s3687_s18 }
 0x1b6   : > { %v4763_v29 = vpop.permute.xlu1 %833  ;;  %v4765_v30 = vpop.permute.xlu0 %831 }
 0x1b7   : > { %8191 = vst [vmem:[#allocation162_spill] sm:$0xff] %v4763_v29  ;;  %8192 = vst [vmem:[#allocation163_spill] sm:$0xff] %v4765_v30 }
 0x1b8   : > { %1086 = vrot.lane.b32.xlu1 %v4109_v38, %s3687_s18  ;;  %1084 = vrot.lane.b32.xlu0 %v4096_v35, %s3687_s18 }
 0x1ba   : > { %v4771_v31 = vpop.permute.xlu1 %837  ;;  %v4773_v32 = vpop.permute.xlu0 %835 }
 0x1bb   : > { %8193 = vst [vmem:[#allocation164_spill] sm:$0xff] %v4771_v31  ;;  %8194 = vst [vmem:[#allocation165_spill] sm:$0xff] %v4773_v32  ;;  %v8244_v32 = vld [vmem:[#allocation63_spill] sm:$0xff] }
 0x1bc   : > { %1090 = vrot.lane.b32.xlu1 %v4119_v40, %s3687_s18  ;;  %1088 = vrot.lane.b32.xlu0 %v4106_v37, %s3687_s18  ;;  %v8248_v31 = vld [vmem:[#allocation67_spill] sm:$0xff] }
 0x1be   : > { %v4779_v33 = vpop.permute.xlu1 %841  ;;  %v4781_v36 = vpop.permute.xlu0 %839 }
 0x1bf   : > { %8195 = vst [vmem:[#allocation166_spill] sm:$0xff] %v4779_v33  ;;  %8196 = vst [vmem:[#allocation167_spill] sm:$0xff] %v4781_v36  ;;  %v8241_v36 = vld [vmem:[#allocation59_spill] sm:$0xff] }
 0x1c0   : > { %1094 = vrot.lane.b32.xlu1 %v4126_v41, %s3687_s18  ;;  %1092 = vrot.lane.b32.xlu0 %v4116_v39, %s3687_s18 }
 0x1c2   : > { %v4787_v35 = vpop.permute.xlu1 %845  ;;  %v4789_v38 = vpop.permute.xlu0 %843 }
 0x1c3   : > { %8197 = vst [vmem:[#allocation168_spill] sm:$0xff] %v4787_v35  ;;  %8198 = vst [vmem:[#allocation169_spill] sm:$0xff] %v4789_v38  ;;  %v8234_v35 = vld [vmem:[#allocation47_spill] sm:$0xff] }
 0x1c4   : > { %1098 = vrot.lane.b32.xlu1 %v4133_v43, %s3687_s18  ;;  %1096 = vrot.lane.b32.xlu0 %v4136_v44, %s3687_s18 }
 0x1c6   : > { %v4795_v37 = vpop.permute.xlu1 %849  ;;  %v4797_v40 = vpop.permute.xlu0 %847 }
 0x1c7   : > { %8199 = vst [vmem:[#allocation170_spill] sm:$0xff] %v4795_v37  ;;  %8200 = vst [vmem:[#allocation171_spill] sm:$0xff] %v4797_v40 }
 0x1c8   : > { %1102 = vrot.lane.b32.xlu1 %v4143_v45, %s3687_s18  ;;  %1100 = vrot.lane.b32.xlu0 %v4146_v46, %s3687_s18 }
 0x1ca   : > { %v4803_v39 = vpop.permute.xlu1 %853  ;;  %v4805_v41 = vpop.permute.xlu0 %851 }
 0x1cb   : > { %8201 = vst [vmem:[#allocation172_spill] sm:$0xff] %v4803_v39  ;;  %8202 = vst [vmem:[#allocation173_spill] sm:$0xff] %v4805_v41  ;;  %v8230_v39 = vld [vmem:[#allocation43_spill] sm:$0xff] }
 0x1cc   : > { %1106 = vrot.lane.b32.xlu1 %v4153_v47, %s3687_s18  ;;  %1104 = vrot.lane.b32.xlu0 %v4156_v48, %s3687_s18  ;;  %v8238_v41 = vld [vmem:[#allocation51_spill] sm:$0xff] }
 0x1ce   : > { %v4811_v43 = vpop.permute.xlu1 %857  ;;  %v4813_v44 = vpop.permute.xlu0 %855 }
 0x1cf   : > { %8203 = vst [vmem:[#allocation174_spill] sm:$0xff] %v4811_v43  ;;  %8204 = vst [vmem:[#allocation175_spill] sm:$0xff] %v4813_v44 }
 0x1d0   : > { %1110 = vrot.lane.b32.xlu1 %v4173_v52, %s3687_s18  ;;  %1108 = vrot.lane.b32.xlu0 %v4163_v49, %s3687_s18 }
 0x1d2   : > { %v4819_v45 = vpop.permute.xlu1 %861  ;;  %v4821_v46 = vpop.permute.xlu0 %859 }
 0x1d3   : > { %8205 = vst [vmem:[#allocation176_spill] sm:$0xff] %v4819_v45  ;;  %8206 = vst [vmem:[#allocation177_spill] sm:$0xff] %v4821_v46 }
 0x1d4   : > { %1114 = vrot.lane.b32.xlu1 %v4183_v54, %s3687_s18  ;;  %1112 = vrot.lane.b32.xlu0 %v4170_v51, %s3687_s18 }
 0x1d6   : > { %v4827_v47 = vpop.permute.xlu1 %865  ;;  %v4829_v48 = vpop.permute.xlu0 %863 }
 0x1d7   : > { %8207 = vst [vmem:[#allocation178_spill] sm:$0xff] %v4827_v47  ;;  %8208 = vst [vmem:[#allocation179_spill] sm:$0xff] %v4829_v48 }
 0x1d8   : > { %1118 = vrot.lane.b32.xlu1 %v4193_v56, %s3687_s18  ;;  %1116 = vrot.lane.b32.xlu0 %v4180_v53, %s3687_s18 }
 0x1da   : > { %v4835_v49 = vpop.permute.xlu1 %869  ;;  %v4837_v52 = vpop.permute.xlu0 %867 }
 0x1db   : > { %8209 = vst [vmem:[#allocation180_spill] sm:$0xff] %v4835_v49  ;;  %8210 = vst [vmem:[#allocation181_spill] sm:$0xff] %v4837_v52  ;;  %v8223_v52 = vld [vmem:[#allocation37_spill] sm:$0xff]  ;;  %v8227_v49 = vld [vmem:[#allocation40_spill] sm:$0xff] }
 0x1dc   : > { %1122 = vrot.lane.b32.xlu1 %v4204_v59, %s3687_s18  ;;  %1120 = vrot.lane.b32.xlu0 %v4190_v55, %s3687_s18 }
 0x1de   : > { %v4843_v51 = vpop.permute.xlu1 %873  ;;  %v4845_v54 = vpop.permute.xlu0 %871 }
 0x1df   : > { %8211 = vst [vmem:[#allocation182_spill] sm:$0xff] %v4843_v51  ;;  %8212 = vst [vmem:[#allocation183_spill] sm:$0xff] %v4845_v54  ;;  %v8219_v54 = vld [vmem:[#allocation33_spill] sm:$0xff] }
 0x1e0   : > { %1126 = vrot.lane.b32.xlu1 %v4215_v63, %s3687_s18  ;;  %1124 = vrot.lane.b32.xlu0 %v4218_v2, %s3687_s18 }
 0x1e2   : > { %v4851_v53 = vpop.permute.xlu1 %877  ;;  %v4853_v56 = vpop.permute.xlu0 %875 }
 0x1e3   : > { %8213 = vst [vmem:[#allocation184_spill] sm:$0xff] %v4851_v53  ;;  %8214 = vst [vmem:[#allocation185_spill] sm:$0xff] %v4853_v56  ;;  %v8216_v53 = vld [vmem:[#allocation29_spill] sm:$0xff] }
 0x1e4   : > { %1130 = vrot.lane.b32.xlu1 %v4229_v26, %s3687_s18  ;;  %1128 = vrot.lane.b32.xlu0 %v4232_v34, %s3687_s18  ;;  %v8217_v26 = vld [vmem:[#allocation25_spill] sm:$0xff] }
 0x1e6   : > { %v4859_v55 = vpop.permute.xlu1 %3218  ;;  %v4861_v59 = vpop.permute.xlu0 %3213 }
 0x1e8   : > { %1134 = vrot.lane.b32.xlu1 %v4243_v60, %s3687_s18  ;;  %1132 = vrot.lane.b32.xlu0 %v4246_v0, %s3687_s18  ;;  %v8220_v60 = vld [vmem:[#allocation28_spill] sm:$0xff] }
 0x1ea   : > { %v4867_v63 = vpop.permute.xlu1 %3228  ;;  %v4869_v2 = vpop.permute.xlu0 %3223 }
 0x1eb   : > { %8215 = vst [vmem:[#allocation186_spill] sm:$0xff] %v4869_v2 }
 0x1ec   : > { %1138 = vrot.lane.b32.xlu1 %v8216_v53, %s3687_s18  ;;  %1136 = vrot.lane.b32.xlu0 %v8217_v26, %s3687_s18  ;;  %v8224_v53 = vld [vmem:[#allocation32_spill] sm:$0xff] }
 0x1ee   : > { %v4875_v34 = vpop.permute.xlu1 %1026  ;;  %v4877_v51 = vpop.permute.xlu0 %1024 }
 0x1ef   : > { %8218 = vst [vmem:[#allocation29_spill] sm:$0xff] %v4875_v34  ;;  %v8387_v34 = vld [vmem:[#allocation57_spill] sm:$0xff] }
 0x1f0   : > { %1142 = vrot.lane.b32.xlu1 %v8219_v54, %s3687_s18  ;;  %1140 = vrot.lane.b32.xlu0 %v8220_v60, %s3687_s18  ;;  %v8228_v54 = vld [vmem:[#allocation36_spill] sm:$0xff] }
 0x1f2   : > { %v4883_v0 = vpop.permute.xlu1 %1030  ;;  %v4885_v45 = vpop.permute.xlu0 %1028 }
 0x1f3   : > { %8221 = vst [vmem:[#allocation25_spill] sm:$0xff] %v4883_v0  ;;  %8222 = vst [vmem:[#allocation33_spill] sm:$0xff] %v4885_v45  ;;  %v8384_v0 = vld [vmem:[#allocation31_spill] sm:$0xff] }
 0x1f4   : > { %1146 = vrot.lane.b32.xlu1 %v8223_v52, %s3687_s18  ;;  %1144 = vrot.lane.b32.xlu0 %v8224_v53, %s3687_s18  ;;  %v8231_v52 = vld [vmem:[#allocation44_spill] sm:$0xff] }
 0x1f6   : > { %v4891_v26 = vpop.permute.xlu1 %1034  ;;  %v4893_v43 = vpop.permute.xlu0 %1032 }
 0x1f7   : > { %8225 = vst [vmem:[#allocation28_spill] sm:$0xff] %v4891_v26  ;;  %8226 = vst [vmem:[#allocation37_spill] sm:$0xff] %v4893_v43 }
 0x1f8   : > { %1150 = vrot.lane.b32.xlu1 %v8227_v49, %s3687_s18  ;;  %1148 = vrot.lane.b32.xlu0 %v8228_v54, %s3687_s18  ;;  %v8235_v49 = vld [vmem:[#allocation48_spill] sm:$0xff] }
 0x1fa   : > { %v4899_v60 = vpop.permute.xlu1 %1038  ;;  %v4901_v47 = vpop.permute.xlu0 %1036 }
 0x1fb   : > { %8229 = vst [vmem:[#allocation32_spill] sm:$0xff] %v4901_v47  ;;  %v3335_v47 = vld [vmem:[%s3926_s8 + $0x180] sm:$0xff] }
 0x1fc   : > { %1154 = vrot.lane.b32.xlu1 %v8230_v39, %s3687_s18  ;;  %1152 = vrot.lane.b32.xlu0 %v8231_v52, %s3687_s18  ;;  %v8239_v39 = vld [vmem:[#allocation52_spill] sm:$0xff] }
 0x1fe   : > { %v4907_v53 = vpop.permute.xlu1 %1042  ;;  %v4909_v44 = vpop.permute.xlu0 %1040 }
 0x1ff   : > { %8232 = vst [vmem:[#allocation40_spill] sm:$0xff] %v4907_v53  ;;  %8233 = vst [vmem:[#allocation36_spill] sm:$0xff] %v4909_v44  ;;  %v8376_v53 = vld [vmem:[#allocation18_spill] sm:$0xff] }
 0x200   : > { %1158 = vrot.lane.b32.xlu1 %v8234_v35, %s3687_s18  ;;  %1156 = vrot.lane.b32.xlu0 %v8235_v49, %s3687_s18  ;;  %v8242_v35 = vld [vmem:[#allocation55_spill] sm:$0xff] }
 0x202   : > { %v4915_v54 = vpop.permute.xlu1 %1046  ;;  %v4917_v37 = vpop.permute.xlu0 %1044 }
 0x203   : > { %8236 = vst [vmem:[#allocation43_spill] sm:$0xff] %v4915_v54  ;;  %8237 = vst [vmem:[#allocation44_spill] sm:$0xff] %v4917_v37  ;;  %v3330_v37 = vld [vmem:[%s3926_s8 + $0x160] sm:$0xff]  ;;  %v3332_v54 = vld [vmem:[%s3926_s8 + $0x170] sm:$0xff] }
 0x204   : > { %1162 = vrot.lane.b32.xlu1 %v8238_v41, %s3687_s18  ;;  %1160 = vrot.lane.b32.xlu0 %v8239_v39, %s3687_s18  ;;  %v8245_v41 = vld [vmem:[#allocation58_spill] sm:$0xff] }
 0x206   : > { %v4923_v52 = vpop.permute.xlu1 %1050  ;;  %v4925_v33 = vpop.permute.xlu0 %1048 }
 0x207   : > { %8240 = vst [vmem:[#allocation47_spill] sm:$0xff] %v4925_v33  ;;  %v5184_v33 = vld [vmem:[%s3926_s8 + $0x98] sm:$0xff] }
 0x208   : > { %1166 = vrot.lane.b32.xlu1 %v8241_v36, %s3687_s18  ;;  %1164 = vrot.lane.b32.xlu0 %v8242_v35, %s3687_s18  ;;  %v8249_v36 = vld [vmem:[#allocation62_spill] sm:$0xff]  ;;  %8329 = vst [vmem:[#allocation206_spill] sm:$0xff] %v5184_v33 }
 0x20a   : > { %v4931_v49 = vpop.permute.xlu1 %1054  ;;  %v4933_v27 = vpop.permute.xlu0 %1052 }
 0x20b   : > { %8243 = vst [vmem:[#allocation48_spill] sm:$0xff] %v4931_v49  ;;  %v5245_v49 = vld [vmem:[%s3926_s8 + $0xd8] sm:$0xff] }
 0x20c   : > { %1170 = vrot.lane.b32.xlu1 %v8244_v32, %s3687_s18  ;;  %1168 = vrot.lane.b32.xlu0 %v8245_v41, %s3687_s18  ;;  %v8253_v32 = vld [vmem:[#allocation66_spill] sm:$0xff]  ;;  %8346 = vst [vmem:[#allocation223_spill] sm:$0xff] %v5245_v49 }
 0x20e   : > { %v4939_v39 = vpop.permute.xlu1 %1058  ;;  %v4941_v23 = vpop.permute.xlu0 %1056 }
 0x20f   : > { %8246 = vst [vmem:[#allocation51_spill] sm:$0xff] %v4939_v39  ;;  %8247 = vst [vmem:[#allocation52_spill] sm:$0xff] %v4941_v23 }
 0x210   : > { %1174 = vrot.lane.b32.xlu1 %v8248_v31, %s3687_s18  ;;  %1172 = vrot.lane.b32.xlu0 %v8249_v36, %s3687_s18  ;;  %v8255_v31 = vld [vmem:[#allocation74_spill] sm:$0xff] }
 0x212   : > { %v4947_v35 = vpop.permute.xlu1 %1062  ;;  %v4949_v29 = vpop.permute.xlu0 %1060 }
 0x213   : > { %8250 = vst [vmem:[#allocation59_spill] sm:$0xff] %v4947_v35  ;;  %8251 = vst [vmem:[#allocation55_spill] sm:$0xff] %v4949_v29 }
 0x214   : > { %1178 = vrot.lane.b32.xlu1 %v8252_v21, %s3687_s18  ;;  %1176 = vrot.lane.b32.xlu0 %v8253_v32, %s3687_s18  ;;  %v8259_v21 = vld [vmem:[#allocation78_spill] sm:$0xff] }
 0x216   : > { %v4955_v41 = vpop.permute.xlu1 %1066  ;;  %v4957_v25 = vpop.permute.xlu0 %1064 }
 0x218   : > { %1182 = vrot.lane.b32.xlu1 %v8254_v17, %s3687_s18  ;;  %1180 = vrot.lane.b32.xlu0 %v8255_v31, %s3687_s18  ;;  %v8263_v17 = vld [vmem:[#allocation82_spill] sm:$0xff] }
 0x21a   : > { %v4963_v36 = vpop.permute.xlu1 %1070  ;;  %v4965_v19 = vpop.permute.xlu0 %1068 }
 0x21b   : > { %8256 = vst [vmem:[#allocation63_spill] sm:$0xff] %v4963_v36  ;;  %8257 = vst [vmem:[#allocation58_spill] sm:$0xff] %v4965_v19  ;;  %v5147_v19 = vld [vmem:[%s3926_s8 + $0x58] sm:$0xff] }
 0x21c   : > { %1186 = vrot.lane.b32.xlu1 %v8258_v24, %s3687_s18  ;;  %1184 = vrot.lane.b32.xlu0 %v8259_v21, %s3687_s18  ;;  %v8266_v24 = vld [vmem:[#allocation85_spill] sm:$0xff]  ;;  %8318 = vst [vmem:[#allocation195_spill] sm:$0xff] %v5147_v19 }
 0x21e   : > { %v4971_v32 = vpop.permute.xlu1 %1074  ;;  %v4973_v15 = vpop.permute.xlu0 %1072 }
 0x21f   : > { %8260 = vst [vmem:[#allocation67_spill] sm:$0xff] %v4971_v32  ;;  %8261 = vst [vmem:[#allocation62_spill] sm:$0xff] %v4973_v15 }
 0x220   : > { %1190 = vrot.lane.b32.xlu1 %v8262_v16, %s3687_s18  ;;  %1188 = vrot.lane.b32.xlu0 %v8263_v17, %s3687_s18  ;;  %v8269_v16 = vld [vmem:[#allocation88_spill] sm:$0xff] }
 0x222   : > { %v4979_v31 = vpop.permute.xlu1 %1078  ;;  %v4981_v7 = vpop.permute.xlu0 %1076 }
 0x223   : > { %8264 = vst [vmem:[#allocation70_spill] sm:$0xff] %v4981_v7 }
 0x224   : > { %1194 = vrot.lane.b32.xlu1 %v8265_v14, %s3687_s18  ;;  %1192 = vrot.lane.b32.xlu0 %v8266_v24, %s3687_s18  ;;  %v8273_v14 = vld [vmem:[#allocation92_spill] sm:$0xff] }
 0x226   : > { %v4987_v21 = vpop.permute.xlu1 %1082  ;;  %v4989_v5 = vpop.permute.xlu0 %1080 }
 0x227   : > { %8267 = vst [vmem:[#allocation66_spill] sm:$0xff] %v4987_v21  ;;  %v5128_v21 = vld [vmem:[%s3926_s8 + $0x50] sm:$0xff] }
 0x228   : > { %1198 = vrot.lane.b32.xlu1 %v8268_v13, %s3687_s18  ;;  %1196 = vrot.lane.b32.xlu0 %v8269_v16, %s3687_s18  ;;  %v8277_v13 = vld [vmem:[#allocation96_spill] sm:$0xff]  ;;  %8313 = vst [vmem:[#allocation190_spill] sm:$0xff] %v5128_v21 }
 0x22a   : > { %v4995_v17 = vpop.permute.xlu1 %1086  ;;  %v4997_v11 = vpop.permute.xlu0 %1084 }
 0x22b   : > { %8270 = vst [vmem:[#allocation73_spill] sm:$0xff] %v4995_v17  ;;  %8271 = vst [vmem:[#allocation74_spill] sm:$0xff] %v4997_v11 }
 0x22c   : > { %1202 = vrot.lane.b32.xlu1 %v8272_v3, %s3687_s18  ;;  %1200 = vrot.lane.b32.xlu0 %v8273_v14, %s3687_s18  ;;  %v8279_v3 = vld [vmem:[#allocation104_spill] sm:$0xff] }
 0x22e   : > { %v5003_v24 = vpop.permute.xlu1 %1090  ;;  %v5005_v8 = vpop.permute.xlu0 %1088 }
 0x22f   : > { %8274 = vst [vmem:[#allocation77_spill] sm:$0xff] %v5003_v24  ;;  %8275 = vst [vmem:[#allocation78_spill] sm:$0xff] %v5005_v8  ;;  %v8286_v24 = vld [vmem:[#allocation111_spill] sm:$0xff] }
 0x230   : > { %1206 = vrot.lane.b32.xlu1 %v8276_v18, %s3687_s18  ;;  %1204 = vrot.lane.b32.xlu0 %v8277_v13, %s3687_s18  ;;  %v8283_v18 = vld [vmem:[#allocation108_spill] sm:$0xff] }
 0x232   : > { %v5011_v16 = vpop.permute.xlu1 %1094  ;;  %v5013_v1 = vpop.permute.xlu0 %1092 }
 0x234   : > { %1210 = vrot.lane.b32.xlu1 %v8278_v6, %s3687_s18  ;;  %1208 = vrot.lane.b32.xlu0 %v8279_v3, %s3687_s18  ;;  %v8287_v6 = vld [vmem:[#allocation112_spill] sm:$0xff] }
 0x236   : > { %v5019_v14 = vpop.permute.xlu1 %1098  ;;  %v5021_v58 = vpop.permute.xlu0 %1096 }
 0x237   : > { %8280 = vst [vmem:[#allocation81_spill] sm:$0xff] %v5019_v14  ;;  %8281 = vst [vmem:[#allocation82_spill] sm:$0xff] %v5021_v58  ;;  %v8289_v58 = vld [vmem:[#allocation119_spill] sm:$0xff] }
 0x238   : > { %1214 = vrot.lane.b32.xlu1 %v8282_v10, %s3687_s18  ;;  %1212 = vrot.lane.b32.xlu0 %v8283_v18, %s3687_s18  ;;  %v8290_v10 = vld [vmem:[#allocation115_spill] sm:$0xff] }
 0x23a   : > { %v5027_v13 = vpop.permute.xlu1 %1102  ;;  %v5029_v50 = vpop.permute.xlu0 %1100 }
 0x23b   : > { %8284 = vst [vmem:[#allocation89_spill] sm:$0xff] %v5027_v13  ;;  %8285 = vst [vmem:[#allocation85_spill] sm:$0xff] %v5029_v50 }
 0x23c   : > { %1218 = vrot.lane.b32.xlu1 %v8286_v24, %s3687_s18  ;;  %1216 = vrot.lane.b32.xlu0 %v8287_v6, %s3687_s18  ;;  %v8292_v24 = vld [vmem:[#allocation118_spill] sm:$0xff] }
 0x23e   : > { %v5035_v3 = vpop.permute.xlu1 %1106  ;;  %v5037_v14 = vpop.permute.xlu0 %1104 }
 0x23f   : > { %8288 = vst [vmem:[#allocation93_spill] sm:$0xff] %v5037_v14 }
 0x240   : > { %1222 = vrot.lane.b32.xlu1 %v8289_v58, %s3687_s18  ;;  %1220 = vrot.lane.b32.xlu0 %v8290_v10, %s3687_s18  ;;  %v8295_v58 = vld [vmem:[#allocation122_spill] sm:$0xff] }
 0x242   : > { %v5043_v18 = vpop.permute.xlu1 %1110  ;;  %v5045_v50 = vpop.permute.xlu0 %1108 }
 0x243   : > { %8291 = vst [vmem:[#allocation88_spill] sm:$0xff] %v5043_v18 }
 0x244   : > { %1226 = vrot.lane.b32.xlu1 %v4603_v62, %s3687_s18  ;;  %1224 = vrot.lane.b32.xlu0 %v8292_v24, %s3687_s18  ;;  %v8298_v62 = vld [vmem:[#allocation125_spill] sm:$0xff] }
 0x246   : > { %v5051_v6 = vpop.permute.xlu1 %1114  ;;  %v5053_v14 = vpop.permute.xlu0 %1112 }
 0x247   : > { %8293 = vst [vmem:[#allocation97_spill] sm:$0xff] %v5051_v6  ;;  %8294 = vst [vmem:[#allocation92_spill] sm:$0xff] %v5053_v14  ;;  %v5072_v14 = vld [vmem:[%s3926_s8 + $0x8] sm:$0xff] }
 0x248   : > { %1230 = vrot.lane.b32.xlu1 %v4617_v57, %s3687_s18  ;;  %1228 = vrot.lane.b32.xlu0 %v8295_v58, %s3687_s18  ;;  %8299 = vst [vmem:[#allocation103_spill] sm:$0xff] %v5072_v14  ;;  %v5077_v58 = vld [vmem:[%s3926_s8] sm:$0xff] }
 0x249   : > { %8300 = vst [vmem:[#allocation104_spill] sm:$0xff] %v5077_v58 }
 0x24a   : > { %v5059_v10 = vpop.permute.xlu1 %1118  ;;  %v5061_v18 = vpop.permute.xlu0 %1116 }
 0x24b   : > { %8296 = vst [vmem:[#allocation100_spill] sm:$0xff] %v5059_v10  ;;  %8297 = vst [vmem:[#allocation96_spill] sm:$0xff] %v5061_v18  ;;  %v5086_v10 = vld [vmem:[%s3926_s8 + $0x18] sm:$0xff]  ;;  %v5091_v18 = vld [vmem:[%s3926_s8 + $0x10] sm:$0xff] }
 0x24c   : > { %3233 = vrot.lane.b32.xlu1 %v8158_v61, %s3688_s24  ;;  %1232 = vrot.lane.b32.xlu0 %v8298_v62, %s3687_s18  ;;  %8303 = vst [vmem:[#allocation111_spill] sm:$0xff] %v5086_v10  ;;  %8304 = vst [vmem:[#allocation112_spill] sm:$0xff] %v5091_v18 }
 0x24e   : > { %v5067_v24 = vpop.permute.xlu1 %1122  ;;  %v5069_v57 = vpop.permute.xlu0 %1120 }
 0x250   : > { %1358 = vrot.lane.b32.xlu1 %v5072_v14, %s3688_s24  ;;  %1356 = vrot.lane.b32.xlu0 %v5077_v58, %s3688_s24  ;;  %v1920_v14 = vsel %vm1903_vm0, 0.0, %v8384_v0  ;;  %v3341_v0 = vld [vmem:[%s3926_s8 + $0x1b0] sm:$0xff] }
 0x252   : > { %v5081_v61 = vpop.permute.xlu1 %1126  ;;  %v5083_v62 = vpop.permute.xlu0 %1124 }
 0x253   : > { %8301 = vst [vmem:[#allocation107_spill] sm:$0xff] %v5081_v61  ;;  %8302 = vst [vmem:[#allocation108_spill] sm:$0xff] %v5083_v62  ;;  %v5100_v61 = vld [vmem:[%s3926_s8 + $0x28] sm:$0xff]  ;;  %v5105_v62 = vld [vmem:[%s3926_s8 + $0x20] sm:$0xff] }
 0x254   : > { %1362 = vrot.lane.b32.xlu1 %v5086_v10, %s3688_s24  ;;  %1360 = vrot.lane.b32.xlu0 %v5091_v18, %s3688_s24  ;;  %8307 = vst [vmem:[#allocation118_spill] sm:$0xff] %v5100_v61  ;;  %8308 = vst [vmem:[#allocation122_spill] sm:$0xff] %v5105_v62  ;;  %v8386_v18 = vld [vmem:[#allocation46_spill] sm:$0xff] }
 0x256   : > { %v5095_v6 = vpop.permute.xlu1 %1130  ;;  %v5097_v13 = vpop.permute.xlu0 %1128 }
 0x257   : > { %8305 = vst [vmem:[#allocation119_spill] sm:$0xff] %v5095_v6  ;;  %8306 = vst [vmem:[#allocation115_spill] sm:$0xff] %v5097_v13  ;;  %v5114_v6 = vld [vmem:[%s3926_s8 + $0x40] sm:$0xff]  ;;  %v5119_v13 = vld [vmem:[%s3926_s8 + $0x30] sm:$0xff] }
 0x258   : > { %1366 = vrot.lane.b32.xlu1 %v5100_v61, %s3688_s24  ;;  %1364 = vrot.lane.b32.xlu0 %v5105_v62, %s3688_s24  ;;  %8310 = vst [vmem:[#allocation187_spill] sm:$0xff] %v5114_v6  ;;  %8311 = vst [vmem:[#allocation188_spill] sm:$0xff] %v5119_v13 }
 0x25a   : > { %v5109_v8 = vpop.permute.xlu1 %1134  ;;  %v5111_v11 = vpop.permute.xlu0 %1132 }
 0x25b   : > { %8309 = vst [vmem:[#allocation125_spill] sm:$0xff] %v5111_v11  ;;  %v5133_v11 = vld [vmem:[%s3926_s8 + $0x48] sm:$0xff] }
 0x25c   : > { %1370 = vrot.lane.b32.xlu1 %v5114_v6, %s3688_s24  ;;  %1368 = vrot.lane.b32.xlu0 %v5119_v13, %s3688_s24  ;;  %8314 = vst [vmem:[#allocation191_spill] sm:$0xff] %v5133_v11  ;;  %v3328_v6 = vld [vmem:[%s3926_s8 + $0x150] sm:$0xff] }
 0x25e   : > { %v5123_v17 = vpop.permute.xlu1 %1138  ;;  %v5125_v7 = vpop.permute.xlu0 %1136 }
 0x25f   : > { %8312 = vst [vmem:[#allocation189_spill] sm:$0xff] %v5123_v17  ;;  %v5142_v17 = vld [vmem:[%s3926_s8 + $0x60] sm:$0xff] }
 0x260   : > { %1374 = vrot.lane.b32.xlu1 %v5128_v21, %s3688_s24  ;;  %1372 = vrot.lane.b32.xlu0 %v5133_v11, %s3688_s24  ;;  %8317 = vst [vmem:[#allocation194_spill] sm:$0xff] %v5142_v17  ;;  %v5287_v21 = vld [vmem:[%s3926_s8 + $0x110] sm:$0xff] }
 0x261   : > { %8358 = vst [vmem:[#allocation235_spill] sm:$0xff] %v5287_v21 }
 0x262   : > { %v5137_v15 = vpop.permute.xlu1 %1142  ;;  %v5139_v32 = vpop.permute.xlu0 %1140 }
 0x263   : > { %8315 = vst [vmem:[#allocation192_spill] sm:$0xff] %v5137_v15  ;;  %8316 = vst [vmem:[#allocation193_spill] sm:$0xff] %v5139_v32  ;;  %v5156_v15 = vld [vmem:[%s3926_s8 + $0x70] sm:$0xff]  ;;  %v5161_v32 = vld [vmem:[%s3926_s8 + $0x68] sm:$0xff] }
 0x264   : > { %1378 = vrot.lane.b32.xlu1 %v5142_v17, %s3688_s24  ;;  %1376 = vrot.lane.b32.xlu0 %v5147_v19, %s3688_s24  ;;  %8321 = vst [vmem:[#allocation198_spill] sm:$0xff] %v5156_v15  ;;  %8322 = vst [vmem:[#allocation199_spill] sm:$0xff] %v5161_v32  ;;  %v5226_v17 = vld [vmem:[%s3926_s8 + $0xd0] sm:$0xff]  ;;  %v5282_v19 = vld [vmem:[%s3926_s8 + $0x118] sm:$0xff] }
 0x265   : > { %8341 = vst [vmem:[#allocation218_spill] sm:$0xff] %v5226_v17  ;;  %8357 = vst [vmem:[#allocation234_spill] sm:$0xff] %v5282_v19 }
 0x266   : > { %v5151_v36 = vpop.permute.xlu1 %1146  ;;  %v5153_v35 = vpop.permute.xlu0 %1144 }
 0x267   : > { %8319 = vst [vmem:[#allocation196_spill] sm:$0xff] %v5151_v36  ;;  %8320 = vst [vmem:[#allocation197_spill] sm:$0xff] %v5153_v35  ;;  %v5170_v36 = vld [vmem:[%s3926_s8 + $0x88] sm:$0xff]  ;;  %v5175_v35 = vld [vmem:[%s3926_s8 + $0x80] sm:$0xff] }
 0x268   : > { %1382 = vrot.lane.b32.xlu1 %v5156_v15, %s3688_s24  ;;  %1380 = vrot.lane.b32.xlu0 %v5161_v32, %s3688_s24  ;;  %8325 = vst [vmem:[#allocation202_spill] sm:$0xff] %v5170_v36  ;;  %8326 = vst [vmem:[#allocation203_spill] sm:$0xff] %v5175_v35  ;;  %v5189_v32 = vld [vmem:[%s3926_s8 + $0x90] sm:$0xff] }
 0x269   : > { %8330 = vst [vmem:[#allocation207_spill] sm:$0xff] %v5189_v32 }
 0x26a   : > { %v5165_v29 = vpop.permute.xlu1 %1150  ;;  %v5167_v23 = vpop.permute.xlu0 %1148 }
 0x26b   : > { %8323 = vst [vmem:[#allocation200_spill] sm:$0xff] %v5165_v29  ;;  %8324 = vst [vmem:[#allocation201_spill] sm:$0xff] %v5167_v23  ;;  %v3216_v23 = vunpack.i.h.bf16 %v4861_v59  ;;  %v1992_v29 = vsel %vm1903_vm0, 0.0, %v4701_v12 }
 0x26c   : > { %1386 = vrot.lane.b32.xlu1 %v5170_v36, %s3688_s24  ;;  %1384 = vrot.lane.b32.xlu0 %v5175_v35, %s3688_s24 }
 0x26e   : > { %v5179_v15 = vpop.permute.xlu1 %1154  ;;  %v5181_v39 = vpop.permute.xlu0 %1152 }
 0x26f   : > { %8327 = vst [vmem:[#allocation204_spill] sm:$0xff] %v5179_v15  ;;  %8328 = vst [vmem:[#allocation205_spill] sm:$0xff] %v5181_v39  ;;  %v5198_v15 = vld [vmem:[%s3926_s8 + $0xa8] sm:$0xff]  ;;  %v5203_v39 = vld [vmem:[%s3926_s8 + $0xa0] sm:$0xff] }
 0x270   : > { %1390 = vrot.lane.b32.xlu1 %v5184_v33, %s3688_s24  ;;  %1388 = vrot.lane.b32.xlu0 %v5189_v32, %s3688_s24  ;;  %8333 = vst [vmem:[#allocation210_spill] sm:$0xff] %v5198_v15  ;;  %8334 = vst [vmem:[#allocation211_spill] sm:$0xff] %v5203_v39 }
 0x272   : > { %v5193_v36 = vpop.permute.xlu1 %1158  ;;  %v5195_v35 = vpop.permute.xlu0 %1156 }
 0x273   : > { %8331 = vst [vmem:[#allocation208_spill] sm:$0xff] %v5193_v36  ;;  %8332 = vst [vmem:[#allocation209_spill] sm:$0xff] %v5195_v35  ;;  %v5212_v36 = vld [vmem:[%s3926_s8 + $0xc0] sm:$0xff]  ;;  %v5217_v35 = vld [vmem:[%s3926_s8 + $0xb0] sm:$0xff] }
 0x274   : > { %1394 = vrot.lane.b32.xlu1 %v5198_v15, %s3688_s24  ;;  %1392 = vrot.lane.b32.xlu0 %v5203_v39, %s3688_s24  ;;  %8337 = vst [vmem:[#allocation214_spill] sm:$0xff] %v5212_v36  ;;  %8338 = vst [vmem:[#allocation215_spill] sm:$0xff] %v5217_v35 }
 0x276   : > { %v5207_v33 = vpop.permute.xlu1 %1162  ;;  %v5209_v32 = vpop.permute.xlu0 %1160 }
 0x277   : > { %8335 = vst [vmem:[#allocation212_spill] sm:$0xff] %v5207_v33  ;;  %8336 = vst [vmem:[#allocation213_spill] sm:$0xff] %v5209_v32  ;;  %v5231_v32 = vld [vmem:[%s3926_s8 + $0xc8] sm:$0xff]  ;;  %v3215_v33 = vunpack.i.l.bf16 %v4861_v59  ;;  %v2000_v59 = vsel %vm1903_vm0, 0.0, %v4733_v22  ;;  %v2393_v22 = vsel %vm1903_vm0, 0.0, %v4821_v46 }
 0x278   : > { %1398 = vrot.lane.b32.xlu1 %v5212_v36, %s3688_s24  ;;  %1396 = vrot.lane.b32.xlu0 %v5217_v35, %s3688_s24  ;;  %8342 = vst [vmem:[#allocation219_spill] sm:$0xff] %v5231_v32 }
 0x27a   : > { %v5221_v15 = vpop.permute.xlu1 %1166  ;;  %v5223_v39 = vpop.permute.xlu0 %1164 }
 0x27b   : > { %8339 = vst [vmem:[#allocation216_spill] sm:$0xff] %v5221_v15  ;;  %8340 = vst [vmem:[#allocation217_spill] sm:$0xff] %v5223_v39  ;;  %v5240_v15 = vld [vmem:[%s3926_s8 + $0xe0] sm:$0xff] }
 0x27c   : > { %1402 = vrot.lane.b32.xlu1 %v5226_v17, %s3688_s24  ;;  %1400 = vrot.lane.b32.xlu0 %v5231_v32, %s3688_s24  ;;  %8345 = vst [vmem:[#allocation222_spill] sm:$0xff] %v5240_v15 }
 0x27e   : > { %v5235_v36 = vpop.permute.xlu1 %1170  ;;  %v5237_v35 = vpop.permute.xlu0 %1168 }
 0x27f   : > { %8343 = vst [vmem:[#allocation220_spill] sm:$0xff] %v5235_v36  ;;  %8344 = vst [vmem:[#allocation221_spill] sm:$0xff] %v5237_v35  ;;  %v5254_v36 = vld [vmem:[%s3926_s8 + $0xf0] sm:$0xff]  ;;  %v5259_v35 = vld [vmem:[%s3926_s8 + $0xe8] sm:$0xff] }
 0x280   : > { %1406 = vrot.lane.b32.xlu1 %v5240_v15, %s3688_s24  ;;  %1404 = vrot.lane.b32.xlu0 %v5245_v49, %s3688_s24  ;;  %8349 = vst [vmem:[#allocation226_spill] sm:$0xff] %v5254_v36  ;;  %8350 = vst [vmem:[#allocation227_spill] sm:$0xff] %v5259_v35 }
 0x282   : > { %v5249_v17 = vpop.permute.xlu1 %1174  ;;  %v5251_v32 = vpop.permute.xlu0 %1172 }
 0x283   : > { %8347 = vst [vmem:[#allocation224_spill] sm:$0xff] %v5249_v17  ;;  %8348 = vst [vmem:[#allocation225_spill] sm:$0xff] %v5251_v32  ;;  %v5268_v17 = vld [vmem:[%s3926_s8 + $0x108] sm:$0xff]  ;;  %v5273_v32 = vld [vmem:[%s3926_s8 + $0x100] sm:$0xff] }
 0x284   : > { %1410 = vrot.lane.b32.xlu1 %v5254_v36, %s3688_s24  ;;  %1408 = vrot.lane.b32.xlu0 %v5259_v35, %s3688_s24  ;;  %8353 = vst [vmem:[#allocation230_spill] sm:$0xff] %v5268_v17  ;;  %8354 = vst [vmem:[#allocation231_spill] sm:$0xff] %v5273_v32 }
 0x286   : > { %v5263_v15 = vpop.permute.xlu1 %1178  ;;  %v5265_v49 = vpop.permute.xlu0 %1176 }
 0x287   : > { %8351 = vst [vmem:[#allocation228_spill] sm:$0xff] %v5263_v15  ;;  %8352 = vst [vmem:[#allocation229_spill] sm:$0xff] %v5265_v49  ;;  %v8397_v49 = vld [vmem:[#allocation129_spill] sm:$0xff] }
 0x288   : > { %1414 = vrot.lane.b32.xlu1 %v5268_v17, %s3688_s24  ;;  %1412 = vrot.lane.b32.xlu0 %v5273_v32, %s3688_s24 }
 0x28a   : > { %v5277_v36 = vpop.permute.xlu1 %1182  ;;  %v5279_v35 = vpop.permute.xlu0 %1180 }
 0x28b   : > { %8355 = vst [vmem:[#allocation232_spill] sm:$0xff] %v5277_v36  ;;  %8356 = vst [vmem:[#allocation233_spill] sm:$0xff] %v5279_v35  ;;  %v3324_v36 = vld [vmem:[%s3926_s8 + $0x128] sm:$0xff]  ;;  %v5298_v35 = vld [vmem:[%s3926_s8 + $0x120] sm:$0xff] }
 0x28c   : > { %1418 = vrot.lane.b32.xlu1 %v5282_v19, %s3688_s24  ;;  %1416 = vrot.lane.b32.xlu0 %v5287_v21, %s3688_s24  ;;  %8361 = vst [vmem:[#allocation238_spill] sm:$0xff] %v5298_v35  ;;  %v3326_v21 = vld [vmem:[%s3926_s8 + $0x140] sm:$0xff] }
 0x28e   : > { %v5291_v17 = vpop.permute.xlu1 %1186  ;;  %v5293_v32 = vpop.permute.xlu0 %1184 }
 0x28f   : > { %8359 = vst [vmem:[#allocation236_spill] sm:$0xff] %v5291_v17  ;;  %8360 = vst [vmem:[#allocation237_spill] sm:$0xff] %v5293_v32  ;;  %v3327_v17 = vld [vmem:[%s3926_s8 + $0x130] sm:$0xff] }
 0x290   : > { %1422 = vrot.lane.b32.xlu1 %v3324_v36, %s3688_s24  ;;  %1420 = vrot.lane.b32.xlu0 %v5298_v35, %s3688_s24  ;;  %v3329_v35 = vld [vmem:[%s3926_s8 + $0x148] sm:$0xff] }
 0x292   : > { %v5302_v19 = vpop.permute.xlu1 %1190  ;;  %v5304_v11 = vpop.permute.xlu0 %1188 }
 0x293   : > { %8362 = vst [vmem:[#allocation239_spill] sm:$0xff] %v5302_v19  ;;  %8363 = vst [vmem:[#allocation240_spill] sm:$0xff] %v5304_v11 }
 0x294   : > { %1426 = vrot.lane.b32.xlu1 %v3326_v21, %s3688_s24  ;;  %1424 = vrot.lane.b32.xlu0 %v3327_v17, %s3688_s24  ;;  %v3331_v17 = vld [vmem:[%s3926_s8 + $0x158] sm:$0xff] }
 0x296   : > { %v5310_v32 = vpop.permute.xlu1 %1194  ;;  %v5312_v36 = vpop.permute.xlu0 %1192 }
 0x297   : > { %8364 = vst [vmem:[#allocation241_spill] sm:$0xff] %v5310_v32  ;;  %8365 = vst [vmem:[#allocation242_spill] sm:$0xff] %v5312_v36  ;;  %v8394_v36 = vld [vmem:[#allocation106_spill] sm:$0xff] }
 0x298   : > { %1430 = vrot.lane.b32.xlu1 %v3328_v6, %s3688_s24  ;;  %1428 = vrot.lane.b32.xlu0 %v3329_v35, %s3688_s24  ;;  %v3333_v35 = vld [vmem:[%s3926_s8 + $0x168] sm:$0xff] }
 0x29a   : > { %v5318_v11 = vpop.permute.xlu1 %1198  ;;  %v5320_v21 = vpop.permute.xlu0 %1196 }
 0x29b   : > { %8366 = vst [vmem:[#allocation243_spill] sm:$0xff] %v5318_v11  ;;  %8367 = vst [vmem:[#allocation244_spill] sm:$0xff] %v5320_v21 }
 0x29c   : > { %1434 = vrot.lane.b32.xlu1 %v3330_v37, %s3688_s24  ;;  %1432 = vrot.lane.b32.xlu0 %v3331_v17, %s3688_s24  ;;  %v3334_v37 = vld [vmem:[%s3926_s8 + $0x188] sm:$0xff] }
 0x29e   : > { %v5326_v32 = vpop.permute.xlu1 %1202  ;;  %v5328_v6 = vpop.permute.xlu0 %1200 }
 0x29f   : > { %8368 = vst [vmem:[#allocation245_spill] sm:$0xff] %v5326_v32  ;;  %8369 = vst [vmem:[#allocation246_spill] sm:$0xff] %v5328_v6  ;;  %v8374_v6 = vld [vmem:[#allocation15_spill] sm:$0xff] }
 0x2a0   : > { %1438 = vrot.lane.b32.xlu1 %v3332_v54, %s3688_s24  ;;  %1436 = vrot.lane.b32.xlu0 %v3333_v35, %s3688_s24  ;;  %v3336_v54 = vld [vmem:[%s3926_s8 + $0x198] sm:$0xff]  ;;  %v3337_v35 = vld [vmem:[%s3926_s8 + $0x190] sm:$0xff]  ;;  %v3206_v61 = vunpack.i.h.bf16 %v8374_v6  ;;  %v3205_v13 = vunpack.i.l.bf16 %v8374_v6 }
 0x2a2   : > { %v5334_v11 = vpop.permute.xlu1 %1206  ;;  %v5336_v21 = vpop.permute.xlu0 %1204  ;;  %v5365_v6 = vsel %vm1903_vm0, 0.0, %v3206_v61  ;;  %v5368_v10 = vsel %vm1903_vm0, 0.0, %v3205_v13  ;;  %v8383_v61 = vld [vmem:[#allocation20_spill] sm:$0xff] }
 0x2a3   : > { %8370 = vst [vmem:[#allocation247_spill] sm:$0xff] %v5334_v11  ;;  %8371 = vst [vmem:[#allocation248_spill] sm:$0xff] %v5336_v21  ;;  %v1912_v13 = vsel %vm1903_vm0, 0.0, %v8383_v61  ;;  %v8392_v21 = vld [vmem:[#allocation91_spill] sm:$0xff]  ;;  %v8393_v11 = vld [vmem:[#allocation102_spill] sm:$0xff] }
 0x2a4   : > { %1442 = vrot.lane.b32.xlu1 %v3334_v37, %s3688_s24  ;;  %1440 = vrot.lane.b32.xlu0 %v3335_v47, %s3688_s24  ;;  %v8375_v37 = vld [vmem:[#allocation16_spill] sm:$0xff]  ;;  %8379 = vst [vmem:[#allocation18_spill] sm:$0xff] %v5365_v6 }
 0x2a5   : > { %v3196_v44 = vunpack.i.h.bf16 %v8375_v37  ;;  %v3195_v47 = vunpack.i.l.bf16 %v8375_v37  ;;  %v8389_v6 = vld [vmem:[#allocation72_spill] sm:$0xff] }
 0x2a6   : > { %v5342_v17 = vpop.permute.xlu1 %1210  ;;  %v5344_v32 = vpop.permute.xlu0 %1208 }
 0x2a7   : > { %8372 = vst [vmem:[#allocation249_spill] sm:$0xff] %v5342_v17  ;;  %8373 = vst [vmem:[#allocation250_spill] sm:$0xff] %v5344_v32  ;;  %v3201_v17 = vunpack.i.h.bf16 %v8376_v53  ;;  %v3200_v32 = vunpack.i.l.bf16 %v8376_v53  ;;  %v1905_v37 = vsel %vm1903_vm0, 0.0, %v3196_v44  ;;  %v1904_v53 = vsel %vm1903_vm0, 0.0, %v3195_v47  ;;  %v8385_v44 = vld [vmem:[#allocation42_spill] sm:$0xff] }
 0x2a8   : > { %1446 = vrot.lane.b32.xlu1 %v3336_v54, %s3688_s24  ;;  %1444 = vrot.lane.b32.xlu0 %v3337_v35, %s3688_s24  ;;  %v3338_v54 = vld [vmem:[%s3926_s8 + $0x1a8] sm:$0xff]  ;;  %v3339_v35 = vld [vmem:[%s3926_s8 + $0x1a0] sm:$0xff]  ;;  %v2297_v47 = vsel %vm1903_vm0, 0.0, %v8385_v44 }
 0x2a9   : > { %v1907_v62 = vsel %vm1903_vm0, 0.0, %v3201_v17  ;;  %v2305_v17 = vsel %vm1903_vm0, 0.0, %v8387_v34  ;;  %v8391_v44 = vld [vmem:[#allocation87_spill] sm:$0xff]  ;;  %v1952_v34 = vsel %vm1903_vm0, 0.0, %v8392_v21 }
 0x2aa   : > { %v5356_v43 = vpop.permute.xlu1 %1214  ;;  %v5358_v26 = vpop.permute.xlu0 %1212 }
 0x2ab   : > { %8377 = vst [vmem:[#allocation15_spill] sm:$0xff] %v5356_v43  ;;  %8378 = vst [vmem:[#allocation16_spill] sm:$0xff] %v5358_v26  ;;  %v1928_v26 = vsel %vm1903_vm0, 0.0, %v8386_v18  ;;  %v8390_v43 = vld [vmem:[#allocation76_spill] sm:$0xff]  ;;  %v2321_v18 = vsel %vm1903_vm0, 0.0, %v8391_v44  ;;  %v2345_v44 = vsel %vm1903_vm0, 0.0, %v8397_v49  ;;  %v3221_v49 = vunpack.i.h.bf16 %v4859_v55 }
 0x2ac   : > { %1450 = vrot.lane.b32.xlu1 %v3338_v54, %s3688_s24  ;;  %1448 = vrot.lane.b32.xlu0 %v3339_v35, %s3688_s24  ;;  %v1906_v54 = vsel %vm1903_vm0, 0.0, %v3200_v32  ;;  %v8388_v32 = vld [vmem:[#allocation61_spill] sm:$0xff]  ;;  %v1944_v61 = vsel %vm1903_vm0, 0.0, %v8390_v43 }
 0x2ad   : > { %v1936_v58 = vsel %vm1903_vm0, 0.0, %v8388_v32  ;;  %v2329_v32 = vsel %vm1903_vm0, 0.0, %v8393_v11  ;;  %v8395_v43 = vld [vmem:[#allocation117_spill] sm:$0xff]  ;;  %v8400_v11 = vld [vmem:[#allocation131_spill] sm:$0xff] }
 0x2ae   : > { %v5375_v45 = vpop.permute.xlu1 %1218  ;;  %v5377_v35 = vpop.permute.xlu0 %1216  ;;  %v2337_v19 = vsel %vm1903_vm0, 0.0, %v8395_v43  ;;  %v1976_v39 = vsel %vm1903_vm0, 0.0, %v8400_v11  ;;  %v3220_v43 = vunpack.i.l.bf16 %v4859_v55  ;;  %v3343_v11 = vld [vmem:[%s3926_s8 + $0x1c8] sm:$0xff]  ;;  %v2369_v55 = vsel %vm1903_vm0, 0.0, %v4725_v20 }
 0x2af   : > { %8381 = vst [vmem:[#allocation251_spill] sm:$0xff] %v5375_v45  ;;  %8382 = vst [vmem:[#allocation252_spill] sm:$0xff] %v5377_v35  ;;  %v2313_v35 = vsel %vm1903_vm0, 0.0, %v8389_v6  ;;  %v3340_v45 = vld [vmem:[%s3926_s8 + $0x1c0] sm:$0xff]  ;;  %v1960_v6 = vsel %vm1903_vm0, 0.0, %v8394_v36  ;;  %v2353_v36 = vsel %vm1903_vm0, 0.0, %v4661_v42 }
 0x2b0   : > { %1454 = vrot.lane.b32.xlu1 %v3340_v45, %s3688_s24  ;;  %1452 = vrot.lane.b32.xlu0 %v3341_v0, %s3688_s24  ;;  %v8396_v45 = vld [vmem:[#allocation121_spill] sm:$0xff]  ;;  %v2361_v42 = vsel %vm1903_vm0, 0.0, %v4693_v9  ;;  %v2385_v9 = vsel %vm1903_vm0, 0.0, %v4789_v38  ;;  %v2401_v38 = vsel %vm1903_vm0, 0.0, %v4853_v56  ;;  %v8409_v56 = vld [vmem:[#allocation228_spill] sm:$0xff] }
 0x2b1   : > { %v1968_v0 = vsel %vm1903_vm0, 0.0, %v8396_v45  ;;  %v1984_v45 = vsel %vm1903_vm0, 0.0, %v4669_v4  ;;  %v2016_v4 = vsel %vm1903_vm0, 0.0, %v4797_v40  ;;  %v3344_v40 = vld [vmem:[%s3926_s8 + $0x1e0] sm:$0xff] }
 0x2b2   : > { %v5413_v15 = vpop.permute.xlu1 %1222  ;;  %v5415_v21 = vpop.permute.xlu0 %1220 }
 0x2b3   : > { %8398 = vst [vmem:[#allocation20_spill] sm:$0xff] %v5413_v15  ;;  %8399 = vst [vmem:[#allocation253_spill] sm:$0xff] %v5415_v21  ;;  %v3225_v15 = vunpack.i.l.bf16 %v4869_v2  ;;  %v3342_v21 = vld [vmem:[%s3926_s8 + $0x1d0] sm:$0xff]  ;;  %v2033_v2 = vsel %vm2032_vm1, %v1904_v53, %v3215_v33  ;;  %v5474_v33 = vsel %vm2032_vm1, %v1907_v62, %v3221_v49  ;;  %v5490_v49 = vsel %vm2032_vm1, %v2305_v17, %v4957_v25  ;;  %v8405_v17 = vld [vmem:[#allocation200_spill] sm:$0xff] }
 0x2b4   : > { %1458 = vrot.lane.b32.xlu1 %v3342_v21, %s3688_s24  ;;  %1456 = vrot.lane.b32.xlu0 %v3343_v11, %s3688_s24  ;;  %v2377_v21 = vsel %vm1903_vm0, 0.0, %v4757_v28  ;;  %v2008_v11 = vsel %vm1903_vm0, 0.0, %v4765_v30  ;;  %v2024_v28 = vsel %vm1903_vm0, 0.0, %v4829_v48  ;;  %v5458_v30 = vsel %vm2032_vm1, %v1906_v54, %v3220_v43  ;;  %v8408_v54 = vld [vmem:[#allocation217_spill] sm:$0xff] }
 0x2b5   : > { %v5471_v46 = vsel %vm2032_vm1, %v5368_v10, %v3225_v15  ;;  %v2041_v43 = vsel %vm2032_vm1, %v1912_v13, %v4877_v51  ;;  %v2065_v15 = vsel %vm2032_vm1, %v1936_v58, %v4955_v41  ;;  %v5494_v51 = vsel %vm2032_vm1, %v2313_v35, %v4979_v31  ;;  %v3346_v13 = vld [vmem:[%s3926_s8 + $0x1f0] sm:$0xff] }
 0x2b6   : > { %v5448_v12 = vpop.permute.xlu1 %1226  ;;  %v5450_v20 = vpop.permute.xlu0 %1224  ;;  %v5506_v58 = vsel %vm2032_vm1, %v2321_v18, %v5013_v1  ;;  %v2089_v53 = vsel %vm2032_vm1, %v1960_v6, %v5045_v50  ;;  %v2097_v35 = vsel %vm2032_vm1, %v1968_v0, %v5067_v24  ;;  %v5524_v18 = vsel %vm2032_vm1, %v2345_v44, %v5109_v8  ;;  %v8407_v0 = vld [vmem:[#allocation212_spill] sm:$0xff] }
 0x2b7   : > { %8401 = vst [vmem:[#allocation254_spill] sm:$0xff] %v5448_v12  ;;  %8402 = vst [vmem:[#allocation255_spill] sm:$0xff] %v5450_v20  ;;  %v3345_v12 = vld [vmem:[%s3926_s8 + $0x1d8] sm:$0xff]  ;;  %v5467_v20 = vsel %vm2032_vm1, %v1905_v37, %v3216_v23  ;;  %v2057_v23 = vsel %vm2032_vm1, %v1928_v26, %v4933_v27  ;;  %v2081_v26 = vsel %vm2032_vm1, %v1952_v34, %v5011_v16 }
 0x2b8   : > { %1462 = vrot.lane.b32.xlu1 %v3344_v40, %s3688_s24  ;;  %1460 = vrot.lane.b32.xlu0 %v3345_v12, %s3688_s24  ;;  %v2049_v40 = vsel %vm2032_vm1, %v1920_v14, %v4899_v60  ;;  %v5482_v12 = vsel %vm2032_vm1, %v2297_v47, %v4923_v52  ;;  %v2073_v14 = vsel %vm2032_vm1, %v1944_v61, %v4989_v5  ;;  %v3347_v47 = vld [vmem:[%s3926_s8 + $0x1e8] sm:$0xff]  ;;  %v8406_v61 = vld [vmem:[#allocation201_spill] sm:$0xff] }
 0x2b9   : > { %v5510_v37 = vsel %vm2032_vm1, %v2329_v32, %v5035_v3  ;;  %v5520_v34 = vsel %vm2032_vm1, %v2337_v19, %v5069_v57  ;;  %v2105_v6 = vsel %vm2032_vm1, %v1976_v39, %v5125_v7  ;;  %v2113_v32 = vsel %vm2032_vm1, %v1984_v45, %v8405_v17  ;;  %v8410_v39 = vld [vmem:[#allocation229_spill] sm:$0xff]  ;;  %v8411_v45 = vld [vmem:[#allocation239_spill] sm:$0xff] }
 0x2ba   : > { %v5498_v10 = vpop.permute.xlu1 %1230  ;;  %v5500_v62 = vpop.permute.xlu0 %1228  ;;  %v5536_v19 = vsel %vm2032_vm1, %v2353_v36, %v8406_v61  ;;  %v5540_v44 = vsel %vm2032_vm1, %v2361_v42, %v8407_v0  ;;  %v5552_v36 = vsel %vm2032_vm1, %v2377_v21, %v8411_v45  ;;  %v8413_v42 = vld [vmem:[#allocation242_spill] sm:$0xff]  ;;  %v8415_v61 = vld [vmem:[#allocation248_spill] sm:$0xff]  ;;  %v8417_v45 = vld [vmem:[#allocation251_spill] sm:$0xff] }
 0x2bb   : > { %8403 = vst [vmem:[#allocation256_spill] sm:$0xff] %v5498_v10  ;;  %8404 = vst [vmem:[#allocation257_spill] sm:$0xff] %v5500_v62  ;;  %v5548_v10 = vsel %vm2032_vm1, %v2369_v55, %v8410_v39  ;;  %v2137_v0 = vsel %vm2032_vm1, %v2008_v11, %v8413_v42  ;;  %v8416_v39 = vld [vmem:[#allocation186_spill] sm:$0xff]  ;;  %v8418_v17 = vld [vmem:[#allocation253_spill] sm:$0xff] }
 0x2bc   : > { %1466 = vrot.lane.b32.xlu1 %v3346_v13, %s3688_s24  ;;  %1464 = vrot.lane.b32.xlu0 %v3347_v47, %s3688_s24  ;;  %v2121_v13 = vsel %vm2032_vm1, %v1992_v29, %v8408_v54  ;;  %v2129_v47 = vsel %vm2032_vm1, %v2000_v59, %v8409_v56  ;;  %v8414_v29 = vld [vmem:[#allocation247_spill] sm:$0xff]  ;;  %v5564_v59 = vsel %vm2032_vm1, %v2385_v9, %v8415_v61 }
 0x2bd   : > { %v2145_v54 = vsel %vm2032_vm1, %v2016_v4, %v8414_v29  ;;  %v5572_v56 = vsel %vm2032_vm1, %v2393_v22, %v8417_v45  ;;  %v2153_v11 = vsel %vm2032_vm1, %v2024_v28, %v8418_v17  ;;  %v3348_v29 = vld [vmem:[%s3926_s8 + $0x208] sm:$0xff]  ;;  %v3349_v9 = vld [vmem:[%s3926_s8 + $0x200] sm:$0xff] }
 0x2be   : > { %v5554_v62 = vpop.permute.xlu1 %3233  ;;  %v5556_v48 = vpop.permute.xlu0 %1232 }
 0x2bf   : > { %8412 = vst [vmem:[#allocation258_spill] sm:$0xff] %v5554_v62  ;;  %v5567_v55 = vunpack.i.l.bf16 %v5554_v62  ;;  %v5578_v4 = vsel %vm2032_vm1, %v2401_v38, %v5556_v48 }
 0x2c0   : > { %1470 = vrot.lane.b32.xlu1 %v3348_v29, %s3688_s24  ;;  %1468 = vrot.lane.b32.xlu0 %v3349_v9, %s3688_s24 }
 0x2c1   : > { %v2162_v21 = vsel %vm2161_vm2, %v2033_v2, %v5567_v55  ;;  %v2170_v22 = vsel %vm2161_vm2, %v2041_v43, %v5567_v55  ;;  %v2178_v62 = vsel %vm2161_vm2, %v2049_v40, %v5567_v55  ;;  %v2186_v28 = vsel %vm2161_vm2, %v2057_v23, %v5567_v55 }
 0x2c2   : > { %v2194_v38 = vsel %vm2161_vm2, %v2065_v15, %v5567_v55  ;;  %v2202_v29 = vsel %vm2161_vm2, %v2073_v14, %v5567_v55  ;;  %v2210_v9 = vsel %vm2161_vm2, %v2081_v26, %v5567_v55  ;;  %v2218_v2 = vsel %vm2161_vm2, %v2089_v53, %v5567_v55  ;;  %2674 = vst [vmem:[%s5602_s19] sm:$0xff] %v2162_v21  ;;  %v1359_v43 = vpop.permute.xlu1 %1358  ;;  %v1357_v40 = vpop.permute.xlu0 %1356  ;;  %v3351_v21 = vld [vmem:[%s3926_s8 + $0x210] sm:$0xff] }
 0x2c3   : > { %2690 = vst [vmem:[%s5602_s19 + $0x80] sm:$0xff] %v2170_v22  ;;  %2706 = vst [vmem:[%s5602_s19 + $0x100] sm:$0xff] %v2178_v62  ;;  %v2226_v23 = vsel %vm2161_vm2, %v2097_v35, %v5567_v55  ;;  %v2234_v15 = vsel %vm2161_vm2, %v2105_v6, %v5567_v55  ;;  %v2242_v14 = vsel %vm2161_vm2, %v2113_v32, %v5567_v55  ;;  %v3350_v32 = vld [vmem:[%s3926_s8 + $0x218] sm:$0xff] }
 0x2c4   : > { %2722 = vst [vmem:[%s5602_s19 + $0x180] sm:$0xff] %v2186_v28  ;;  %v2250_v62 = vsel %vm2161_vm2, %v2121_v13, %v5567_v55  ;;  %2738 = vst [vmem:[%s5602_s19 + $0x200] sm:$0xff] %v2194_v38  ;;  %v2258_v26 = vsel %vm2161_vm2, %v2129_v47, %v5567_v55  ;;  %v2266_v53 = vsel %vm2161_vm2, %v2137_v0, %v5567_v55  ;;  %1474 = vrot.lane.b32.xlu1 %v3350_v32, %s3688_s24  ;;  %v3352_v28 = vld [vmem:[%s3926_s8 + $0x228] sm:$0xff] }
 0x2c5   : > { %2754 = vst [vmem:[%s5602_s19 + $0x280] sm:$0xff] %v2202_v29  ;;  %2770 = vst [vmem:[%s5602_s19 + $0x300] sm:$0xff] %v2210_v9  ;;  %v2274_v35 = vsel %vm2161_vm2, %v2145_v54, %v5567_v55  ;;  %v2282_v6 = vsel %vm2161_vm2, %v2153_v11, %v5567_v55  ;;  %v2553_v0 = vsel %vm2161_vm2, %v5482_v12, %v5567_v55  ;;  %1472 = vrot.lane.b32.xlu0 %v3351_v21, %s3688_s24  ;;  %v3353_v9 = vld [vmem:[%s3926_s8 + $0x220] sm:$0xff] }
 0x2c6   : > { %2786 = vst [vmem:[%s5602_s19 + $0x380] sm:$0xff] %v2218_v2  ;;  %2802 = vst [vmem:[%s5602_s19 + $0x400] sm:$0xff] %v2226_v23  ;;  %v2561_v54 = vsel %vm2161_vm2, %v5490_v49, %v5567_v55  ;;  %v2569_v13 = vsel %vm2161_vm2, %v5494_v51, %v5567_v55  ;;  %v2577_v47 = vsel %vm2161_vm2, %v5506_v58, %v5567_v55  ;;  %v1361_v11 = vpop.permute.xlu0 %1360  ;;  %v5715_v2 = vunpack.i.h.bf16 %v4867_v63  ;;  %v3355_v32 = vld [vmem:[%s3926_s8 + $0x230] sm:$0xff] }
 0x2c7   : > { %2818 = vst [vmem:[%s5602_s19 + $0x480] sm:$0xff] %v2234_v15  ;;  %2834 = vst [vmem:[%s5602_s19 + $0x500] sm:$0xff] %v2242_v14  ;;  %v2585_v12 = vsel %vm2161_vm2, %v5510_v37, %v5567_v55  ;;  %v2593_v49 = vsel %vm2161_vm2, %v5520_v34, %v5567_v55  ;;  %v2601_v51 = vsel %vm2161_vm2, %v5524_v18, %v5567_v55  ;;  %v1363_v37 = vpop.permute.xlu1 %1362  ;;  %v8423_v14 = vld [vmem:[#allocation18_spill] sm:$0xff] }
 0x2c8   : > { %2850 = vst [vmem:[%s5602_s19 + $0x580] sm:$0xff] %v2250_v62  ;;  %2866 = vst [vmem:[%s5602_s19 + $0x600] sm:$0xff] %v2258_v26  ;;  %v2609_v58 = vsel %vm2161_vm2, %v5536_v19, %v5567_v55  ;;  %v2617_v34 = vsel %vm2161_vm2, %v5540_v44, %v5567_v55  ;;  %v2625_v18 = vsel %vm2161_vm2, %v5548_v10, %v5567_v55  ;;  %1478 = vrot.lane.b32.xlu1 %v3352_v28, %s3688_s24  ;;  %v8433_v28 = vld [vmem:[#allocation33_spill] sm:$0xff] }
 0x2c9   : > { %2882 = vst [vmem:[%s5602_s19 + $0x680] sm:$0xff] %v2266_v53  ;;  %2898 = vst [vmem:[%s5602_s19 + $0x700] sm:$0xff] %v2274_v35  ;;  %v2633_v19 = vsel %vm2161_vm2, %v5552_v36, %v5567_v55  ;;  %v2641_v22 = vsel %vm2161_vm2, %v5564_v59, %v5567_v55  ;;  %v2649_v10 = vsel %vm2161_vm2, %v5572_v56, %v5567_v55  ;;  %v8419_v56 = vld [vmem:[#allocation17_spill] sm:$0xff]  ;;  %1476 = vrot.lane.b32.xlu0 %v3353_v9, %s3688_s24  ;;  %v3354_v53 = vld [vmem:[%s3926_s8 + $0x240] sm:$0xff] }
 0x2ca   : > { %2914 = vst [vmem:[%s5602_s19 + $0x780] sm:$0xff] %v2282_v6  ;;  %2689 = vst [vmem:[%s5602_s19 + $0x78] sm:$0xff] %v2553_v0  ;;  %v2657_v44 = vsel %vm2161_vm2, %v5578_v4, %v5567_v55  ;;  %v2164_v36 = vsel %vm2161_vm2, %v5458_v30, %v1359_v43  ;;  %v2163_v59 = vsel %vm2161_vm2, %v5467_v20, %v1357_v40  ;;  %v3211_v38 = vunpack.i.h.bf16 %v8419_v56  ;;  %v1365_v15 = vpop.permute.xlu0 %1364  ;;  %v8424_v35 = vld [vmem:[#allocation19_spill] sm:$0xff]  ;;  %v8425_v6 = vld [vmem:[#allocation104_spill] sm:$0xff] }
 0x2cb   : > { %2705 = vst [vmem:[%s5602_s19 + $0xf8] sm:$0xff] %v2561_v54  ;;  %2721 = vst [vmem:[%s5602_s19 + $0x178] sm:$0xff] %v2569_v13  ;;  %v8420_v4 = vunpack.i.l.bf16 %v8419_v56  ;;  %v2166_v30 = vsel %vm2161_vm2, %v5471_v46, %v1363_v37  ;;  %v2165_v20 = vsel %vm2161_vm2, %v5474_v33, %v1361_v11  ;;  %v1367_v43 = vpop.permute.xlu1 %1366  ;;  %v8421_v40 = vunpack.i.l.bf16 %v4867_v63  ;;  %v8426_v0 = vld [vmem:[#allocation29_spill] sm:$0xff]  ;;  %v8428_v37 = vld [vmem:[#allocation112_spill] sm:$0xff] }
 0x2cc   : > { %2737 = vst [vmem:[%s5602_s19 + $0x1f8] sm:$0xff] %v2577_v47  ;;  %2753 = vst [vmem:[%s5602_s19 + $0x278] sm:$0xff] %v2585_v12  ;;  %v8422_v46 = vunpack.i.h.bf16 %v8416_v39  ;;  %1482 = vrot.lane.b32.xlu1 %v3354_v53, %s3688_s24  ;;  %v1911_v63 = vsel %vm1903_vm0, 0.0, %v3211_v38  ;;  %v1913_v39 = vsel %vm1903_vm0, %v8425_v6, %v8424_v35  ;;  %v8440_v35 = vld [vmem:[#allocation28_spill] sm:$0xff] }
 0x2cd   : > { %2769 = vst [vmem:[%s5602_s19 + $0x2f8] sm:$0xff] %v2593_v49  ;;  %2785 = vst [vmem:[%s5602_s19 + $0x378] sm:$0xff] %v2601_v51  ;;  %v1910_v29 = vsel %vm1903_vm0, 0.0, %v8420_v4  ;;  %1480 = vrot.lane.b32.xlu0 %v3355_v32, %s3688_s24  ;;  %v2042_v54 = vsel %vm2032_vm1, %v1913_v39, %v8426_v0  ;;  %v2040_v47 = vsel %vm2032_vm1, %v1911_v63, %v5715_v2  ;;  %v3356_v51 = vld [vmem:[%s3926_s8 + $0x250] sm:$0xff]  ;;  %v8442_v0 = vld [vmem:[#allocation40_spill] sm:$0xff] }
 0x2ce   : > { %2801 = vst [vmem:[%s5602_s19 + $0x3f8] sm:$0xff] %v2609_v58  ;;  %2817 = vst [vmem:[%s5602_s19 + $0x478] sm:$0xff] %v2617_v34  ;;  %v2039_v23 = vsel %vm2032_vm1, %v1910_v29, %v8421_v40  ;;  %v2038_v33 = vsel %vm2032_vm1, %v8423_v14, %v8422_v46  ;;  %v1369_v21 = vpop.permute.xlu0 %1368  ;;  %v8427_v58 = vld [vmem:[#allocation21_spill] sm:$0xff]  ;;  %v8429_v34 = vld [vmem:[#allocation22_spill] sm:$0xff] }
 0x2cf   : > { %2833 = vst [vmem:[%s5602_s19 + $0x4f8] sm:$0xff] %v2625_v18  ;;  %2849 = vst [vmem:[%s5602_s19 + $0x578] sm:$0xff] %v2633_v19  ;;  %v2168_v62 = vsel %vm2161_vm2, %v2039_v23, %v1367_v43  ;;  %v2167_v26 = vsel %vm2161_vm2, %v2038_v33, %v1365_v15  ;;  %v1371_v13 = vpop.permute.xlu1 %1370  ;;  %v2169_v49 = vsel %vm2161_vm2, %v2040_v47, %v1369_v21  ;;  %v8430_v18 = vld [vmem:[#allocation103_spill] sm:$0xff]  ;;  %v8435_v23 = vld [vmem:[#allocation122_spill] sm:$0xff] }
 0x2d0   : > { %2865 = vst [vmem:[%s5602_s19 + $0x5f8] sm:$0xff] %v2641_v22  ;;  %2897 = vst [vmem:[%s5602_s19 + $0x6f8] sm:$0xff] %v2657_v44  ;;  %v2171_v12 = vsel %vm2161_vm2, %v2042_v54, %v1371_v13  ;;  %1486 = vrot.lane.b32.xlu1 %v3356_v51, %s3688_s24  ;;  %v1915_v11 = vsel %vm1903_vm0, %v8428_v37, %v8427_v58  ;;  %v1914_v19 = vsel %vm1903_vm0, %v8430_v18, %v8429_v34  ;;  %v8431_v22 = vld [vmem:[#allocation31_spill] sm:$0xff]  ;;  %v3357_v44 = vld [vmem:[%s3926_s8 + $0x248] sm:$0xff] }
 0x2d1   : > { %2881 = vst [vmem:[%s5602_s19 + $0x678] sm:$0xff] %v2649_v10  ;;  %2678 = vst [vmem:[%s5602_s19 + $0x20] sm:$0xff] %v2164_v36  ;;  %v2291_v10 = vsel %vm1903_vm0, %v8428_v37, %v8431_v22  ;;  %1484 = vrot.lane.b32.xlu0 %v3357_v44, %s3688_s24  ;;  %v8432_v36 = vld [vmem:[#allocation25_spill] sm:$0xff]  ;;  %v2043_v56 = vsel %vm2032_vm1, %v1914_v19, %v8433_v28  ;;  %v3358_v43 = vld [vmem:[%s3926_s8 + $0x260] sm:$0xff] }
 0x2d2   : > { %2676 = vst [vmem:[%s5602_s19 + $0x10] sm:$0xff] %v2163_v59  ;;  %2682 = vst [vmem:[%s5602_s19 + $0x40] sm:$0xff] %v2166_v30  ;;  %v2044_v59 = vsel %vm2032_vm1, %v1915_v11, %v8432_v36  ;;  %v2419_v38 = vsel %vm2032_vm1, %v2291_v10, %v4899_v60  ;;  %v5765_v29 = vpop.permute.xlu0 %1372  ;;  %v8434_v40 = vld [vmem:[#allocation23_spill] sm:$0xff]  ;;  %v8436_v15 = vld [vmem:[#allocation24_spill] sm:$0xff] }
 0x2d3   : > { %2680 = vst [vmem:[%s5602_s19 + $0x30] sm:$0xff] %v2165_v20  ;;  %2686 = vst [vmem:[%s5602_s19 + $0x60] sm:$0xff] %v2168_v62  ;;  %v1375_v4 = vpop.permute.xlu1 %1374  ;;  %v2172_v9 = vsel %vm2161_vm2, %v2043_v56, %v5765_v29  ;;  %v1917_v60 = vsel %vm1903_vm0, %v8435_v23, %v8434_v40  ;;  %v8437_v46 = vld [vmem:[#allocation111_spill] sm:$0xff]  ;;  %v8438_v33 = vld [vmem:[#allocation30_spill] sm:$0xff] }
 0x2d4   : > { %2684 = vst [vmem:[%s5602_s19 + $0x50] sm:$0xff] %v2167_v26  ;;  %2692 = vst [vmem:[%s5602_s19 + $0x90] sm:$0xff] %v2171_v12  ;;  %v2173_v30 = vsel %vm2161_vm2, %v2044_v59, %v1375_v4  ;;  %v2547_v20 = vsel %vm2161_vm2, %v2419_v38, %v1375_v4  ;;  %1490 = vrot.lane.b32.xlu1 %v3358_v43, %s3688_s24  ;;  %v1916_v14 = vsel %vm1903_vm0, %v8437_v46, %v8436_v15  ;;  %v8439_v26 = vld [vmem:[#allocation35_spill] sm:$0xff]  ;;  %v3359_v63 = vld [vmem:[%s3926_s8 + $0x258] sm:$0xff] }
 0x2d5   : > { %2688 = vst [vmem:[%s5602_s19 + $0x70] sm:$0xff] %v2169_v49  ;;  %2677 = vst [vmem:[%s5602_s19 + $0x18] sm:$0xff] %v2547_v20  ;;  %v2292_v62 = vsel %vm1903_vm0, %v8437_v46, %v8438_v33  ;;  %v2293_v53 = vsel %vm1903_vm0, %v8435_v23, %v8439_v26  ;;  %1488 = vrot.lane.b32.xlu0 %v3359_v63, %s3688_s24  ;;  %v2046_v6 = vsel %vm2032_vm1, %v1917_v60, %v8440_v35  ;;  %v8441_v39 = vld [vmem:[#allocation37_spill] sm:$0xff]  ;;  %v8443_v13 = vld [vmem:[#allocation36_spill] sm:$0xff] }
 0x2d6   : > { %2696 = vst [vmem:[%s5602_s19 + $0xb0] sm:$0xff] %v2173_v30  ;;  %2694 = vst [vmem:[%s5602_s19 + $0xa0] sm:$0xff] %v2172_v9  ;;  %v2045_v32 = vsel %vm2032_vm1, %v1916_v14, %v8441_v39  ;;  %v2421_v54 = vsel %vm2032_vm1, %v2293_v53, %v8442_v0  ;;  %v2420_v47 = vsel %vm2032_vm1, %v2292_v62, %v8443_v13  ;;  %v1377_v12 = vpop.permute.xlu0 %1376  ;;  %v3360_v11 = vld [vmem:[%s3926_s8 + $0x270] sm:$0xff]  ;;  %v8444_v34 = vld [vmem:[#allocation26_spill] sm:$0xff] }
 0x2d7   : > { %v1379_v21 = vpop.permute.xlu1 %1378  ;;  %v2174_v58 = vsel %vm2161_vm2, %v2045_v32, %v1377_v12  ;;  %v2548_v37 = vsel %vm2161_vm2, %v2420_v47, %v1377_v12  ;;  %v8445_v18 = vld [vmem:[#allocation188_spill] sm:$0xff]  ;;  %v8446_v22 = vld [vmem:[#allocation27_spill] sm:$0xff]  ;;  %v8447_v10 = vld [vmem:[#allocation118_spill] sm:$0xff] }
 0x2d8   : > { %v2175_v49 = vsel %vm2161_vm2, %v2046_v6, %v1379_v21  ;;  %v2549_v51 = vsel %vm2161_vm2, %v2421_v54, %v1379_v21  ;;  %2679 = vst [vmem:[%s5602_s19 + $0x28] sm:$0xff] %v2548_v37  ;;  %2698 = vst [vmem:[%s5602_s19 + $0xc0] sm:$0xff] %v2174_v58  ;;  %1494 = vrot.lane.b32.xlu1 %v3360_v11, %s3688_s24  ;;  %v1919_v19 = vsel %vm1903_vm0, %v8445_v18, %v8444_v34  ;;  %v8448_v36 = vld [vmem:[#allocation34_spill] sm:$0xff]  ;;  %v8449_v28 = vld [vmem:[#allocation39_spill] sm:$0xff] }
 0x2d9   : > { %2681 = vst [vmem:[%s5602_s19 + $0x38] sm:$0xff] %v2549_v51  ;;  %2700 = vst [vmem:[%s5602_s19 + $0xd0] sm:$0xff] %v2175_v49  ;;  %v1918_v44 = vsel %vm1903_vm0, %v8447_v10, %v8446_v22  ;;  %v2294_v59 = vsel %vm1903_vm0, %v8447_v10, %v8448_v36  ;;  %v2295_v56 = vsel %vm1903_vm0, %v8445_v18, %v8449_v28  ;;  %v3361_v38 = vld [vmem:[%s3926_s8 + $0x268] sm:$0xff]  ;;  %v8451_v20 = vld [vmem:[#allocation43_spill] sm:$0xff] }
 0x2da   : > { %1492 = vrot.lane.b32.xlu0 %v3361_v38, %s3688_s24  ;;  %v8450_v4 = vld [vmem:[#allocation32_spill] sm:$0xff]  ;;  %v2423_v9 = vsel %vm2032_vm1, %v2295_v56, %v8451_v20  ;;  %v2048_v60 = vsel %vm2032_vm1, %v1919_v19, %v5715_v2  ;;  %v1381_v15 = vpop.permute.xlu0 %1380  ;;  %v8453_v35 = vld [vmem:[#allocation187_spill] sm:$0xff]  ;;  %v8455_v58 = vld [vmem:[#allocation190_spill] sm:$0xff] }
 0x2db   : > { %v2047_v30 = vsel %vm2032_vm1, %v1918_v44, %v8450_v4  ;;  %v8452_v43 = vld [vmem:[#allocation44_spill] sm:$0xff]  ;;  %v1383_v23 = vpop.permute.xlu1 %1382  ;;  %v1921_v6 = vsel %vm1903_vm0, %v8453_v35, %v8438_v33  ;;  %v8454_v39 = vld [vmem:[#allocation191_spill] sm:$0xff]  ;;  %v8457_v11 = vld [vmem:[#allocation45_spill] sm:$0xff] }
 0x2dc   : > { %v2422_v40 = vsel %vm2032_vm1, %v2294_v59, %v8452_v43  ;;  %v2177_v46 = vsel %vm2161_vm2, %v2048_v60, %v1383_v23  ;;  %v2551_v14 = vsel %vm2161_vm2, %v2423_v9, %v1383_v23  ;;  %v2176_v62 = vsel %vm2161_vm2, %v2047_v30, %v1381_v15  ;;  %v3362_v63 = vld [vmem:[%s3926_s8 + $0x288] sm:$0xff]  ;;  %v3363_v54 = vld [vmem:[%s3926_s8 + $0x280] sm:$0xff]  ;;  %v8458_v18 = vld [vmem:[#allocation46_spill] sm:$0xff] }
 0x2dd   : > { %v2550_v53 = vsel %vm2161_vm2, %v2422_v40, %v1381_v15  ;;  %2685 = vst [vmem:[%s5602_s19 + $0x58] sm:$0xff] %v2551_v14  ;;  %2704 = vst [vmem:[%s5602_s19 + $0xf0] sm:$0xff] %v2177_v46  ;;  %1498 = vrot.lane.b32.xlu1 %v3362_v63, %s3688_s24  ;;  %v1922_v32 = vsel %vm1903_vm0, %v8454_v39, %v8439_v26  ;;  %v2050_v21 = vsel %vm2032_vm1, %v1921_v6, %v8443_v13  ;;  %v3364_v26 = vld [vmem:[%s3926_s8 + $0x298] sm:$0xff]  ;;  %v8456_v37 = vld [vmem:[#allocation195_spill] sm:$0xff] }
 0x2de   : > { %2683 = vst [vmem:[%s5602_s19 + $0x48] sm:$0xff] %v2550_v53  ;;  %2702 = vst [vmem:[%s5602_s19 + $0xe0] sm:$0xff] %v2176_v62  ;;  %1496 = vrot.lane.b32.xlu0 %v3363_v54, %s3688_s24  ;;  %v2051_v47 = vsel %vm2032_vm1, %v1922_v32, %v8442_v0  ;;  %v1385_v49 = vpop.permute.xlu0 %1384  ;;  %v1923_v0 = vsel %vm1903_vm0, %v8455_v58, %v8448_v36  ;;  %v1924_v13 = vsel %vm1903_vm0, %v8456_v37, %v8449_v28  ;;  %v3365_v22 = vld [vmem:[%s3926_s8 + $0x290] sm:$0xff]  ;;  %v8459_v36 = vld [vmem:[#allocation48_spill] sm:$0xff] }
 0x2df   : > { %v5852_v12 = vpop.permute.xlu1 %1386  ;;  %v2179_v51 = vsel %vm2161_vm2, %v2050_v21, %v1385_v49  ;;  %v2300_v34 = vsel %vm1903_vm0, %v8456_v37, %v8457_v11  ;;  %v2299_v19 = vsel %vm1903_vm0, %v8455_v58, %v8458_v18  ;;  %v2053_v10 = vsel %vm2032_vm1, %v1924_v13, %v8451_v20  ;;  %v8460_v40 = vld [vmem:[#allocation38_spill] sm:$0xff]  ;;  %v8463_v15 = vld [vmem:[#allocation199_spill] sm:$0xff]  ;;  %v8464_v14 = vld [vmem:[#allocation49_spill] sm:$0xff] }
 0x2e0   : > { %v2180_v33 = vsel %vm2161_vm2, %v2051_v47, %v5852_v12  ;;  %2708 = vst [vmem:[%s5602_s19 + $0x110] sm:$0xff] %v2179_v51  ;;  %v2052_v44 = vsel %vm2032_vm1, %v1923_v0, %v8452_v43  ;;  %v2428_v59 = vsel %vm2032_vm1, %v2300_v34, %v8459_v36  ;;  %v2427_v28 = vsel %vm2032_vm1, %v2299_v19, %v4933_v27  ;;  %v3366_v43 = vld [vmem:[%s3926_s8 + $0x2a8] sm:$0xff]  ;;  %v8461_v27 = vld [vmem:[#allocation194_spill] sm:$0xff]  ;;  %v3367_v35 = vld [vmem:[%s3926_s8 + $0x2a0] sm:$0xff] }
 0x2e1   : > { %2710 = vst [vmem:[%s5602_s19 + $0x120] sm:$0xff] %v2180_v33  ;;  %1502 = vrot.lane.b32.xlu1 %v3364_v26, %s3688_s24  ;;  %v1925_v23 = vsel %vm1903_vm0, %v8461_v27, %v8460_v40  ;;  %v8462_v60 = vld [vmem:[#allocation42_spill] sm:$0xff]  ;;  %v2302_v62 = vsel %vm1903_vm0, %v8463_v15, %v8464_v14  ;;  %v8466_v39 = vld [vmem:[#allocation47_spill] sm:$0xff]  ;;  %v8468_v21 = vld [vmem:[#allocation52_spill] sm:$0xff] }
 0x2e2   : > { %1500 = vrot.lane.b32.xlu0 %v3365_v22, %s3688_s24  ;;  %v1389_v38 = vpop.permute.xlu0 %1388  ;;  %v1926_v46 = vsel %vm1903_vm0, %v8463_v15, %v8462_v60  ;;  %v8465_v53 = vld [vmem:[#allocation50_spill] sm:$0xff]  ;;  %v2054_v32 = vsel %vm2032_vm1, %v1925_v23, %v8466_v39  ;;  %v8467_v54 = vld [vmem:[#allocation51_spill] sm:$0xff]  ;;  %v8469_v13 = vld [vmem:[#allocation41_spill] sm:$0xff] }
 0x2e3   : > { %v1391_v56 = vpop.permute.xlu1 %1390  ;;  %v2181_v9 = vsel %vm2161_vm2, %v2052_v44, %v1389_v38  ;;  %v2555_v20 = vsel %vm2161_vm2, %v2427_v28, %v1389_v38  ;;  %v2301_v63 = vsel %vm1903_vm0, %v8461_v27, %v8465_v53  ;;  %v2055_v6 = vsel %vm2032_vm1, %v1926_v46, %v4923_v52  ;;  %v5924_v37 = vld [vmem:[%s3926_s8 + $0x2c0] sm:$0xff]  ;;  %v8470_v34 = vld [vmem:[#allocation198_spill] sm:$0xff]  ;;  %v8476_v46 = vld [vmem:[#allocation61_spill] sm:$0xff] }
 0x2e4   : > { %v2182_v4 = vsel %vm2161_vm2, %v2053_v10, %v1391_v56  ;;  %v2556_v30 = vsel %vm2161_vm2, %v2428_v59, %v1391_v56  ;;  %2693 = vst [vmem:[%s5602_s19 + $0x98] sm:$0xff] %v2555_v20  ;;  %2712 = vst [vmem:[%s5602_s19 + $0x130] sm:$0xff] %v2181_v9  ;;  %v2430_v47 = vsel %vm2032_vm1, %v2302_v62, %v8467_v54  ;;  %v8471_v19 = vld [vmem:[#allocation203_spill] sm:$0xff]  ;;  %v8472_v10 = vld [vmem:[#allocation54_spill] sm:$0xff] }
 0x2e5   : > { %2695 = vst [vmem:[%s5602_s19 + $0xa8] sm:$0xff] %v2556_v30  ;;  %2714 = vst [vmem:[%s5602_s19 + $0x140] sm:$0xff] %v2182_v4  ;;  %1506 = vrot.lane.b32.xlu1 %v3366_v43, %s3688_s24  ;;  %v2429_v49 = vsel %vm2032_vm1, %v2301_v63, %v8468_v21  ;;  %v1927_v18 = vsel %vm1903_vm0, %v8470_v34, %v8469_v13  ;;  %v1929_v22 = vsel %vm1903_vm0, %v8471_v19, %v8457_v11  ;;  %v3369_v59 = vld [vmem:[%s3926_s8 + $0x2b0] sm:$0xff]  ;;  %v8473_v56 = vld [vmem:[#allocation55_spill] sm:$0xff] }
 0x2e6   : > { %1504 = vrot.lane.b32.xlu0 %v3367_v35, %s3688_s24  ;;  %v1393_v51 = vpop.permute.xlu0 %1392  ;;  %v2303_v44 = vsel %vm1903_vm0, %v8470_v34, %v8472_v10  ;;  %v2058_v28 = vsel %vm2032_vm1, %v1929_v22, %v8459_v36  ;;  %v2056_v30 = vsel %vm2032_vm1, %v1927_v18, %v5715_v2  ;;  %v3370_v36 = vld [vmem:[%s3926_s8 + $0x2d0] sm:$0xff]  ;;  %v8474_v27 = vld [vmem:[#allocation207_spill] sm:$0xff]  ;;  %v8475_v60 = vld [vmem:[#allocation202_spill] sm:$0xff] }
 0x2e7   : > { %v1395_v33 = vpop.permute.xlu1 %1394  ;;  %v2183_v0 = vsel %vm2161_vm2, %v2054_v32, %v1393_v51  ;;  %v2557_v52 = vsel %vm2161_vm2, %v2429_v49, %v1393_v51  ;;  %v2431_v38 = vsel %vm2032_vm1, %v2303_v44, %v8473_v56  ;;  %v1931_v23 = vsel %vm1903_vm0, %v8474_v27, %v8464_v14  ;;  %v3371_v63 = vld [vmem:[%s3926_s8 + $0x2c8] sm:$0xff]  ;;  %v8478_v51 = vld [vmem:[#allocation211_spill] sm:$0xff]  ;;  %v8481_v13 = vld [vmem:[#allocation65_spill] sm:$0xff] }
 0x2e8   : > { %v2184_v26 = vsel %vm2161_vm2, %v2055_v6, %v1395_v33  ;;  %v2558_v58 = vsel %vm2161_vm2, %v2430_v47, %v1395_v33  ;;  %2697 = vst [vmem:[%s5602_s19 + $0xb8] sm:$0xff] %v2557_v52  ;;  %2716 = vst [vmem:[%s5602_s19 + $0x150] sm:$0xff] %v2183_v0  ;;  %v1930_v15 = vsel %vm1903_vm0, %v8475_v60, %v8465_v53  ;;  %v8480_v0 = vld [vmem:[#allocation60_spill] sm:$0xff]  ;;  %v3373_v18 = vld [vmem:[%s3926_s8 + $0x2d8] sm:$0xff] }
 0x2e9   : > { %2699 = vst [vmem:[%s5602_s19 + $0xc8] sm:$0xff] %v2558_v58  ;;  %2718 = vst [vmem:[%s5602_s19 + $0x160] sm:$0xff] %v2184_v26  ;;  %1510 = vrot.lane.b32.xlu1 %v5924_v37, %s3688_s24  ;;  %v2307_v62 = vsel %vm1903_vm0, %v8474_v27, %v8476_v46  ;;  %v2060_v35 = vsel %vm2032_vm1, %v1931_v23, %v8467_v54  ;;  %v2059_v6 = vsel %vm2032_vm1, %v1930_v15, %v8468_v21  ;;  %v3372_v54 = vld [vmem:[%s3926_s8 + $0x2e0] sm:$0xff]  ;;  %v8477_v21 = vld [vmem:[#allocation53_spill] sm:$0xff] }
 0x2ea   : > { %1508 = vrot.lane.b32.xlu0 %v3369_v59, %s3688_s24  ;;  %v1397_v9 = vpop.permute.xlu0 %1396  ;;  %v2435_v14 = vsel %vm2032_vm1, %v2307_v62, %v4955_v41  ;;  %v1933_v41 = vsel %vm1903_vm0, %v8478_v51, %v8477_v21  ;;  %v8479_v26 = vld [vmem:[#allocation206_spill] sm:$0xff]  ;;  %v2309_v34 = vsel %vm1903_vm0, %v8478_v51, %v8481_v13  ;;  %v8482_v19 = vld [vmem:[#allocation59_spill] sm:$0xff]  ;;  %v8487_v60 = vld [vmem:[#allocation57_spill] sm:$0xff] }
 0x2eb   : > { %v1399_v4 = vpop.permute.xlu1 %1398  ;;  %v2185_v20 = vsel %vm2161_vm2, %v2056_v30, %v1397_v9  ;;  %v2559_v43 = vsel %vm2161_vm2, %v2431_v38, %v1397_v9  ;;  %v1932_v58 = vsel %vm1903_vm0, %v8479_v26, %v8472_v10  ;;  %v2308_v52 = vsel %vm1903_vm0, %v8479_v26, %v8480_v0  ;;  %v8483_v44 = vld [vmem:[#allocation63_spill] sm:$0xff]  ;;  %v8488_v15 = vld [vmem:[#allocation210_spill] sm:$0xff]  ;;  %v8489_v62 = vld [vmem:[#allocation64_spill] sm:$0xff] }
 0x2ec   : > { %v2187_v11 = vsel %vm2161_vm2, %v2058_v28, %v1399_v4  ;;  %2701 = vst [vmem:[%s5602_s19 + $0xd8] sm:$0xff] %v2559_v43  ;;  %2720 = vst [vmem:[%s5602_s19 + $0x170] sm:$0xff] %v2185_v20  ;;  %v2062_v22 = vsel %vm2032_vm1, %v1933_v41, %v8482_v19  ;;  %v2061_v10 = vsel %vm2032_vm1, %v1932_v58, %v8473_v56  ;;  %v8484_v28 = vld [vmem:[#allocation58_spill] sm:$0xff]  ;;  %v3374_v56 = vld [vmem:[%s3926_s8 + $0x2f0] sm:$0xff] }
 0x2ed   : > { %2724 = vst [vmem:[%s5602_s19 + $0x190] sm:$0xff] %v2187_v11  ;;  %1514 = vrot.lane.b32.xlu1 %v3370_v36, %s3688_s24  ;;  %v2437_v59 = vsel %vm2032_vm1, %v2309_v34, %v8483_v44  ;;  %v2436_v38 = vsel %vm2032_vm1, %v2308_v52, %v8484_v28  ;;  %v8485_v36 = vld [vmem:[#allocation56_spill] sm:$0xff]  ;;  %v8486_v27 = vld [vmem:[#allocation215_spill] sm:$0xff]  ;;  %v1934_v46 = vsel %vm1903_vm0, %v8488_v15, %v8487_v60 }
 0x2ee   : > { %1512 = vrot.lane.b32.xlu0 %v3371_v63, %s3688_s24  ;;  %v5970_v47 = vpop.permute.xlu0 %1400  ;;  %v1935_v23 = vsel %vm1903_vm0, %v8486_v27, %v8485_v36  ;;  %v2310_v63 = vsel %vm1903_vm0, %v8488_v15, %v8489_v62  ;;  %v8496_v36 = vld [vmem:[#allocation223_spill] sm:$0xff]  ;;  %v8498_v60 = vld [vmem:[#allocation76_spill] sm:$0xff] }
 0x2ef   : > { %v1403_v32 = vpop.permute.xlu1 %1402  ;;  %v2188_v33 = vsel %vm2161_vm2, %v2059_v6, %v5970_v47  ;;  %v2064_v41 = vsel %vm2032_vm1, %v1935_v23, %v5715_v2 }
 0x2f0   : > { %v2189_v53 = vsel %vm2161_vm2, %v2060_v35, %v1403_v32  ;;  %v2563_v49 = vsel %vm2161_vm2, %v2435_v14, %v1403_v32  ;;  %2726 = vst [vmem:[%s5602_s19 + $0x1a0] sm:$0xff] %v2188_v33  ;;  %v8490_v35 = vld [vmem:[#allocation69_spill] sm:$0xff]  ;;  %v3375_v14 = vld [vmem:[%s3926_s8 + $0x2e8] sm:$0xff]  ;;  %v2063_v32 = vsel %vm2032_vm1, %v1934_v46, %v4957_v25  ;;  %v8492_v33 = vld [vmem:[#allocation62_spill] sm:$0xff] }
 0x2f1   : > { %2709 = vst [vmem:[%s5602_s19 + $0x118] sm:$0xff] %v2563_v49  ;;  %2728 = vst [vmem:[%s5602_s19 + $0x1b0] sm:$0xff] %v2189_v53  ;;  %1518 = vrot.lane.b32.xlu1 %v3372_v54, %s3688_s24  ;;  %v2311_v6 = vsel %vm1903_vm0, %v8486_v27, %v8490_v35  ;;  %v8491_v53 = vld [vmem:[#allocation67_spill] sm:$0xff]  ;;  %v2438_v54 = vsel %vm2032_vm1, %v2310_v63, %v8492_v33  ;;  %v3379_v46 = vld [vmem:[%s3926_s8 + $0x310] sm:$0xff] }
 0x2f2   : > { %1516 = vrot.lane.b32.xlu0 %v3373_v18, %s3688_s24  ;;  %v1405_v30 = vpop.permute.xlu0 %1404  ;;  %v2439_v49 = vsel %vm2032_vm1, %v2311_v6, %v8491_v53  ;;  %v3376_v18 = vld [vmem:[%s3926_s8 + $0x308] sm:$0xff]  ;;  %v8497_v27 = vld [vmem:[#allocation75_spill] sm:$0xff] }
 0x2f3   : > { %v1407_v4 = vpop.permute.xlu1 %1406  ;;  %v2190_v20 = vsel %vm2161_vm2, %v2061_v10, %v1405_v30  ;;  %v2564_v43 = vsel %vm2161_vm2, %v2436_v38, %v1405_v30  ;;  %v2316_v23 = vsel %vm1903_vm0, %v8496_v36, %v8497_v27 }
 0x2f4   : > { %v2191_v9 = vsel %vm2161_vm2, %v2062_v22, %v1407_v4  ;;  %v2565_v11 = vsel %vm2161_vm2, %v2437_v59, %v1407_v4  ;;  %2711 = vst [vmem:[%s5602_s19 + $0x128] sm:$0xff] %v2564_v43  ;;  %2730 = vst [vmem:[%s5602_s19 + $0x1c0] sm:$0xff] %v2190_v20  ;;  %v8493_v22 = vld [vmem:[#allocation214_spill] sm:$0xff]  ;;  %v8494_v59 = vld [vmem:[#allocation219_spill] sm:$0xff] }
 0x2f5   : > { %2713 = vst [vmem:[%s5602_s19 + $0x138] sm:$0xff] %v2565_v11  ;;  %2732 = vst [vmem:[%s5602_s19 + $0x1d0] sm:$0xff] %v2191_v9  ;;  %1522 = vrot.lane.b32.xlu1 %v3374_v56, %s3688_s24  ;;  %v1937_v10 = vsel %vm1903_vm0, %v8493_v22, %v8480_v0  ;;  %v1938_v38 = vsel %vm1903_vm0, %v8494_v59, %v8481_v13  ;;  %v6052_v4 = vld [vmem:[%s3926_s8 + $0x300] sm:$0xff]  ;;  %v8495_v56 = vld [vmem:[#allocation218_spill] sm:$0xff] }
 0x2f6   : > { %1520 = vrot.lane.b32.xlu0 %v3375_v14, %s3688_s24  ;;  %v1409_v26 = vpop.permute.xlu0 %1408  ;;  %v2067_v30 = vsel %vm2032_vm1, %v1938_v38, %v8483_v44  ;;  %v2066_v9 = vsel %vm2032_vm1, %v1937_v10, %v8484_v28  ;;  %v3378_v43 = vld [vmem:[%s3926_s8 + $0x318] sm:$0xff]  ;;  %v1939_v44 = vsel %vm1903_vm0, %v8495_v56, %v8489_v62  ;;  %v1940_v28 = vsel %vm1903_vm0, %v8496_v36, %v8490_v35  ;;  %v8505_v10 = vld [vmem:[#allocation80_spill] sm:$0xff]  ;;  %v3381_v38 = vld [vmem:[%s3926_s8 + $0x320] sm:$0xff] }
 0x2f7   : > { %v1411_v51 = vpop.permute.xlu1 %1410  ;;  %v2192_v34 = vsel %vm2161_vm2, %v2063_v32, %v1409_v26  ;;  %v2566_v25 = vsel %vm2161_vm2, %v2438_v54, %v1409_v26  ;;  %v2315_v15 = vsel %vm1903_vm0, %v8495_v56, %v8498_v60  ;;  %v2069_v62 = vsel %vm2032_vm1, %v1940_v28, %v8491_v53  ;;  %v8499_v35 = vld [vmem:[#allocation66_spill] sm:$0xff]  ;;  %v8500_v26 = vld [vmem:[#allocation68_spill] sm:$0xff] }
 0x2f8   : > { %v2193_v58 = vsel %vm2161_vm2, %v2064_v41, %v1411_v51  ;;  %v2567_v52 = vsel %vm2161_vm2, %v2439_v49, %v1411_v51  ;;  %2715 = vst [vmem:[%s5602_s19 + $0x148] sm:$0xff] %v2566_v25  ;;  %2734 = vst [vmem:[%s5602_s19 + $0x1e0] sm:$0xff] %v2192_v34  ;;  %v2068_v63 = vsel %vm2032_vm1, %v1939_v44, %v8492_v33  ;;  %v3380_v33 = vld [vmem:[%s3926_s8 + $0x328] sm:$0xff]  ;;  %v8503_v34 = vld [vmem:[#allocation227_spill] sm:$0xff] }
 0x2f9   : > { %2717 = vst [vmem:[%s5602_s19 + $0x158] sm:$0xff] %v2567_v52  ;;  %2736 = vst [vmem:[%s5602_s19 + $0x1f0] sm:$0xff] %v2193_v58  ;;  %1526 = vrot.lane.b32.xlu1 %v3376_v18, %s3688_s24  ;;  %v2444_v6 = vsel %vm2032_vm1, %v2316_v23, %v8499_v35  ;;  %v2443_v14 = vsel %vm2032_vm1, %v2315_v15, %v4989_v5  ;;  %v8501_v5 = vld [vmem:[#allocation222_spill] sm:$0xff]  ;;  %v8502_v52 = vld [vmem:[#allocation72_spill] sm:$0xff] }
 0x2fa   : > { %1524 = vrot.lane.b32.xlu0 %v6052_v4, %s3688_s24  ;;  %v1413_v20 = vpop.permute.xlu0 %1412  ;;  %v1941_v58 = vsel %vm1903_vm0, %v8501_v5, %v8500_v26  ;;  %v1942_v25 = vsel %vm1903_vm0, %v8503_v34, %v8502_v52  ;;  %v8504_v18 = vld [vmem:[#allocation79_spill] sm:$0xff]  ;;  %v2317_v59 = vsel %vm1903_vm0, %v8501_v5, %v8505_v10 }
 0x2fb   : > { %v6060_v11 = vpop.permute.xlu1 %1414  ;;  %v2195_v13 = vsel %vm2161_vm2, %v2066_v9, %v1413_v20  ;;  %v2318_v22 = vsel %vm1903_vm0, %v8503_v34, %v8504_v18  ;;  %v8506_v9 = vld [vmem:[#allocation70_spill] sm:$0xff]  ;;  %v6132_v15 = vld [vmem:[%s3926_s8 + $0x340] sm:$0xff] }
 0x2fc   : > { %v2196_v0 = vsel %vm2161_vm2, %v2067_v30, %v6060_v11  ;;  %2740 = vst [vmem:[%s5602_s19 + $0x210] sm:$0xff] %v2195_v13  ;;  %v2071_v30 = vsel %vm2032_vm1, %v1942_v25, %v4979_v31  ;;  %v2070_v20 = vsel %vm2032_vm1, %v1941_v58, %v8506_v9  ;;  %v8514_v25 = vld [vmem:[#allocation235_spill] sm:$0xff] }
 0x2fd   : > { %2742 = vst [vmem:[%s5602_s19 + $0x220] sm:$0xff] %v2196_v0  ;;  %1530 = vrot.lane.b32.xlu1 %v3378_v43, %s3688_s24  ;;  %v8507_v0 = vld [vmem:[#allocation73_spill] sm:$0xff]  ;;  %v8508_v43 = vld [vmem:[#allocation74_spill] sm:$0xff] }
 0x2fe   : > { %1528 = vrot.lane.b32.xlu0 %v3379_v46, %s3688_s24  ;;  %v1417_v49 = vpop.permute.xlu0 %1416  ;;  %v2446_v13 = vsel %vm2032_vm1, %v2318_v22, %v8507_v0  ;;  %v2445_v56 = vsel %vm2032_vm1, %v2317_v59, %v8508_v43  ;;  %v8509_v46 = vld [vmem:[#allocation71_spill] sm:$0xff]  ;;  %v1947_v22 = vsel %vm1903_vm0, %v8514_v25, %v8504_v18  ;;  %v8515_v59 = vld [vmem:[#allocation230_spill] sm:$0xff] }
 0x2ff   : > { %v1419_v32 = vpop.permute.xlu1 %1418  ;;  %v2197_v41 = vsel %vm2161_vm2, %v2068_v63, %v1417_v49  ;;  %v2571_v53 = vsel %vm2161_vm2, %v2443_v14, %v1417_v49 }
 0x300   : > { %v2198_v54 = vsel %vm2161_vm2, %v2069_v62, %v1419_v32  ;;  %v2572_v51 = vsel %vm2161_vm2, %v2444_v6, %v1419_v32  ;;  %2725 = vst [vmem:[%s5602_s19 + $0x198] sm:$0xff] %v2571_v53  ;;  %2744 = vst [vmem:[%s5602_s19 + $0x230] sm:$0xff] %v2197_v41  ;;  %v8510_v62 = vld [vmem:[#allocation226_spill] sm:$0xff]  ;;  %v8511_v6 = vld [vmem:[#allocation231_spill] sm:$0xff] }
 0x301   : > { %2727 = vst [vmem:[%s5602_s19 + $0x1a8] sm:$0xff] %v2572_v51  ;;  %2746 = vst [vmem:[%s5602_s19 + $0x240] sm:$0xff] %v2198_v54  ;;  %1534 = vrot.lane.b32.xlu1 %v3380_v33, %s3688_s24  ;;  %v1943_v63 = vsel %vm1903_vm0, %v8510_v62, %v8509_v46  ;;  %v1945_v14 = vsel %vm1903_vm0, %v8511_v6, %v8497_v27  ;;  %v8512_v32 = vld [vmem:[#allocation84_spill] sm:$0xff]  ;;  %v3383_v54 = vld [vmem:[%s3926_s8 + $0x330] sm:$0xff] }
 0x302   : > { %1532 = vrot.lane.b32.xlu0 %v3381_v38, %s3688_s24  ;;  %v1421_v36 = vpop.permute.xlu0 %1420  ;;  %v2319_v49 = vsel %vm1903_vm0, %v8510_v62, %v8512_v32  ;;  %v2074_v51 = vsel %vm2032_vm1, %v1945_v14, %v8499_v35  ;;  %v8513_v41 = vld [vmem:[#allocation78_spill] sm:$0xff]  ;;  %v2072_v5 = vsel %vm2032_vm1, %v1943_v63, %v5715_v2  ;;  %v3384_v35 = vld [vmem:[%s3926_s8 + $0x350] sm:$0xff]  ;;  %v1946_v38 = vsel %vm1903_vm0, %v8515_v59, %v8505_v10  ;;  %v8521_v14 = vld [vmem:[#allocation95_spill] sm:$0xff] }
 0x303   : > { %v1423_v44 = vpop.permute.xlu1 %1422  ;;  %v2199_v60 = vsel %vm2161_vm2, %v2070_v20, %v1421_v36  ;;  %v2573_v31 = vsel %vm2161_vm2, %v2445_v56, %v1421_v36  ;;  %v2447_v53 = vsel %vm2032_vm1, %v2319_v49, %v8513_v41  ;;  %v2076_v56 = vsel %vm2032_vm1, %v1947_v22, %v8507_v0  ;;  %v3386_v0 = vld [vmem:[%s3926_s8 + $0x360] sm:$0xff]  ;;  %v8519_v46 = vld [vmem:[#allocation234_spill] sm:$0xff] }
 0x304   : > { %v2200_v28 = vsel %vm2161_vm2, %v2071_v30, %v1423_v44  ;;  %v2574_v23 = vsel %vm2161_vm2, %v2446_v13, %v1423_v44  ;;  %2729 = vst [vmem:[%s5602_s19 + $0x1b8] sm:$0xff] %v2573_v31  ;;  %2748 = vst [vmem:[%s5602_s19 + $0x250] sm:$0xff] %v2199_v60  ;;  %v8516_v30 = vld [vmem:[#allocation91_spill] sm:$0xff]  ;;  %v3385_v13 = vld [vmem:[%s3926_s8 + $0x348] sm:$0xff]  ;;  %v2075_v44 = vsel %vm2032_vm1, %v1946_v38, %v8508_v43 }
 0x305   : > { %2731 = vst [vmem:[%s5602_s19 + $0x1c8] sm:$0xff] %v2574_v23  ;;  %2750 = vst [vmem:[%s5602_s19 + $0x260] sm:$0xff] %v2200_v28  ;;  %1538 = vrot.lane.b32.xlu1 %v6132_v15, %s3688_s24  ;;  %v2323_v20 = vsel %vm1903_vm0, %v8514_v25, %v8516_v30  ;;  %v8517_v43 = vld [vmem:[#allocation83_spill] sm:$0xff]  ;;  %v8518_v31 = vld [vmem:[#allocation238_spill] sm:$0xff]  ;;  %v1948_v62 = vsel %vm1903_vm0, %v8519_v46, %v8512_v32 }
 0x306   : > { %1536 = vrot.lane.b32.xlu0 %v3383_v54, %s3688_s24  ;;  %v1425_v58 = vpop.permute.xlu0 %1424  ;;  %v2451_v18 = vsel %vm2032_vm1, %v2323_v20, %v5011_v16  ;;  %v1949_v16 = vsel %vm1903_vm0, %v8518_v31, %v8517_v43  ;;  %v8520_v63 = vld [vmem:[#allocation90_spill] sm:$0xff]  ;;  %v2325_v49 = vsel %vm1903_vm0, %v8518_v31, %v8521_v14  ;;  %v2077_v32 = vsel %vm2032_vm1, %v1948_v62, %v8513_v41  ;;  %v3388_v41 = vld [vmem:[%s3926_s8 + $0x370] sm:$0xff] }
 0x307   : > { %v1427_v33 = vpop.permute.xlu1 %1426  ;;  %v2201_v52 = vsel %vm2161_vm2, %v2072_v5, %v1425_v58  ;;  %v2575_v34 = vsel %vm2161_vm2, %v2447_v53, %v1425_v58  ;;  %v2324_v6 = vsel %vm1903_vm0, %v8519_v46, %v8520_v63  ;;  %v3387_v54 = vld [vmem:[%s3926_s8 + $0x358] sm:$0xff]  ;;  %v3389_v38 = vld [vmem:[%s3926_s8 + $0x130] sm:$0xff] }
 0x308   : > { %v2203_v27 = vsel %vm2161_vm2, %v2074_v51, %v1427_v33  ;;  %2733 = vst [vmem:[%s5602_s19 + $0x1d8] sm:$0xff] %v2575_v34  ;;  %2752 = vst [vmem:[%s5602_s19 + $0x270] sm:$0xff] %v2201_v52  ;;  %v8522_v51 = vld [vmem:[#allocation77_spill] sm:$0xff]  ;;  %v8524_v58 = vld [vmem:[#allocation82_spill] sm:$0xff] }
 0x309   : > { %2756 = vst [vmem:[%s5602_s19 + $0x290] sm:$0xff] %v2203_v27  ;;  %1542 = vrot.lane.b32.xlu1 %v3384_v35, %s3688_s24  ;;  %v2078_v53 = vsel %vm2032_vm1, %v1949_v16, %v8522_v51  ;;  %v8523_v33 = vld [vmem:[#allocation81_spill] sm:$0xff]  ;;  %v2452_v27 = vsel %vm2032_vm1, %v2324_v6, %v8524_v58  ;;  %v8525_v30 = vld [vmem:[#allocation86_spill] sm:$0xff] }
 0x30a   : > { %1540 = vrot.lane.b32.xlu0 %v3385_v13, %s3688_s24  ;;  %v6178_v28 = vpop.permute.xlu0 %1428  ;;  %v2453_v5 = vsel %vm2032_vm1, %v2325_v49, %v8523_v33  ;;  %v1951_v20 = vsel %vm1903_vm0, %v3389_v38, %v8525_v30  ;;  %v3390_v13 = vld [vmem:[%s3926_s8 + $0x128] sm:$0xff]  ;;  %v8529_v31 = vld [vmem:[#allocation89_spill] sm:$0xff] }
 0x30b   : > { %v1431_v36 = vpop.permute.xlu1 %1430  ;;  %v2204_v60 = vsel %vm2161_vm2, %v2075_v44, %v6178_v28  ;;  %v8530_v46 = vld [vmem:[#allocation85_spill] sm:$0xff]  ;;  %v2080_v49 = vsel %vm2032_vm1, %v1951_v20, %v5715_v2  ;;  %v3396_v20 = vld [vmem:[%s3926_s8 + $0x398] sm:$0xff] }
 0x30c   : > { %v2205_v10 = vsel %vm2161_vm2, %v2076_v56, %v1431_v36  ;;  %v2579_v23 = vsel %vm2161_vm2, %v2451_v18, %v1431_v36  ;;  %2758 = vst [vmem:[%s5602_s19 + $0x2a0] sm:$0xff] %v2204_v60  ;;  %v8526_v56 = vld [vmem:[#allocation87_spill] sm:$0xff]  ;;  %v8527_v18 = vld [vmem:[#allocation94_spill] sm:$0xff]  ;;  %v3391_v60 = vld [vmem:[%s3926_s8 + $0x368] sm:$0xff] }
 0x30d   : > { %2741 = vst [vmem:[%s5602_s19 + $0x218] sm:$0xff] %v2579_v23  ;;  %2760 = vst [vmem:[%s5602_s19 + $0x2b0] sm:$0xff] %v2205_v10  ;;  %1546 = vrot.lane.b32.xlu1 %v3386_v0, %s3688_s24  ;;  %v1950_v44 = vsel %vm1903_vm0, %v3390_v13, %v8526_v56  ;;  %v2326_v36 = vsel %vm1903_vm0, %v3390_v13, %v8527_v18  ;;  %v8528_v10 = vld [vmem:[#allocation99_spill] sm:$0xff]  ;;  %v3397_v13 = vld [vmem:[%s3926_s8 + $0x150] sm:$0xff] }
 0x30e   : > { %1544 = vrot.lane.b32.xlu0 %v3387_v54, %s3688_s24  ;;  %v1433_v34 = vpop.permute.xlu0 %1432  ;;  %v2327_v23 = vsel %vm1903_vm0, %v3389_v38, %v8528_v10  ;;  %v2079_v0 = vsel %vm2032_vm1, %v1950_v44, %v5013_v1  ;;  %v2454_v62 = vsel %vm2032_vm1, %v2326_v36, %v8530_v46  ;;  %v3398_v56 = vld [vmem:[%s3926_s8 + $0x158] sm:$0xff]  ;;  %v8531_v44 = vld [vmem:[#allocation105_spill] sm:$0xff] }
 0x30f   : > { %v1435_v52 = vpop.permute.xlu1 %1434  ;;  %v2206_v22 = vsel %vm2161_vm2, %v2077_v32, %v1433_v34  ;;  %v2580_v59 = vsel %vm2161_vm2, %v2452_v27, %v1433_v34  ;;  %v2455_v16 = vsel %vm2032_vm1, %v2327_v23, %v8529_v31  ;;  %v3392_v27 = vld [vmem:[%s3926_s8 + $0x388] sm:$0xff]  ;;  %v2332_v36 = vsel %vm1903_vm0, %v3398_v56, %v8531_v44  ;;  %v8532_v23 = vld [vmem:[#allocation106_spill] sm:$0xff] }
 0x310   : > { %v2207_v35 = vsel %vm2161_vm2, %v2078_v53, %v1435_v52  ;;  %v2581_v25 = vsel %vm2161_vm2, %v2453_v5, %v1435_v52  ;;  %2743 = vst [vmem:[%s5602_s19 + $0x228] sm:$0xff] %v2580_v59  ;;  %2762 = vst [vmem:[%s5602_s19 + $0x2c0] sm:$0xff] %v2206_v22  ;;  %v6252_v52 = vld [vmem:[%s3926_s8 + $0x140] sm:$0xff] }
 0x311   : > { %2745 = vst [vmem:[%s5602_s19 + $0x238] sm:$0xff] %v2581_v25  ;;  %2764 = vst [vmem:[%s5602_s19 + $0x2d0] sm:$0xff] %v2207_v35  ;;  %1550 = vrot.lane.b32.xlu1 %v3388_v41, %s3688_s24  ;;  %v1953_v34 = vsel %vm1903_vm0, %v6252_v52, %v8520_v63  ;;  %v3394_v35 = vld [vmem:[%s3926_s8 + $0x148] sm:$0xff] }
 0x312   : > { %1548 = vrot.lane.b32.xlu0 %v3391_v60, %s3688_s24  ;;  %v1437_v54 = vpop.permute.xlu0 %1436  ;;  %v1954_v25 = vsel %vm1903_vm0, %v3394_v35, %v8521_v14  ;;  %v6261_v22 = vld [vmem:[%s3926_s8 + $0x380] sm:$0xff]  ;;  %v2082_v41 = vsel %vm2032_vm1, %v1953_v34, %v8524_v58  ;;  %v1956_v58 = vsel %vm1903_vm0, %v3398_v56, %v8528_v10  ;;  %v2331_v60 = vsel %vm1903_vm0, %v3397_v13, %v8532_v23  ;;  %v3402_v34 = vld [vmem:[%s3926_s8 + $0x168] sm:$0xff]  ;;  %v8535_v35 = vld [vmem:[#allocation102_spill] sm:$0xff] }
 0x313   : > { %v1439_v6 = vpop.permute.xlu1 %1438  ;;  %v2208_v1 = vsel %vm2161_vm2, %v2079_v0, %v1437_v54  ;;  %v2582_v5 = vsel %vm2161_vm2, %v2454_v62, %v1437_v54  ;;  %v2083_v59 = vsel %vm2032_vm1, %v1954_v25, %v8523_v33  ;;  %v1955_v33 = vsel %vm1903_vm0, %v3397_v13, %v8527_v18  ;;  %v3399_v0 = vld [vmem:[%s3926_s8 + $0x390] sm:$0xff]  ;;  %v8540_v23 = vld [vmem:[#allocation92_spill] sm:$0xff] }
 0x314   : > { %v2209_v53 = vsel %vm2161_vm2, %v2080_v49, %v1439_v6  ;;  %v2583_v32 = vsel %vm2161_vm2, %v2455_v16, %v1439_v6  ;;  %2747 = vst [vmem:[%s5602_s19 + $0x248] sm:$0xff] %v2582_v5  ;;  %2766 = vst [vmem:[%s5602_s19 + $0x2e0] sm:$0xff] %v2208_v1  ;;  %v2085_v18 = vsel %vm2032_vm1, %v1956_v58, %v8529_v31  ;;  %v8533_v16 = vld [vmem:[#allocation88_spill] sm:$0xff]  ;;  %v8534_v5 = vld [vmem:[#allocation98_spill] sm:$0xff] }
 0x315   : > { %2749 = vst [vmem:[%s5602_s19 + $0x258] sm:$0xff] %v2583_v32  ;;  %2768 = vst [vmem:[%s5602_s19 + $0x2f0] sm:$0xff] %v2209_v53  ;;  %1554 = vrot.lane.b32.xlu1 %v3392_v27, %s3688_s24  ;;  %v2084_v10 = vsel %vm2032_vm1, %v1955_v33, %v8530_v46  ;;  %v2460_v62 = vsel %vm2032_vm1, %v2332_v36, %v8533_v16  ;;  %v2459_v6 = vsel %vm2032_vm1, %v2331_v60, %v5045_v50  ;;  %v3400_v46 = vld [vmem:[%s3926_s8 + $0x3a8] sm:$0xff]  ;;  %v8538_v33 = vld [vmem:[#allocation93_spill] sm:$0xff] }
 0x316   : > { %1552 = vrot.lane.b32.xlu0 %v6261_v22, %s3688_s24  ;;  %v1441_v63 = vpop.permute.xlu0 %1440  ;;  %v3401_v50 = vld [vmem:[%s3926_s8 + $0x160] sm:$0xff]  ;;  %v1958_v25 = vsel %vm1903_vm0, %v3402_v34, %v8535_v35  ;;  %v8539_v58 = vld [vmem:[#allocation97_spill] sm:$0xff]  ;;  %v8543_v35 = vld [vmem:[#allocation96_spill] sm:$0xff] }
 0x317   : > { %v6269_v38 = vpop.permute.xlu1 %1442  ;;  %v2211_v14 = vsel %vm2161_vm2, %v2082_v41, %v1441_v63  ;;  %v1957_v27 = vsel %vm1903_vm0, %v3401_v50, %v8534_v5  ;;  %v8537_v63 = vld [vmem:[#allocation110_spill] sm:$0xff]  ;;  %v2087_v13 = vsel %vm2032_vm1, %v1958_v25, %v5035_v3 }
 0x318   : > { %v2212_v30 = vsel %vm2161_vm2, %v2083_v59, %v6269_v38  ;;  %2772 = vst [vmem:[%s5602_s19 + $0x310] sm:$0xff] %v2211_v14  ;;  %v8536_v59 = vld [vmem:[#allocation109_spill] sm:$0xff]  ;;  %v3403_v14 = vld [vmem:[%s3926_s8 + $0x3a0] sm:$0xff]  ;;  %v2086_v56 = vsel %vm2032_vm1, %v1957_v27, %v8538_v33  ;;  %v3491_v33 = vld [vmem:[%s3926_s8 + $0xc8] sm:$0xff] }
 0x319   : > { %2774 = vst [vmem:[%s5602_s19 + $0x320] sm:$0xff] %v2212_v30  ;;  %1558 = vrot.lane.b32.xlu1 %v3396_v20, %s3688_s24  ;;  %v2334_v41 = vsel %vm1903_vm0, %v3402_v34, %v8536_v59  ;;  %v2333_v30 = vsel %vm1903_vm0, %v3401_v50, %v8537_v63  ;;  %v6321_v20 = vld [vmem:[%s3926_s8 + $0x3c0] sm:$0xff]  ;;  %v3406_v50 = vld [vmem:[%s3926_s8 + $0x3b0] sm:$0xff] }
 0x31a   : > { %1556 = vrot.lane.b32.xlu0 %v3399_v0, %s3688_s24  ;;  %v1445_v54 = vpop.permute.xlu0 %1444  ;;  %v2462_v36 = vsel %vm2032_vm1, %v2334_v41, %v8539_v58  ;;  %v2461_v60 = vsel %vm2032_vm1, %v2333_v30, %v8540_v23  ;;  %v6355_v27 = vld [vmem:[%s3926_s8 + $0x3d0] sm:$0xff] }
 0x31b   : > { %v1447_v49 = vpop.permute.xlu1 %1446  ;;  %v2213_v31 = vsel %vm2161_vm2, %v2084_v10, %v1445_v54  ;;  %v2587_v1 = vsel %vm2161_vm2, %v2459_v6, %v1445_v54  ;;  %v8541_v54 = vld [vmem:[#allocation101_spill] sm:$0xff] }
 0x31c   : > { %v2214_v53 = vsel %vm2161_vm2, %v2085_v18, %v1447_v49  ;;  %v2588_v32 = vsel %vm2161_vm2, %v2460_v62, %v1447_v49  ;;  %2757 = vst [vmem:[%s5602_s19 + $0x298] sm:$0xff] %v2587_v1  ;;  %2776 = vst [vmem:[%s5602_s19 + $0x330] sm:$0xff] %v2213_v31  ;;  %v3404_v49 = vld [vmem:[%s3926_s8 + $0x170] sm:$0xff]  ;;  %v8542_v1 = vld [vmem:[#allocation114_spill] sm:$0xff] }
 0x31d   : > { %2759 = vst [vmem:[%s5602_s19 + $0x2a8] sm:$0xff] %v2588_v32  ;;  %2778 = vst [vmem:[%s5602_s19 + $0x340] sm:$0xff] %v2214_v53  ;;  %1562 = vrot.lane.b32.xlu1 %v3400_v46, %s3688_s24  ;;  %v1959_v53 = vsel %vm1903_vm0, %v3404_v49, %v8541_v54  ;;  %v6345_v32 = vld [vmem:[%s3926_s8 + $0x180] sm:$0xff]  ;;  %v2335_v46 = vsel %vm1903_vm0, %v3404_v49, %v8542_v1 }
 0x31e   : > { %1560 = vrot.lane.b32.xlu0 %v3403_v14, %s3688_s24  ;;  %v1449_v18 = vpop.permute.xlu0 %1448  ;;  %v1961_v31 = vsel %vm1903_vm0, %v6345_v32, %v8531_v44  ;;  %v2463_v25 = vsel %vm2032_vm1, %v2335_v46, %v8543_v35  ;;  %v2088_v44 = vsel %vm2032_vm1, %v1959_v53, %v5715_v2  ;;  %v6364_v14 = vld [vmem:[%s3926_s8 + $0x3c8] sm:$0xff]  ;;  %v6396_v53 = vld [vmem:[%s3926_s8 + $0x3d8] sm:$0xff] }
 0x31f   : > { %v1451_v0 = vpop.permute.xlu1 %1450  ;;  %v2215_v3 = vsel %vm2161_vm2, %v2086_v56, %v1449_v18  ;;  %v2589_v6 = vsel %vm2161_vm2, %v2461_v60, %v1449_v18  ;;  %v2090_v34 = vsel %vm2032_vm1, %v1961_v31, %v8533_v16  ;;  %v3407_v16 = vld [vmem:[%s3926_s8 + $0x190] sm:$0xff] }
 0x320   : > { %v2216_v10 = vsel %vm2161_vm2, %v2087_v13, %v1451_v0  ;;  %v2590_v62 = vsel %vm2161_vm2, %v2462_v36, %v1451_v0  ;;  %2761 = vst [vmem:[%s5602_s19 + $0x2b8] sm:$0xff] %v2589_v6  ;;  %2780 = vst [vmem:[%s5602_s19 + $0x350] sm:$0xff] %v2215_v3  ;;  %v1963_v60 = vsel %vm1903_vm0, %v3407_v16, %v8536_v59  ;;  %v3408_v0 = vld [vmem:[%s3926_s8 + $0x188] sm:$0xff]  ;;  %v6385_v3 = vld [vmem:[%s3926_s8 + $0x3e0] sm:$0xff] }
 0x321   : > { %2763 = vst [vmem:[%s5602_s19 + $0x2c8] sm:$0xff] %v2590_v62  ;;  %2782 = vst [vmem:[%s5602_s19 + $0x360] sm:$0xff] %v2216_v10  ;;  %1566 = vrot.lane.b32.xlu1 %v6321_v20, %s3688_s24  ;;  %v1962_v18 = vsel %vm1903_vm0, %v3408_v0, %v8537_v63  ;;  %v8544_v10 = vld [vmem:[#allocation121_spill] sm:$0xff]  ;;  %v2092_v6 = vsel %vm2032_vm1, %v1963_v60, %v8539_v58  ;;  %v8549_v60 = vld [vmem:[#allocation107_spill] sm:$0xff] }
 0x322   : > { %1564 = vrot.lane.b32.xlu0 %v3406_v50, %s3688_s24  ;;  %v1453_v30 = vpop.permute.xlu0 %1452  ;;  %v2339_v62 = vsel %vm1903_vm0, %v3407_v16, %v8544_v10  ;;  %v2091_v59 = vsel %vm2032_vm1, %v1962_v18, %v8540_v23  ;;  %v8545_v58 = vld [vmem:[#allocation113_spill] sm:$0xff]  ;;  %v8550_v18 = vld [vmem:[#allocation108_spill] sm:$0xff] }
 0x323   : > { %v1455_v41 = vpop.permute.xlu1 %1454  ;;  %v2217_v56 = vsel %vm2161_vm2, %v2088_v44, %v1453_v30  ;;  %v2591_v36 = vsel %vm2161_vm2, %v2463_v25, %v1453_v30  ;;  %v2467_v49 = vsel %vm2032_vm1, %v2339_v62, %v5067_v24  ;;  %v3409_v24 = vld [vmem:[%s3926_s8 + $0x1a0] sm:$0xff]  ;;  %v8547_v30 = vld [vmem:[#allocation124_spill] sm:$0xff] }
 0x324   : > { %v2219_v13 = vsel %vm2161_vm2, %v2090_v34, %v1455_v41  ;;  %2765 = vst [vmem:[%s5602_s19 + $0x2d8] sm:$0xff] %v2591_v36  ;;  %2784 = vst [vmem:[%s5602_s19 + $0x370] sm:$0xff] %v2217_v56  ;;  %v1965_v23 = vsel %vm1903_vm0, %v3409_v24, %v8545_v58  ;;  %v3410_v34 = vld [vmem:[%s3926_s8 + $0x198] sm:$0xff]  ;;  %v8546_v41 = vld [vmem:[#allocation120_spill] sm:$0xff] }
 0x325   : > { %2788 = vst [vmem:[%s5602_s19 + $0x390] sm:$0xff] %v2219_v13  ;;  %1570 = vrot.lane.b32.xlu1 %v6355_v27, %s3688_s24  ;;  %v1964_v25 = vsel %vm1903_vm0, %v3410_v34, %v8542_v1  ;;  %v2340_v44 = vsel %vm1903_vm0, %v3410_v34, %v8546_v41  ;;  %v2341_v13 = vsel %vm1903_vm0, %v3409_v24, %v8547_v30  ;;  %v6420_v56 = vld [vmem:[%s3926_s8 + $0x3f0] sm:$0xff]  ;;  %v8548_v36 = vld [vmem:[#allocation100_spill] sm:$0xff] }
 0x326   : > { %1568 = vrot.lane.b32.xlu0 %v6364_v14, %s3688_s24  ;;  %v6393_v54 = vpop.permute.xlu0 %1456  ;;  %v2094_v16 = vsel %vm2032_vm1, %v1965_v23, %v8548_v36  ;;  %v2093_v1 = vsel %vm2032_vm1, %v1964_v25, %v8543_v35  ;;  %v2469_v0 = vsel %vm2032_vm1, %v2341_v13, %v8549_v60  ;;  %v2468_v10 = vsel %vm2032_vm1, %v2340_v44, %v8550_v18  ;;  %v3411_v35 = vld [vmem:[%s3926_s8 + $0x1b0] sm:$0xff]  ;;  %v3412_v23 = vld [vmem:[%s3926_s8 + $0x1a8] sm:$0xff]  ;;  %v8553_v44 = vld [vmem:[#allocation123_spill] sm:$0xff] }
 0x327   : > { %v1459_v63 = vpop.permute.xlu1 %1458  ;;  %v2220_v50 = vsel %vm2161_vm2, %v2091_v59, %v6393_v54  ;;  %v6431_v59 = vld [vmem:[%s3926_s8 + $0x3e8] sm:$0xff]  ;;  %v8552_v34 = vld [vmem:[#allocation117_spill] sm:$0xff]  ;;  %v2342_v13 = vsel %vm1903_vm0, %v3412_v23, %v8553_v44 }
 0x328   : > { %v2221_v31 = vsel %vm2161_vm2, %v2092_v6, %v1459_v63  ;;  %v2595_v46 = vsel %vm2161_vm2, %v2467_v49, %v1459_v63  ;;  %2790 = vst [vmem:[%s5602_s19 + $0x3a0] sm:$0xff] %v2220_v50  ;;  %v8551_v50 = vld [vmem:[#allocation116_spill] sm:$0xff]  ;;  %v1966_v25 = vsel %vm1903_vm0, %v3412_v23, %v8552_v34 }
 0x329   : > { %2773 = vst [vmem:[%s5602_s19 + $0x318] sm:$0xff] %v2595_v46  ;;  %2792 = vst [vmem:[%s5602_s19 + $0x3b0] sm:$0xff] %v2221_v31  ;;  %1574 = vrot.lane.b32.xlu1 %v6385_v3, %s3688_s24  ;;  %v1967_v24 = vsel %vm1903_vm0, %v3411_v35, %v8551_v50 }
 0x32a   : > { %1572 = vrot.lane.b32.xlu0 %v6396_v53, %s3688_s24  ;;  %v1461_v6 = vpop.permute.xlu0 %1460 }
 0x32b   : > { %v1463_v62 = vpop.permute.xlu1 %1462  ;;  %v2222_v31 = vsel %vm2161_vm2, %v2093_v1, %v1461_v6  ;;  %v2596_v46 = vsel %vm2161_vm2, %v2468_v10, %v1461_v6  ;;  %v8555_v10 = vld [vmem:[#allocation119_spill] sm:$0xff] }
 0x32c   : > { %v2223_v49 = vsel %vm2161_vm2, %v2094_v16, %v1463_v62  ;;  %v2597_v63 = vsel %vm2161_vm2, %v2469_v0, %v1463_v62  ;;  %2775 = vst [vmem:[%s5602_s19 + $0x328] sm:$0xff] %v2596_v46  ;;  %2794 = vst [vmem:[%s5602_s19 + $0x3c0] sm:$0xff] %v2222_v31  ;;  %v8554_v16 = vld [vmem:[#allocation127_spill] sm:$0xff]  ;;  %v2095_v0 = vsel %vm2032_vm1, %v1966_v25, %v5069_v57  ;;  %v3414_v25 = vld [vmem:[%s3926_s8 + $0x1c8] sm:$0xff] }
 0x32d   : > { %2777 = vst [vmem:[%s5602_s19 + $0x338] sm:$0xff] %v2597_v63  ;;  %2796 = vst [vmem:[%s5602_s19 + $0x3d0] sm:$0xff] %v2223_v49  ;;  %1578 = vrot.lane.b32.xlu1 %v6420_v56, %s3688_s24  ;;  %v2343_v1 = vsel %vm1903_vm0, %v3411_v35, %v8554_v16  ;;  %v8556_v6 = vld [vmem:[#allocation115_spill] sm:$0xff]  ;;  %v2096_v31 = vsel %vm2032_vm1, %v1967_v24, %v5715_v2 }
 0x32e   : > { %1576 = vrot.lane.b32.xlu0 %v6431_v59, %s3688_s24  ;;  %v2471_v62 = vsel %vm2032_vm1, %v2343_v1, %v8555_v10  ;;  %v2470_v49 = vsel %vm2032_vm1, %v2342_v13, %v8556_v6  ;;  %v1465_v46 = vpop.permute.xlu0 %1464  ;;  %v6474_v24 = vld [vmem:[%s3926_s8 + $0x1c0] sm:$0xff]  ;;  %v1970_v13 = vsel %vm1903_vm0, %v3414_v25, %v8547_v30  ;;  %v8557_v1 = vmov 0.0   ;;  %v3415_v30 = vld [vmem:[%s3926_s8 + $0x1d8] sm:$0xff]  ;;  %v8560_v25 = vld [vmem:[#allocation189_spill] sm:$0xff] }
 0x32f   : > { %v1467_v63 = vpop.permute.xlu1 %1466  ;;  %v2224_v23 = vsel %vm2161_vm2, %v2095_v0, %v1465_v46  ;;  %v2598_v57 = vsel %vm2161_vm2, %v2470_v49, %v1465_v46  ;;  %v1969_v34 = vsel %vm1903_vm0, %v6474_v24, %v8546_v41  ;;  %v2099_v0 = vsel %vm2032_vm1, %v1970_v13, %v8549_v60 }
 0x330   : > { %v2225_v35 = vsel %vm2161_vm2, %v2096_v31, %v1467_v63  ;;  %v2599_v50 = vsel %vm2161_vm2, %v2471_v62, %v1467_v63  ;;  %2779 = vst [vmem:[%s5602_s19 + $0x348] sm:$0xff] %v2598_v57  ;;  %2798 = vst [vmem:[%s5602_s19 + $0x3e0] sm:$0xff] %v2224_v23  ;;  %v2098_v62 = vsel %vm2032_vm1, %v1969_v34, %v8550_v18  ;;  %v8558_v18 = vld [vmem:[#allocation130_spill] sm:$0xff]  ;;  %v8559_v23 = vld [vmem:[#allocation131_spill] sm:$0xff] }
 0x331   : > { %2781 = vst [vmem:[%s5602_s19 + $0x358] sm:$0xff] %v2599_v50  ;;  %2800 = vst [vmem:[%s5602_s19 + $0x3f0] sm:$0xff] %v2225_v35  ;;  %1702 = vrot.lane.b32.xlu1 %v6321_v20, %s3686_s6  ;;  %v1972_v60 = vsel %vm1903_vm0, %v3415_v30, %v8554_v16  ;;  %v2348_v46 = vsel %vm1903_vm0, %v3415_v30, %v8558_v18  ;;  %v3416_v35 = vld [vmem:[%s3926_s8 + $0x1d0] sm:$0xff] }
 0x332   : > { %3238 = vrot.lane.b32.xlu0 %v8557_v1, %s3686_s6  ;;  %v1469_v63 = vpop.permute.xlu0 %1468  ;;  %v1971_v50 = vsel %vm1903_vm0, %v3416_v35, %v8553_v44  ;;  %v2347_v57 = vsel %vm1903_vm0, %v3416_v35, %v8559_v23  ;;  %v2101_v34 = vsel %vm2032_vm1, %v1972_v60, %v8555_v10  ;;  %v2476_v16 = vsel %vm2032_vm1, %v2348_v46, %v8560_v25  ;;  %v3417_v30 = vld [vmem:[%s3926_s8 + $0x1e8] sm:$0xff]  ;;  %v3418_v35 = vld [vmem:[%s3926_s8 + $0x1e0] sm:$0xff] }
 0x333   : > { %v6488_v49 = vpop.permute.xlu1 %1470  ;;  %v2227_v31 = vsel %vm2161_vm2, %v2098_v62, %v1469_v63  ;;  %v2475_v62 = vsel %vm2032_vm1, %v2347_v57, %v5125_v7  ;;  %v8562_v46 = vld [vmem:[#allocation132_spill] sm:$0xff]  ;;  %v8564_v57 = vld [vmem:[#allocation133_spill] sm:$0xff] }
 0x334   : > { %v2228_v41 = vsel %vm2161_vm2, %v2099_v0, %v6488_v49  ;;  %2804 = vst [vmem:[%s5602_s19 + $0x410] sm:$0xff] %v2227_v31  ;;  %v2100_v0 = vsel %vm2032_vm1, %v1971_v50, %v8556_v6  ;;  %v8561_v6 = vld [vmem:[#allocation129_spill] sm:$0xff]  ;;  %v2350_v7 = vsel %vm1903_vm0, %v3417_v30, %v8562_v46  ;;  %v8563_v50 = vld [vmem:[#allocation126_spill] sm:$0xff] }
 0x335   : > { %2806 = vst [vmem:[%s5602_s19 + $0x420] sm:$0xff] %v2228_v41  ;;  %1706 = vrot.lane.b32.xlu1 %v6355_v27, %s3686_s6  ;;  %v1974_v60 = vsel %vm1903_vm0, %v3417_v30, %v8561_v6  ;;  %v1973_v23 = vsel %vm1903_vm0, %v3418_v35, %v8563_v50 }
 0x336   : > { %1704 = vrot.lane.b32.xlu0 %v6364_v14, %s3686_s6 }
 0x337   : > { %v1475_v13 = vpop.permute.xlu1 %1474  ;;  %v1473_v41 = vpop.permute.xlu0 %1472 }
 0x338   : > { %v2230_v44 = vsel %vm2161_vm2, %v2101_v34, %v1475_v13  ;;  %v2604_v63 = vsel %vm2161_vm2, %v2476_v16, %v1475_v13  ;;  %v2229_v10 = vsel %vm2161_vm2, %v2100_v0, %v1473_v41  ;;  %v2603_v31 = vsel %vm2161_vm2, %v2475_v62, %v1473_v41  ;;  %v8565_v13 = vld [vmem:[#allocation192_spill] sm:$0xff]  ;;  %v8567_v41 = vld [vmem:[#allocation193_spill] sm:$0xff] }
 0x339   : > { %2791 = vst [vmem:[%s5602_s19 + $0x3a8] sm:$0xff] %v2604_v63  ;;  %2810 = vst [vmem:[%s5602_s19 + $0x440] sm:$0xff] %v2230_v44  ;;  %1710 = vrot.lane.b32.xlu1 %v6385_v3, %s3686_s6  ;;  %v2349_v34 = vsel %vm1903_vm0, %v3418_v35, %v8564_v57  ;;  %v2103_v16 = vsel %vm2032_vm1, %v1974_v60, %v5109_v8  ;;  %v2478_v0 = vsel %vm2032_vm1, %v2350_v7, %v8565_v13  ;;  %v8566_v44 = vld [vmem:[#allocation125_spill] sm:$0xff]  ;;  %v6556_v7 = vld [vmem:[%s3926_s8 + $0x200] sm:$0xff] }
 0x33a   : > { %2789 = vst [vmem:[%s5602_s19 + $0x398] sm:$0xff] %v2603_v31  ;;  %2808 = vst [vmem:[%s5602_s19 + $0x430] sm:$0xff] %v2229_v10  ;;  %1708 = vrot.lane.b32.xlu0 %v6396_v53, %s3686_s6  ;;  %v2102_v63 = vsel %vm2032_vm1, %v1973_v23, %v8566_v44  ;;  %v2477_v10 = vsel %vm2032_vm1, %v2349_v34, %v8567_v41  ;;  %v1977_v35 = vsel %vm1903_vm0, %v6556_v7, %v8558_v18  ;;  %v3420_v23 = vld [vmem:[%s3926_s8 + $0x1f0] sm:$0xff]  ;;  %v8568_v34 = vld [vmem:[#allocation128_spill] sm:$0xff] }
 0x33b   : > { %v1479_v62 = vpop.permute.xlu1 %1478  ;;  %v1477_v6 = vpop.permute.xlu0 %1476 }
 0x33c   : > { %v2232_v31 = vsel %vm2161_vm2, %v2103_v16, %v1479_v62  ;;  %v2606_v30 = vsel %vm2161_vm2, %v2478_v0, %v1479_v62  ;;  %v2231_v8 = vsel %vm2161_vm2, %v2102_v63, %v1477_v6  ;;  %v2605_v60 = vsel %vm2161_vm2, %v2477_v10, %v1477_v6  ;;  %v8569_v0 = vld [vmem:[#allocation135_spill] sm:$0xff]  ;;  %v8570_v10 = vld [vmem:[#allocation197_spill] sm:$0xff] }
 0x33d   : > { %2795 = vst [vmem:[%s5602_s19 + $0x3c8] sm:$0xff] %v2606_v30  ;;  %2814 = vst [vmem:[%s5602_s19 + $0x460] sm:$0xff] %v2232_v31  ;;  %1714 = vrot.lane.b32.xlu1 %v6420_v56, %s3686_s6  ;;  %v1975_v16 = vsel %vm1903_vm0, %v3420_v23, %v8568_v34  ;;  %v2351_v62 = vsel %vm1903_vm0, %v3420_v23, %v8569_v0  ;;  %v2106_v63 = vsel %vm2032_vm1, %v1977_v35, %v8560_v25  ;;  %v3421_v25 = vld [vmem:[%s3926_s8 + $0x210] sm:$0xff]  ;;  %v8571_v23 = vld [vmem:[#allocation139_spill] sm:$0xff] }
 0x33e   : > { %2793 = vst [vmem:[%s5602_s19 + $0x3b8] sm:$0xff] %v2605_v60  ;;  %2812 = vst [vmem:[%s5602_s19 + $0x450] sm:$0xff] %v2231_v8  ;;  %1712 = vrot.lane.b32.xlu0 %v6431_v59, %s3686_s6  ;;  %v2479_v31 = vsel %vm2032_vm1, %v2351_v62, %v8570_v10  ;;  %v2104_v6 = vsel %vm2032_vm1, %v1975_v16, %v5715_v2  ;;  %v1979_v35 = vsel %vm1903_vm0, %v3421_v25, %v8562_v46  ;;  %v6592_v16 = vld [vmem:[%s3926_s8 + $0x208] sm:$0xff] }
 0x33f   : > { %v1483_v18 = vpop.permute.xlu1 %1482  ;;  %v1481_v8 = vpop.permute.xlu0 %1480  ;;  %v2355_v62 = vsel %vm1903_vm0, %v3421_v25, %v8571_v23  ;;  %v2108_v46 = vsel %vm2032_vm1, %v1979_v35, %v8565_v13  ;;  %v3423_v13 = vld [vmem:[%s3926_s8 + $0x40] sm:$0xff]  ;;  %v8573_v35 = vld [vmem:[#allocation134_spill] sm:$0xff] }
 0x340   : > { %v2235_v30 = vsel %vm2161_vm2, %v2106_v63, %v1483_v18  ;;  %v2233_v60 = vsel %vm2161_vm2, %v2104_v6, %v1481_v8  ;;  %v2607_v34 = vsel %vm2161_vm2, %v2479_v31, %v1481_v8  ;;  %v1978_v63 = vsel %vm1903_vm0, %v6592_v16, %v8564_v57  ;;  %v8572_v18 = vld [vmem:[#allocation200_spill] sm:$0xff]  ;;  %v3424_v25 = vld [vmem:[%s3926_s8 + $0x220] sm:$0xff] }
 0x341   : > { %2820 = vst [vmem:[%s5602_s19 + $0x490] sm:$0xff] %v2235_v30  ;;  %3248 = vrot.lane.b32.xlu1 %v8557_v1, %s3686_s6  ;;  %2797 = vst [vmem:[%s5602_s19 + $0x3d8] sm:$0xff] %v2607_v34  ;;  %v2483_v31 = vsel %vm2032_vm1, %v2355_v62, %v8572_v18  ;;  %v2107_v6 = vsel %vm2032_vm1, %v1978_v63, %v8567_v41  ;;  %v1981_v23 = vsel %vm1903_vm0, %v3424_v25, %v8573_v35  ;;  %v8574_v41 = vld [vmem:[#allocation141_spill] sm:$0xff]  ;;  %v3425_v63 = vld [vmem:[%s3926_s8 + $0x218] sm:$0xff] }
 0x342   : > { %2816 = vst [vmem:[%s5602_s19 + $0x470] sm:$0xff] %v2233_v60  ;;  %3243 = vrot.lane.b32.xlu0 %v8557_v1, %s3686_s6  ;;  %v2357_v62 = vsel %vm1903_vm0, %v3424_v25, %v8574_v41  ;;  %v8575_v18 = vld [vmem:[#allocation138_spill] sm:$0xff]  ;;  %v8578_v25 = vld [vmem:[#allocation205_spill] sm:$0xff] }
 0x343   : > { %v1487_v30 = vpop.permute.xlu1 %1486  ;;  %v6605_v34 = vpop.permute.xlu0 %1484 }
 0x344   : > { %v2237_v8 = vsel %vm2161_vm2, %v2108_v46, %v1487_v30  ;;  %v2611_v60 = vsel %vm2161_vm2, %v2483_v31, %v1487_v30  ;;  %v2236_v57 = vsel %vm2161_vm2, %v2107_v6, %v6605_v34  ;;  %v1980_v46 = vsel %vm1903_vm0, %v3425_v63, %v8569_v0  ;;  %v8576_v30 = vld [vmem:[#allocation196_spill] sm:$0xff] }
 0x345   : > { %2805 = vst [vmem:[%s5602_s19 + $0x418] sm:$0xff] %v2611_v60  ;;  %2824 = vst [vmem:[%s5602_s19 + $0x4b0] sm:$0xff] %v2237_v8  ;;  %1747 = vrot.lane.b32.xlu1 %v3423_v13, %s3687_s18  ;;  %v2356_v31 = vsel %vm1903_vm0, %v3425_v63, %v8575_v18  ;;  %v2110_v6 = vsel %vm2032_vm1, %v1981_v23, %v8576_v30  ;;  %v8577_v8 = vld [vmem:[#allocation204_spill] sm:$0xff]  ;;  %v2109_v13 = vsel %vm2032_vm1, %v1980_v46, %v8570_v10  ;;  %v3426_v30 = vld [vmem:[%s3926_s8 + $0xc0] sm:$0xff] }
 0x346   : > { %2822 = vst [vmem:[%s5602_s19 + $0x4a0] sm:$0xff] %v2236_v57  ;;  %3253 = vrot.lane.b32.xlu0 %v8557_v1, %s3686_s6  ;;  %v2485_v60 = vsel %vm2032_vm1, %v2357_v62, %v8577_v8  ;;  %v2484_v0 = vsel %vm2032_vm1, %v2356_v31, %v8578_v25  ;;  %v3427_v10 = vld [vmem:[%s3926_s8 + $0x230] sm:$0xff]  ;;  %v8579_v46 = vld [vmem:[#allocation136_spill] sm:$0xff]  ;;  %v8580_v31 = vld [vmem:[#allocation143_spill] sm:$0xff] }
 0x347   : > { %v1491_v57 = vpop.permute.xlu1 %1490  ;;  %v1489_v36 = vpop.permute.xlu0 %1488  ;;  %v1983_v44 = vsel %vm1903_vm0, %v3427_v10, %v8579_v46 }
 0x348   : > { %v2239_v35 = vsel %vm2161_vm2, %v2110_v6, %v1491_v57  ;;  %v2613_v63 = vsel %vm2161_vm2, %v2485_v60, %v1491_v57  ;;  %v2238_v23 = vsel %vm2161_vm2, %v2109_v13, %v1489_v36  ;;  %v2612_v62 = vsel %vm2161_vm2, %v2484_v0, %v1489_v36  ;;  %v3428_v60 = vld [vmem:[%s3926_s8 + $0x80] sm:$0xff]  ;;  %v8581_v57 = vld [vmem:[#allocation137_spill] sm:$0xff]  ;;  %v8583_v0 = vld [vmem:[#allocation208_spill] sm:$0xff] }
 0x349   : > { %2809 = vst [vmem:[%s5602_s19 + $0x438] sm:$0xff] %v2613_v63  ;;  %2828 = vst [vmem:[%s5602_s19 + $0x4d0] sm:$0xff] %v2239_v35  ;;  %1751 = vrot.lane.b32.xlu1 %v3426_v30, %s3687_s18  ;;  %v2359_v6 = vsel %vm1903_vm0, %v3427_v10, %v8580_v31  ;;  %v3429_v35 = vld [vmem:[%s3926_s8 + $0x228] sm:$0xff] }
 0x34a   : > { %2807 = vst [vmem:[%s5602_s19 + $0x428] sm:$0xff] %v2612_v62  ;;  %2826 = vst [vmem:[%s5602_s19 + $0x4c0] sm:$0xff] %v2238_v23  ;;  %1749 = vrot.lane.b32.xlu0 %v3428_v60, %s3687_s18  ;;  %v1982_v36 = vsel %vm1903_vm0, %v3429_v35, %v8581_v57  ;;  %v8582_v30 = vld [vmem:[#allocation140_spill] sm:$0xff]  ;;  %v2487_v63 = vsel %vm2032_vm1, %v2359_v6, %v8583_v0  ;;  %v2112_v23 = vsel %vm2032_vm1, %v1983_v44, %v5715_v2  ;;  %v8584_v62 = vld [vmem:[#allocation201_spill] sm:$0xff] }
 0x34b   : > { %v2358_v13 = vsel %vm1903_vm0, %v3429_v35, %v8582_v30  ;;  %v1495_v10 = vpop.permute.xlu1 %1494  ;;  %v2111_v46 = vsel %vm2032_vm1, %v1982_v36, %v8584_v62  ;;  %v8585_v60 = vld [vmem:[#allocation209_spill] sm:$0xff]  ;;  %v6673_v44 = vld [vmem:[%s3926_s8 + $0x248] sm:$0xff]  ;;  %v3433_v62 = vld [vmem:[%s3926_s8 + $0x258] sm:$0xff] }
 0x34c   : > { %v2486_v57 = vsel %vm2032_vm1, %v2358_v13, %v8585_v60  ;;  %v2241_v58 = vsel %vm2161_vm2, %v2112_v23, %v1495_v10  ;;  %v2615_v35 = vsel %vm2161_vm2, %v2487_v63, %v1495_v10  ;;  %v1493_v50 = vpop.permute.xlu0 %1492  ;;  %v1986_v36 = vsel %vm1903_vm0, %v6673_v44, %v8574_v41  ;;  %v3431_v13 = vld [vmem:[%s3926_s8 + $0x100] sm:$0xff] }
 0x34d   : > { %2813 = vst [vmem:[%s5602_s19 + $0x458] sm:$0xff] %v2615_v35  ;;  %2832 = vst [vmem:[%s5602_s19 + $0x4f0] sm:$0xff] %v2241_v58  ;;  %v2240_v6 = vsel %vm2161_vm2, %v2111_v46, %v1493_v50  ;;  %v2614_v51 = vsel %vm2161_vm2, %v2486_v57, %v1493_v50  ;;  %1755 = vrot.lane.b32.xlu1 %v6252_v52, %s3687_s18  ;;  %v3432_v58 = vld [vmem:[%s3926_s8 + $0x240] sm:$0xff]  ;;  %v2115_v52 = vsel %vm2032_vm1, %v1986_v36, %v8577_v8  ;;  %v8586_v8 = vld [vmem:[#allocation146_spill] sm:$0xff] }
 0x34e   : > { %2811 = vst [vmem:[%s5602_s19 + $0x448] sm:$0xff] %v2614_v51  ;;  %2830 = vst [vmem:[%s5602_s19 + $0x4e0] sm:$0xff] %v2240_v6  ;;  %1753 = vrot.lane.b32.xlu0 %v3431_v13, %s3687_s18  ;;  %v1985_v50 = vsel %vm1903_vm0, %v3432_v58, %v8575_v18  ;;  %v1988_v18 = vsel %vm1903_vm0, %v3433_v62, %v8580_v31  ;;  %v2364_v46 = vsel %vm1903_vm0, %v3433_v62, %v8586_v8  ;;  %v8587_v35 = vld [vmem:[#allocation147_spill] sm:$0xff]  ;;  %v8588_v31 = vld [vmem:[#allocation216_spill] sm:$0xff] }
 0x34f   : > { %v6687_v63 = vpop.permute.xlu1 %1498  ;;  %v2114_v10 = vsel %vm2032_vm1, %v1985_v50, %v8578_v25  ;;  %v3434_v25 = vld [vmem:[%s3926_s8 + $0x250] sm:$0xff]  ;;  %v2117_v6 = vsel %vm2032_vm1, %v1988_v18, %v8583_v0  ;;  %v2492_v36 = vsel %vm2032_vm1, %v2364_v46, %v8588_v31  ;;  %v8591_v18 = vld [vmem:[#allocation148_spill] sm:$0xff] }
 0x350   : > { %v2244_v51 = vsel %vm2161_vm2, %v2115_v52, %v6687_v63  ;;  %v1497_v41 = vpop.permute.xlu0 %1496  ;;  %v1987_v57 = vsel %vm1903_vm0, %v3434_v25, %v8582_v30  ;;  %v8589_v50 = vld [vmem:[#allocation217_spill] sm:$0xff] }
 0x351   : > { %2838 = vst [vmem:[%s5602_s19 + $0x520] sm:$0xff] %v2244_v51  ;;  %v2243_v23 = vsel %vm2161_vm2, %v2114_v10, %v1497_v41  ;;  %1759 = vrot.lane.b32.xlu1 %v6474_v24, %s3687_s18  ;;  %v2363_v24 = vsel %vm1903_vm0, %v3434_v25, %v8587_v35  ;;  %v8590_v62 = vld [vmem:[#allocation145_spill] sm:$0xff]  ;;  %v3436_v25 = vld [vmem:[%s3926_s8 + $0x260] sm:$0xff] }
 0x352   : > { %2836 = vst [vmem:[%s5602_s19 + $0x510] sm:$0xff] %v2243_v23  ;;  %1757 = vrot.lane.b32.xlu0 %v6345_v32, %s3687_s18  ;;  %v2116_v32 = vsel %vm2032_vm1, %v1987_v57, %v8585_v60  ;;  %v2491_v52 = vsel %vm2032_vm1, %v2363_v24, %v8589_v50  ;;  %v3435_v23 = vld [vmem:[%s3926_s8 + $0x268] sm:$0xff]  ;;  %v8592_v57 = vld [vmem:[#allocation142_spill] sm:$0xff] }
 0x353   : > { %v1503_v13 = vpop.permute.xlu1 %1502  ;;  %v1990_v60 = vsel %vm1903_vm0, %v3435_v23, %v8590_v62  ;;  %v2366_v46 = vsel %vm1903_vm0, %v3435_v23, %v8591_v18  ;;  %v1989_v35 = vsel %vm1903_vm0, %v3436_v25, %v8592_v57 }
 0x354   : > { %v2246_v30 = vsel %vm2161_vm2, %v2117_v6, %v1503_v13  ;;  %v2620_v10 = vsel %vm2161_vm2, %v2492_v36, %v1503_v13  ;;  %v1501_v51 = vpop.permute.xlu0 %1500  ;;  %v8594_v6 = vld [vmem:[#allocation212_spill] sm:$0xff] }
 0x355   : > { %2823 = vst [vmem:[%s5602_s19 + $0x4a8] sm:$0xff] %v2620_v10  ;;  %2842 = vst [vmem:[%s5602_s19 + $0x540] sm:$0xff] %v2246_v30  ;;  %v2245_v0 = vsel %vm2161_vm2, %v2116_v32, %v1501_v51  ;;  %v2619_v41 = vsel %vm2161_vm2, %v2491_v52, %v1501_v51  ;;  %1763 = vrot.lane.b32.xlu1 %v3432_v58, %s3687_s18  ;;  %v8593_v58 = vld [vmem:[#allocation149_spill] sm:$0xff]  ;;  %v2119_v36 = vsel %vm2032_vm1, %v1990_v60, %v8594_v6  ;;  %v8595_v13 = vld [vmem:[#allocation220_spill] sm:$0xff] }
 0x356   : > { %2821 = vst [vmem:[%s5602_s19 + $0x498] sm:$0xff] %v2619_v41  ;;  %2840 = vst [vmem:[%s5602_s19 + $0x530] sm:$0xff] %v2245_v0  ;;  %1761 = vrot.lane.b32.xlu0 %v6556_v7, %s3687_s18  ;;  %v2365_v24 = vsel %vm1903_vm0, %v3436_v25, %v8593_v58  ;;  %v2494_v32 = vsel %vm2032_vm1, %v2366_v46, %v8595_v13  ;;  %v8596_v52 = vld [vmem:[#allocation213_spill] sm:$0xff]  ;;  %v3437_v60 = vld [vmem:[%s3926_s8 + $0x280] sm:$0xff] }
 0x357   : > { %v1507_v50 = vpop.permute.xlu1 %1506  ;;  %v2118_v7 = vsel %vm2032_vm1, %v1989_v35, %v8596_v52  ;;  %v8597_v30 = vld [vmem:[#allocation221_spill] sm:$0xff]  ;;  %v1993_v46 = vsel %vm1903_vm0, %v3437_v60, %v8586_v8  ;;  %v8598_v35 = vld [vmem:[#allocation144_spill] sm:$0xff]  ;;  %v8599_v6 = vld [vmem:[#allocation151_spill] sm:$0xff] }
 0x358   : > { %v2493_v10 = vsel %vm2032_vm1, %v2365_v24, %v8597_v30  ;;  %v2248_v51 = vsel %vm2161_vm2, %v2119_v36, %v1507_v50  ;;  %v2622_v0 = vsel %vm2161_vm2, %v2494_v32, %v1507_v50  ;;  %v1505_v41 = vpop.permute.xlu0 %1504  ;;  %v3438_v25 = vld [vmem:[%s3926_s8 + $0x270] sm:$0xff]  ;;  %v3487_v52 = vld [vmem:[%s3926_s8 + $0x8] sm:$0xff] }
 0x359   : > { %2827 = vst [vmem:[%s5602_s19 + $0x4c8] sm:$0xff] %v2622_v0  ;;  %2846 = vst [vmem:[%s5602_s19 + $0x560] sm:$0xff] %v2248_v51  ;;  %v2247_v23 = vsel %vm2161_vm2, %v2118_v7, %v1505_v41  ;;  %v2621_v62 = vsel %vm2161_vm2, %v2493_v10, %v1505_v41  ;;  %1767 = vrot.lane.b32.xlu1 %v5924_v37, %s3687_s18  ;;  %v1991_v24 = vsel %vm1903_vm0, %v3438_v25, %v8598_v35  ;;  %v8600_v8 = vld [vmem:[#allocation225_spill] sm:$0xff] }
 0x35a   : > { %2825 = vst [vmem:[%s5602_s19 + $0x4b8] sm:$0xff] %v2621_v62  ;;  %2844 = vst [vmem:[%s5602_s19 + $0x550] sm:$0xff] %v2247_v23  ;;  %1765 = vrot.lane.b32.xlu0 %v3437_v60, %s3687_s18  ;;  %v2367_v36 = vsel %vm1903_vm0, %v3438_v25, %v8599_v6  ;;  %v2122_v37 = vsel %vm2032_vm1, %v1993_v46, %v8588_v31  ;;  %v2120_v10 = vsel %vm2032_vm1, %v1991_v24, %v5715_v2  ;;  %v3439_v31 = vld [vmem:[%s3926_s8 + $0x290] sm:$0xff]  ;;  %v8601_v62 = vld [vmem:[#allocation155_spill] sm:$0xff] }
 0x35b   : > { %v1511_v32 = vpop.permute.xlu1 %1510  ;;  %v2495_v50 = vsel %vm2032_vm1, %v2367_v36, %v8600_v8  ;;  %v1995_v23 = vsel %vm1903_vm0, %v3439_v31, %v8591_v18  ;;  %v2371_v60 = vsel %vm1903_vm0, %v3439_v31, %v8601_v62  ;;  %v6788_v46 = vld [vmem:[%s3926_s8 + $0x288] sm:$0xff] }
 0x35c   : > { %v2251_v7 = vsel %vm2161_vm2, %v2122_v37, %v1511_v32  ;;  %v1509_v51 = vpop.permute.xlu0 %1508  ;;  %v2124_v25 = vsel %vm2032_vm1, %v1995_v23, %v8595_v13  ;;  %v8602_v18 = vld [vmem:[#allocation228_spill] sm:$0xff]  ;;  %v3441_v13 = vld [vmem:[%s3926_s8 + $0x2a0] sm:$0xff] }
 0x35d   : > { %2852 = vst [vmem:[%s5602_s19 + $0x590] sm:$0xff] %v2251_v7  ;;  %v2249_v0 = vsel %vm2161_vm2, %v2120_v10, %v1509_v51  ;;  %v2623_v41 = vsel %vm2161_vm2, %v2495_v50, %v1509_v51  ;;  %1771 = vrot.lane.b32.xlu1 %v6132_v15, %s3687_s18  ;;  %v1994_v15 = vsel %vm1903_vm0, %v6788_v46, %v8593_v58  ;;  %v8603_v50 = vld [vmem:[#allocation150_spill] sm:$0xff]  ;;  %v8606_v31 = vld [vmem:[#allocation224_spill] sm:$0xff] }
 0x35e   : > { %2829 = vst [vmem:[%s5602_s19 + $0x4d8] sm:$0xff] %v2623_v41  ;;  %2848 = vst [vmem:[%s5602_s19 + $0x570] sm:$0xff] %v2249_v0  ;;  %1769 = vrot.lane.b32.xlu0 %v6052_v4, %s3687_s18  ;;  %v2499_v35 = vsel %vm2032_vm1, %v2371_v60, %v8602_v18  ;;  %v2123_v36 = vsel %vm2032_vm1, %v1994_v15, %v8597_v30  ;;  %v1997_v7 = vsel %vm1903_vm0, %v3441_v13, %v8603_v50  ;;  %v8604_v30 = vld [vmem:[#allocation157_spill] sm:$0xff]  ;;  %v3442_v51 = vld [vmem:[%s3926_s8 + $0x298] sm:$0xff] }
 0x35f   : > { %v1515_v24 = vpop.permute.xlu1 %1514  ;;  %v2373_v10 = vsel %vm1903_vm0, %v3441_v13, %v8604_v30  ;;  %v1996_v0 = vsel %vm1903_vm0, %v3442_v51, %v8599_v6  ;;  %v8605_v41 = vld [vmem:[#allocation154_spill] sm:$0xff]  ;;  %v2126_v23 = vsel %vm2032_vm1, %v1997_v7, %v8606_v31  ;;  %v8607_v62 = vld [vmem:[#allocation232_spill] sm:$0xff]  ;;  %v8610_v13 = vld [vmem:[#allocation159_spill] sm:$0xff] }
 0x360   : > { %v2253_v4 = vsel %vm2161_vm2, %v2124_v25, %v1515_v24  ;;  %v2627_v37 = vsel %vm2161_vm2, %v2499_v35, %v1515_v24  ;;  %v6801_v32 = vpop.permute.xlu0 %1512  ;;  %v2501_v60 = vsel %vm2032_vm1, %v2373_v10, %v8607_v62  ;;  %v8608_v25 = vld [vmem:[#allocation233_spill] sm:$0xff]  ;;  %v3444_v10 = vld [vmem:[%s3926_s8 + $0x2a8] sm:$0xff] }
 0x361   : > { %2837 = vst [vmem:[%s5602_s19 + $0x518] sm:$0xff] %v2627_v37  ;;  %2856 = vst [vmem:[%s5602_s19 + $0x5b0] sm:$0xff] %v2253_v4  ;;  %v2252_v58 = vsel %vm2161_vm2, %v2123_v36, %v6801_v32  ;;  %1775 = vrot.lane.b32.xlu1 %v6321_v20, %s3687_s18  ;;  %v2372_v20 = vsel %vm1903_vm0, %v3442_v51, %v8605_v41  ;;  %v3443_v37 = vld [vmem:[%s3926_s8 + $0x2b0] sm:$0xff] }
 0x362   : > { %2854 = vst [vmem:[%s5602_s19 + $0x5a0] sm:$0xff] %v2252_v58  ;;  %1773 = vrot.lane.b32.xlu0 %v6261_v22, %s3687_s18  ;;  %v2125_v22 = vsel %vm2032_vm1, %v1996_v0, %v8600_v8  ;;  %v2500_v18 = vsel %vm2032_vm1, %v2372_v20, %v8608_v25  ;;  %v8609_v8 = vld [vmem:[#allocation152_spill] sm:$0xff]  ;;  %v2375_v7 = vsel %vm1903_vm0, %v3443_v37, %v8610_v13  ;;  %v8611_v51 = vld [vmem:[#allocation153_spill] sm:$0xff] }
 0x363   : > { %v1519_v15 = vpop.permute.xlu1 %1518  ;;  %v1999_v58 = vsel %vm1903_vm0, %v3443_v37, %v8609_v8  ;;  %v1998_v0 = vsel %vm1903_vm0, %v3444_v10, %v8611_v51 }
 0x364   : > { %v2255_v6 = vsel %vm2161_vm2, %v2126_v23, %v1519_v15  ;;  %v2629_v35 = vsel %vm2161_vm2, %v2501_v60, %v1519_v15  ;;  %v1517_v24 = vpop.permute.xlu0 %1516  ;;  %v8613_v23 = vld [vmem:[#allocation236_spill] sm:$0xff] }
 0x365   : > { %2841 = vst [vmem:[%s5602_s19 + $0x538] sm:$0xff] %v2629_v35  ;;  %2860 = vst [vmem:[%s5602_s19 + $0x5d0] sm:$0xff] %v2255_v6  ;;  %v2254_v36 = vsel %vm2161_vm2, %v2125_v22, %v1517_v24  ;;  %v2628_v4 = vsel %vm2161_vm2, %v2500_v18, %v1517_v24  ;;  %1779 = vrot.lane.b32.xlu1 %v6355_v27, %s3687_s18  ;;  %v8612_v27 = vld [vmem:[#allocation156_spill] sm:$0xff]  ;;  %v2503_v60 = vsel %vm2032_vm1, %v2375_v7, %v8613_v23  ;;  %v8614_v18 = vld [vmem:[#allocation229_spill] sm:$0xff] }
 0x366   : > { %2839 = vst [vmem:[%s5602_s19 + $0x528] sm:$0xff] %v2628_v4  ;;  %2858 = vst [vmem:[%s5602_s19 + $0x5c0] sm:$0xff] %v2254_v36  ;;  %1777 = vrot.lane.b32.xlu0 %v6364_v14, %s3687_s18  ;;  %v2374_v20 = vsel %vm1903_vm0, %v3444_v10, %v8612_v27  ;;  %v2128_v22 = vsel %vm2032_vm1, %v1999_v58, %v5715_v2  ;;  %v2127_v14 = vsel %vm2032_vm1, %v1998_v0, %v8614_v18  ;;  %v8615_v6 = vld [vmem:[#allocation237_spill] sm:$0xff]  ;;  %v6869_v58 = vld [vmem:[%s3926_s8 + $0x2c8] sm:$0xff] }
 0x367   : > { %v1523_v15 = vpop.permute.xlu1 %1522  ;;  %v2502_v35 = vsel %vm2032_vm1, %v2374_v20, %v8615_v6  ;;  %v2002_v7 = vsel %vm1903_vm0, %v6869_v58, %v8604_v30  ;;  %v3446_v10 = vld [vmem:[%s3926_s8 + $0x2c0] sm:$0xff] }
 0x368   : > { %v2257_v24 = vsel %vm2161_vm2, %v2128_v22, %v1523_v15  ;;  %v2631_v36 = vsel %vm2161_vm2, %v2503_v60, %v1523_v15  ;;  %v1521_v4 = vpop.permute.xlu0 %1520  ;;  %v2001_v51 = vsel %vm1903_vm0, %v3446_v10, %v8605_v41  ;;  %v3447_v41 = vld [vmem:[%s3926_s8 + $0x2d8] sm:$0xff] }
 0x369   : > { %2845 = vst [vmem:[%s5602_s19 + $0x558] sm:$0xff] %v2631_v36  ;;  %2864 = vst [vmem:[%s5602_s19 + $0x5f0] sm:$0xff] %v2257_v24  ;;  %v2256_v37 = vsel %vm2161_vm2, %v2127_v14, %v1521_v4  ;;  %v2630_v8 = vsel %vm2161_vm2, %v2502_v35, %v1521_v4  ;;  %1783 = vrot.lane.b32.xlu1 %v6385_v3, %s3687_s18  ;;  %v2131_v3 = vsel %vm2032_vm1, %v2002_v7, %v8607_v62  ;;  %v8616_v15 = vld [vmem:[#allocation162_spill] sm:$0xff]  ;;  %v8617_v14 = vld [vmem:[#allocation163_spill] sm:$0xff] }
 0x36a   : > { %2843 = vst [vmem:[%s5602_s19 + $0x548] sm:$0xff] %v2630_v8  ;;  %2862 = vst [vmem:[%s5602_s19 + $0x5e0] sm:$0xff] %v2256_v37  ;;  %1781 = vrot.lane.b32.xlu0 %v6396_v53, %s3687_s18  ;;  %v2130_v20 = vsel %vm2032_vm1, %v2001_v51, %v8608_v25  ;;  %v2004_v62 = vsel %vm1903_vm0, %v3447_v41, %v8610_v13  ;;  %v2380_v22 = vsel %vm1903_vm0, %v3447_v41, %v8616_v15  ;;  %v3448_v25 = vld [vmem:[%s3926_s8 + $0x2d0] sm:$0xff] }
 0x36b   : > { %v6883_v0 = vpop.permute.xlu1 %1526  ;;  %v2003_v18 = vsel %vm1903_vm0, %v3448_v25, %v8612_v27  ;;  %v2133_v13 = vsel %vm2032_vm1, %v2004_v62, %v8613_v23  ;;  %v8618_v35 = vld [vmem:[#allocation241_spill] sm:$0xff]  ;;  %v6911_v4 = vld [vmem:[%s3926_s8 + $0x3f8] sm:$0xff]  ;;  %v3449_v51 = vld [vmem:[%s3926_s8 + $0x2e8] sm:$0xff] }
 0x36c   : > { %v2260_v30 = vsel %vm2161_vm2, %v2131_v3, %v6883_v0  ;;  %v1525_v60 = vpop.permute.xlu0 %1524  ;;  %v2508_v24 = vsel %vm2032_vm1, %v2380_v22, %v8618_v35  ;;  %8619 = vst [vmem:[#allocation242_spill] sm:$0xff] %v6911_v4  ;;  %v8623_v41 = vld [vmem:[#allocation165_spill] sm:$0xff]  ;;  %v8624_v22 = vld [vmem:[#allocation239_spill] sm:$0xff] }
 0x36d   : > { %2870 = vst [vmem:[%s5602_s19 + $0x620] sm:$0xff] %v2260_v30  ;;  %v2259_v53 = vsel %vm2161_vm2, %v2130_v20, %v1525_v60  ;;  %1787 = vrot.lane.b32.xlu1 %v6420_v56, %s3687_s18  ;;  %v2379_v56 = vsel %vm1903_vm0, %v3448_v25, %v8617_v14  ;;  %v8621_v20 = vld [vmem:[#allocation164_spill] sm:$0xff]  ;;  %v3450_v30 = vld [vmem:[%s3926_s8 + $0x2e0] sm:$0xff]  ;;  %v8622_v60 = vld [vmem:[#allocation158_spill] sm:$0xff] }
 0x36e   : > { %2868 = vst [vmem:[%s5602_s19 + $0x610] sm:$0xff] %v2259_v53  ;;  %1785 = vrot.lane.b32.xlu0 %v6431_v59, %s3687_s18  ;;  %v2132_v59 = vsel %vm2032_vm1, %v2003_v18, %v8615_v6  ;;  %v2507_v27 = vsel %vm2032_vm1, %v2379_v56, %v8413_v42  ;;  %v8620_v6 = vld [vmem:[#allocation161_spill] sm:$0xff]  ;;  %v2382_v42 = vsel %vm1903_vm0, %v3449_v51, %v8621_v20  ;;  %v8625_v18 = vld [vmem:[#allocation243_spill] sm:$0xff] }
 0x36f   : > { %v1531_v36 = vpop.permute.xlu1 %1530  ;;  %v2006_v3 = vsel %vm1903_vm0, %v3449_v51, %v8620_v6  ;;  %v2005_v53 = vsel %vm1903_vm0, %v3450_v30, %v8622_v60  ;;  %v2381_v62 = vsel %vm1903_vm0, %v3450_v30, %v8623_v41  ;;  %v2510_v14 = vsel %vm2032_vm1, %v2382_v42, %v8625_v18  ;;  %v3452_v6 = vld [vmem:[%s3926_s8 + $0x2f0] sm:$0xff]  ;;  %v8629_v30 = vld [vmem:[#allocation167_spill] sm:$0xff] }
 0x370   : > { %v2262_v37 = vsel %vm2161_vm2, %v2133_v13, %v1531_v36  ;;  %v2636_v8 = vsel %vm2161_vm2, %v2508_v24, %v1531_v36  ;;  %v1529_v23 = vpop.permute.xlu0 %1528  ;;  %v2135_v25 = vsel %vm2032_vm1, %v2006_v3, %v8624_v22  ;;  %v8626_v13 = vld [vmem:[#allocation240_spill] sm:$0xff]  ;;  %v8630_v22 = vld [vmem:[#allocation246_spill] sm:$0xff] }
 0x371   : > { %2855 = vst [vmem:[%s5602_s19 + $0x5a8] sm:$0xff] %v2636_v8  ;;  %2874 = vst [vmem:[%s5602_s19 + $0x640] sm:$0xff] %v2262_v37  ;;  %v2261_v7 = vsel %vm2161_vm2, %v2132_v59, %v1529_v23  ;;  %v2635_v10 = vsel %vm2161_vm2, %v2507_v27, %v1529_v23  ;;  %3258 = vrot.lane.b32.xlu1 %v8557_v1, %s3687_s18  ;;  %v2134_v24 = vsel %vm2032_vm1, %v2005_v53, %v8626_v13  ;;  %v8627_v36 = vld [vmem:[#allocation244_spill] sm:$0xff] }
 0x372   : > { %2853 = vst [vmem:[%s5602_s19 + $0x598] sm:$0xff] %v2635_v10  ;;  %2872 = vst [vmem:[%s5602_s19 + $0x630] sm:$0xff] %v2261_v7  ;;  %1789 = vrot.lane.b32.xlu0 %v6911_v4, %s3687_s18  ;;  %v2509_v59 = vsel %vm2032_vm1, %v2381_v62, %v8627_v36  ;;  %v3451_v10 = vld [vmem:[%s3926_s8 + $0x300] sm:$0xff]  ;;  %v8628_v3 = vld [vmem:[#allocation160_spill] sm:$0xff]  ;;  %v2383_v53 = vsel %vm1903_vm0, %v3452_v6, %v8629_v30 }
 0x373   : > { %v1535_v56 = vpop.permute.xlu1 %1534  ;;  %v2009_v51 = vsel %vm1903_vm0, %v3451_v10, %v8616_v15  ;;  %v2007_v42 = vsel %vm1903_vm0, %v3452_v6, %v8628_v3  ;;  %v6992_v10 = vld [vmem:[%s3926_s8 + $0x308] sm:$0xff]  ;;  %v8632_v6 = vld [vmem:[#allocation247_spill] sm:$0xff] }
 0x374   : > { %v2264_v27 = vsel %vm2161_vm2, %v2135_v25, %v1535_v56  ;;  %v2638_v37 = vsel %vm2161_vm2, %v2510_v14, %v1535_v56  ;;  %v1533_v8 = vpop.permute.xlu0 %1532  ;;  %v2138_v62 = vsel %vm2032_vm1, %v2009_v51, %v8618_v35  ;;  %v2511_v25 = vsel %vm2032_vm1, %v2383_v53, %v8630_v22  ;;  %v3454_v35 = vld [vmem:[%s3926_s8 + $0x310] sm:$0xff] }
 0x375   : > { %2859 = vst [vmem:[%s5602_s19 + $0x5c8] sm:$0xff] %v2638_v37  ;;  %2878 = vst [vmem:[%s5602_s19 + $0x660] sm:$0xff] %v2264_v27  ;;  %v2263_v23 = vsel %vm2161_vm2, %v2134_v24, %v1533_v8  ;;  %v2637_v7 = vsel %vm2161_vm2, %v2509_v59, %v1533_v8  ;;  %3268 = vrot.lane.b32.xlu1 %v8557_v1, %s3687_s18  ;;  %v2136_v56 = vsel %vm2032_vm1, %v2007_v42, %v5715_v2  ;;  %v6978_v37 = vld [vmem:[%s3926_s8 + $0x78] sm:$0xff] }
 0x376   : > { %2857 = vst [vmem:[%s5602_s19 + $0x5b8] sm:$0xff] %v2637_v7  ;;  %2876 = vst [vmem:[%s5602_s19 + $0x650] sm:$0xff] %v2263_v23  ;;  %3263 = vrot.lane.b32.xlu0 %v8557_v1, %s3687_s18  ;;  %v2011_v8 = vsel %vm1903_vm0, %v3454_v35, %v8621_v20  ;;  %v8631_v23 = vld [vmem:[#allocation171_spill] sm:$0xff]  ;;  %v2010_v51 = vsel %vm1903_vm0, %v6992_v10, %v8623_v41 }
 0x377   : > { %v1539_v15 = vpop.permute.xlu1 %1538  ;;  %v2387_v7 = vsel %vm1903_vm0, %v3454_v35, %v8631_v23  ;;  %v2140_v20 = vsel %vm2032_vm1, %v2011_v8, %v8625_v18  ;;  %v2139_v53 = vsel %vm2032_vm1, %v2010_v51, %v8627_v36  ;;  %v7012_v18 = vld [vmem:[%s3926_s8 + $0xf8] sm:$0xff]  ;;  %v8636_v51 = vld [vmem:[#allocation245_spill] sm:$0xff] }
 0x378   : > { %v2267_v14 = vsel %vm2161_vm2, %v2138_v62, %v1539_v15  ;;  %v1537_v24 = vpop.permute.xlu0 %1536  ;;  %v2515_v3 = vsel %vm2032_vm1, %v2387_v7, %v8632_v6  ;;  %v3459_v35 = vld [vmem:[%s3926_s8 + $0x318] sm:$0xff]  ;;  %v8637_v6 = vld [vmem:[#allocation249_spill] sm:$0xff] }
 0x379   : > { %2884 = vst [vmem:[%s5602_s19 + $0x690] sm:$0xff] %v2267_v14  ;;  %v2265_v59 = vsel %vm2161_vm2, %v2136_v56, %v1537_v24  ;;  %v2639_v27 = vsel %vm2161_vm2, %v2511_v25, %v1537_v24  ;;  %1837 = vrot.lane.b32.xlu1 %v6978_v37, %s3688_s24  ;;  %v3457_v14 = vld [vmem:[%s3926_s8 + $0x320] sm:$0xff]  ;;  %v8633_v56 = vld [vmem:[#allocation166_spill] sm:$0xff]  ;;  %v8634_v24 = vld [vmem:[#allocation173_spill] sm:$0xff]  ;;  %v2012_v8 = vsel %vm1903_vm0, %v3459_v35, %v8629_v30 }
 0x37a   : > { %2861 = vst [vmem:[%s5602_s19 + $0x5d8] sm:$0xff] %v2639_v27  ;;  %2880 = vst [vmem:[%s5602_s19 + $0x670] sm:$0xff] %v2265_v59  ;;  %3273 = vrot.lane.b32.xlu0 %v8557_v1, %s3687_s18  ;;  %v2013_v36 = vsel %vm1903_vm0, %v3457_v14, %v8633_v56  ;;  %v2389_v59 = vsel %vm1903_vm0, %v3457_v14, %v8634_v24  ;;  %v7023_v27 = vld [vmem:[%s3926_s8 + $0xb8] sm:$0xff]  ;;  %v8645_v56 = vld [vmem:[#allocation16_spill] sm:$0xff] }
 0x37b   : > { %v1543_v42 = vpop.permute.xlu1 %1542  ;;  %v8635_v23 = vld [vmem:[#allocation170_spill] sm:$0xff] }
 0x37c   : > { %v2269_v62 = vsel %vm2161_vm2, %v2140_v20, %v1543_v42  ;;  %v2643_v15 = vsel %vm2161_vm2, %v2515_v3, %v1543_v42  ;;  %v7005_v25 = vpop.permute.xlu0 %1540  ;;  %v2388_v7 = vsel %vm1903_vm0, %v3459_v35, %v8635_v23  ;;  %v2142_v20 = vsel %vm2032_vm1, %v2013_v36, %v8636_v51  ;;  %v7047_v35 = vld [vmem:[%s3926_s8 + $0x178] sm:$0xff] }
 0x37d   : > { %2869 = vst [vmem:[%s5602_s19 + $0x618] sm:$0xff] %v2643_v15  ;;  %2888 = vst [vmem:[%s5602_s19 + $0x6b0] sm:$0xff] %v2269_v62  ;;  %v2268_v41 = vsel %vm2161_vm2, %v2139_v53, %v7005_v25  ;;  %1841 = vrot.lane.b32.xlu1 %v7012_v18, %s3688_s24  ;;  %v2517_v3 = vsel %vm2032_vm1, %v2389_v59, %v8637_v6  ;;  %v2141_v53 = vsel %vm2032_vm1, %v2012_v8, %v8630_v22  ;;  %v8638_v62 = vld [vmem:[#allocation250_spill] sm:$0xff]  ;;  %v3461_v22 = vld [vmem:[%s3926_s8 + $0x330] sm:$0xff] }
 0x37e   : > { %2886 = vst [vmem:[%s5602_s19 + $0x6a0] sm:$0xff] %v2268_v41  ;;  %1839 = vrot.lane.b32.xlu0 %v7023_v27, %s3688_s24  ;;  %v2516_v30 = vsel %vm2032_vm1, %v2388_v7, %v8638_v62  ;;  %8639 = vst [vmem:[#allocation248_spill] sm:$0xff] %v7047_v35  ;;  %v8640_v8 = vld [vmem:[#allocation168_spill] sm:$0xff] }
 0x37f   : > { %v1547_v42 = vpop.permute.xlu1 %1546  ;;  %v2015_v7 = vsel %vm1903_vm0, %v3461_v22, %v8640_v8 }
 0x380   : > { %v2271_v15 = vsel %vm2161_vm2, %v2142_v20, %v1547_v42  ;;  %v2645_v41 = vsel %vm2161_vm2, %v2517_v3, %v1547_v42  ;;  %v1545_v14 = vpop.permute.xlu0 %1544  ;;  %v8641_v20 = vld [vmem:[#allocation175_spill] sm:$0xff]  ;;  %v7059_v3 = vld [vmem:[%s3926_s8 + $0x138] sm:$0xff]  ;;  %v3463_v42 = vld [vmem:[%s3926_s8 + $0x328] sm:$0xff] }
 0x381   : > { %2873 = vst [vmem:[%s5602_s19 + $0x638] sm:$0xff] %v2645_v41  ;;  %2892 = vst [vmem:[%s5602_s19 + $0x6d0] sm:$0xff] %v2271_v15  ;;  %v2270_v36 = vsel %vm2161_vm2, %v2141_v53, %v1545_v14  ;;  %v2644_v59 = vsel %vm2161_vm2, %v2516_v30, %v1545_v14  ;;  %1845 = vrot.lane.b32.xlu1 %v7047_v35, %s3688_s24  ;;  %v2391_v51 = vsel %vm1903_vm0, %v3461_v22, %v8641_v20  ;;  %v8642_v53 = vld [vmem:[#allocation169_spill] sm:$0xff]  ;;  %v8643_v15 = vld [vmem:[#allocation172_spill] sm:$0xff] }
 0x382   : > { %2871 = vst [vmem:[%s5602_s19 + $0x628] sm:$0xff] %v2644_v59  ;;  %2890 = vst [vmem:[%s5602_s19 + $0x6c0] sm:$0xff] %v2270_v36  ;;  %1843 = vrot.lane.b32.xlu0 %v7059_v3, %s3688_s24  ;;  %v2014_v30 = vsel %vm1903_vm0, %v3463_v42, %v8642_v53  ;;  %v2390_v41 = vsel %vm1903_vm0, %v3463_v42, %v8643_v15  ;;  %v8644_v14 = vld [vmem:[#allocation15_spill] sm:$0xff]  ;;  %v2144_v36 = vsel %vm2032_vm1, %v2015_v7, %v5715_v2  ;;  %v7083_v7 = vld [vmem:[%s3926_s8 + $0x1f8] sm:$0xff] }
 0x383   : > { %v2519_v22 = vsel %vm2032_vm1, %v2391_v51, %v8644_v14  ;;  %v1551_v59 = vpop.permute.xlu1 %1550  ;;  %v2143_v8 = vsel %vm2032_vm1, %v2014_v30, %v8415_v61  ;;  %v2518_v53 = vsel %vm2032_vm1, %v2390_v41, %v8645_v56  ;;  %8646 = vst [vmem:[#allocation186_spill] sm:$0xff] %v7083_v7  ;;  %v7088_v61 = vld [vmem:[%s3926_s8 + $0x348] sm:$0xff] }
 0x384   : > { %v2273_v31 = vsel %vm2161_vm2, %v2144_v36, %v1551_v59  ;;  %v2647_v42 = vsel %vm2161_vm2, %v2519_v22, %v1551_v59  ;;  %v1549_v13 = vpop.permute.xlu0 %1548  ;;  %v2018_v30 = vsel %vm1903_vm0, %v7088_v61, %v8634_v24 }
 0x385   : > { %2877 = vst [vmem:[%s5602_s19 + $0x658] sm:$0xff] %v2647_v42  ;;  %2896 = vst [vmem:[%s5602_s19 + $0x6f0] sm:$0xff] %v2273_v31  ;;  %v2272_v51 = vsel %vm2161_vm2, %v2143_v8, %v1549_v13  ;;  %v2646_v50 = vsel %vm2161_vm2, %v2518_v53, %v1549_v13  ;;  %1849 = vrot.lane.b32.xlu1 %v7083_v7, %s3688_s24  ;;  %v7096_v31 = vld [vmem:[%s3926_s8 + $0x1b8] sm:$0xff]  ;;  %v2147_v22 = vsel %vm2032_vm1, %v2018_v30, %v8637_v6 }
 0x386   : > { %2875 = vst [vmem:[%s5602_s19 + $0x648] sm:$0xff] %v2646_v50  ;;  %2894 = vst [vmem:[%s5602_s19 + $0x6e0] sm:$0xff] %v2272_v51  ;;  %1847 = vrot.lane.b32.xlu0 %v7096_v31, %s3688_s24  ;;  %v3467_v13 = vld [vmem:[%s3926_s8 + $0x340] sm:$0xff]  ;;  %v8649_v42 = vld [vmem:[#allocation178_spill] sm:$0xff] }
 0x387   : > { %8647 = vst [vmem:[#allocation251_spill] sm:$0xff] %v7096_v31  ;;  %v2017_v41 = vsel %vm1903_vm0, %v3467_v13, %v8635_v23  ;;  %v7105_v59 = vpop.permute.xlu1 %1554  ;;  %v7114_v53 = vld [vmem:[%s3926_s8 + $0x278] sm:$0xff]  ;;  %v3471_v30 = vld [vmem:[%s3926_s8 + $0x350] sm:$0xff] }
 0x388   : > { %v2146_v50 = vsel %vm2032_vm1, %v2017_v41, %v8638_v62  ;;  %v2276_v24 = vsel %vm2161_vm2, %v2147_v22, %v7105_v59  ;;  %v1553_v36 = vpop.permute.xlu0 %1552  ;;  %8648 = vst [vmem:[#allocation253_spill] sm:$0xff] %v7114_v53  ;;  %v3469_v23 = vld [vmem:[%s3926_s8 + $0x358] sm:$0xff]  ;;  %v2019_v13 = vsel %vm1903_vm0, %v3471_v30, %v8643_v15  ;;  %v8651_v41 = vld [vmem:[#allocation179_spill] sm:$0xff] }
 0x389   : > { %2902 = vst [vmem:[%s5602_s19 + $0x720] sm:$0xff] %v2276_v24  ;;  %v2275_v8 = vsel %vm2161_vm2, %v2146_v50, %v1553_v36  ;;  %1853 = vrot.lane.b32.xlu1 %v7114_v53, %s3688_s24  ;;  %v2020_v6 = vsel %vm1903_vm0, %v3469_v23, %v8641_v20  ;;  %v2396_v62 = vsel %vm1903_vm0, %v3469_v23, %v8649_v42  ;;  %v7125_v51 = vld [vmem:[%s3926_s8 + $0x238] sm:$0xff]  ;;  %v8652_v50 = vld [vmem:[#allocation20_spill] sm:$0xff]  ;;  %v8661_v53 = vld [vmem:[#allocation255_spill] sm:$0xff] }
 0x38a   : > { %2900 = vst [vmem:[%s5602_s19 + $0x710] sm:$0xff] %v2275_v8  ;;  %8650 = vst [vmem:[#allocation17_spill] sm:$0xff] %v7125_v51  ;;  %1851 = vrot.lane.b32.xlu0 %v7125_v51, %s3688_s24  ;;  %v2395_v20 = vsel %vm1903_vm0, %v3471_v30, %v8651_v41  ;;  %v2149_v22 = vsel %vm2032_vm1, %v2020_v6, %v8644_v14  ;;  %v2524_v24 = vsel %vm2032_vm1, %v2396_v62, %v8652_v50  ;;  %v7149_v62 = vld [vmem:[%s3926_s8 + $0x2f8] sm:$0xff] }
 0x38b   : > { %v1559_v36 = vpop.permute.xlu1 %1558  ;;  %v2148_v8 = vsel %vm2032_vm1, %v2019_v13, %v8645_v56  ;;  %v2523_v15 = vsel %vm2032_vm1, %v2395_v20, %v8418_v17  ;;  %8653 = vst [vmem:[#allocation18_spill] sm:$0xff] %v7149_v62  ;;  %v3473_v56 = vld [vmem:[%s3926_s8 + $0x368] sm:$0xff]  ;;  %v8654_v13 = vld [vmem:[#allocation177_spill] sm:$0xff] }
 0x38c   : > { %v2278_v23 = vsel %vm2161_vm2, %v2149_v22, %v1559_v36  ;;  %v2652_v30 = vsel %vm2161_vm2, %v2524_v24, %v1559_v36  ;;  %v1557_v41 = vpop.permute.xlu0 %1556  ;;  %v2022_v17 = vsel %vm1903_vm0, %v3473_v56, %v8654_v13  ;;  %v8655_v20 = vld [vmem:[#allocation180_spill] sm:$0xff]  ;;  %v7161_v24 = vld [vmem:[%s3926_s8 + $0x2b8] sm:$0xff]  ;;  %v3475_v36 = vld [vmem:[%s3926_s8 + $0x360] sm:$0xff] }
 0x38d   : > { %2887 = vst [vmem:[%s5602_s19 + $0x6a8] sm:$0xff] %v2652_v30  ;;  %2906 = vst [vmem:[%s5602_s19 + $0x740] sm:$0xff] %v2278_v23  ;;  %v2277_v14 = vsel %vm2161_vm2, %v2148_v8, %v1557_v41  ;;  %v2651_v6 = vsel %vm2161_vm2, %v2523_v15, %v1557_v41  ;;  %1857 = vrot.lane.b32.xlu1 %v7149_v62, %s3688_s24  ;;  %v2398_v22 = vsel %vm1903_vm0, %v3473_v56, %v8655_v20  ;;  %v8657_v8 = vld [vmem:[#allocation174_spill] sm:$0xff]  ;;  %v8658_v23 = vld [vmem:[#allocation181_spill] sm:$0xff] }
 0x38e   : > { %2885 = vst [vmem:[%s5602_s19 + $0x698] sm:$0xff] %v2651_v6  ;;  %2904 = vst [vmem:[%s5602_s19 + $0x730] sm:$0xff] %v2277_v14  ;;  %1855 = vrot.lane.b32.xlu0 %v7161_v24, %s3688_s24  ;;  %v2021_v15 = vsel %vm1903_vm0, %v3475_v36, %v8657_v8  ;;  %v2397_v30 = vsel %vm1903_vm0, %v3475_v36, %v8658_v23  ;;  %v2151_v41 = vsel %vm2032_vm1, %v2022_v17, %v8417_v45  ;;  %v8659_v6 = vld [vmem:[#allocation254_spill] sm:$0xff]  ;;  %v8660_v13 = vld [vmem:[#allocation252_spill] sm:$0xff] }
 0x38f   : > { %8656 = vst [vmem:[#allocation19_spill] sm:$0xff] %v7161_v24  ;;  %v2526_v14 = vsel %vm2032_vm1, %v2398_v22, %v8659_v6  ;;  %v1563_v56 = vpop.permute.xlu1 %1562  ;;  %v2150_v62 = vsel %vm2032_vm1, %v2021_v15, %v8660_v13  ;;  %v2525_v8 = vsel %vm2032_vm1, %v2397_v30, %v8661_v53  ;;  %v7185_v22 = vld [vmem:[%s3926_s8 + $0x378] sm:$0xff]  ;;  %v3477_v15 = vld [vmem:[%s3926_s8 + $0x380] sm:$0xff] }
 0x390   : > { %v2280_v24 = vsel %vm2161_vm2, %v2151_v41, %v1563_v56  ;;  %v2654_v36 = vsel %vm2161_vm2, %v2526_v14, %v1563_v56  ;;  %v1561_v60 = vpop.permute.xlu0 %1560  ;;  %8662 = vst [vmem:[#allocation104_spill] sm:$0xff] %v7185_v22  ;;  %v2025_v30 = vsel %vm1903_vm0, %v3477_v15, %v8649_v42  ;;  %v7195_v41 = vld [vmem:[%s3926_s8 + $0x338] sm:$0xff] }
 0x391   : > { %2891 = vst [vmem:[%s5602_s19 + $0x6c8] sm:$0xff] %v2654_v36  ;;  %2910 = vst [vmem:[%s5602_s19 + $0x760] sm:$0xff] %v2280_v24  ;;  %v2279_v45 = vsel %vm2161_vm2, %v2150_v62, %v1561_v60  ;;  %v2653_v17 = vsel %vm2161_vm2, %v2525_v8, %v1561_v60  ;;  %1861 = vrot.lane.b32.xlu1 %v7185_v22, %s3688_s24  ;;  %v3479_v60 = vld [vmem:[%s3926_s8 + $0x370] sm:$0xff]  ;;  %v8664_v62 = vld [vmem:[#allocation176_spill] sm:$0xff]  ;;  %v2154_v42 = vsel %vm2032_vm1, %v2025_v30, %v8652_v50 }
 0x392   : > { %2889 = vst [vmem:[%s5602_s19 + $0x6b8] sm:$0xff] %v2653_v17  ;;  %2908 = vst [vmem:[%s5602_s19 + $0x750] sm:$0xff] %v2279_v45  ;;  %1859 = vrot.lane.b32.xlu0 %v7195_v41, %s3688_s24  ;;  %v2023_v24 = vsel %vm1903_vm0, %v3479_v60, %v8664_v62  ;;  %v8665_v8 = vld [vmem:[#allocation183_spill] sm:$0xff]  ;;  %v8666_v36 = vld [vmem:[#allocation257_spill] sm:$0xff] }
 0x393   : > { %8663 = vst [vmem:[#allocation29_spill] sm:$0xff] %v7195_v41  ;;  %v2399_v14 = vsel %vm1903_vm0, %v3479_v60, %v8665_v8  ;;  %v1567_v56 = vpop.permute.xlu1 %1566  ;;  %v2152_v15 = vsel %vm2032_vm1, %v2023_v24, %v5715_v2  ;;  %v7217_v50 = vld [vmem:[%s3926_s8 + $0x390] sm:$0xff]  ;;  %v7225_v24 = vld [vmem:[%s3926_s8 + $0x3b8] sm:$0xff] }
 0x394   : > { %v2527_v45 = vsel %vm2032_vm1, %v2399_v14, %v8666_v36  ;;  %v2283_v17 = vsel %vm2161_vm2, %v2154_v42, %v1567_v56  ;;  %v1565_v22 = vpop.permute.xlu0 %1564  ;;  %v2027_v30 = vsel %vm1903_vm0, %v7217_v50, %v8655_v20  ;;  %8667 = vst [vmem:[#allocation21_spill] sm:$0xff] %v7225_v24 }
 0x395   : > { %2916 = vst [vmem:[%s5602_s19 + $0x790] sm:$0xff] %v2283_v17  ;;  %v2281_v62 = vsel %vm2161_vm2, %v2152_v15, %v1565_v22  ;;  %v2655_v60 = vsel %vm2161_vm2, %v2527_v45, %v1565_v22  ;;  %1865 = vrot.lane.b32.xlu1 %v6911_v4, %s3688_s24  ;;  %v7230_v22 = vld [vmem:[%s3926_s8 + $0x388] sm:$0xff]  ;;  %v2156_v42 = vsel %vm2032_vm1, %v2027_v30, %v8659_v6  ;;  %v8668_v6 = vld [vmem:[#allocation182_spill] sm:$0xff] }
 0x396   : > { %2893 = vst [vmem:[%s5602_s19 + $0x6d8] sm:$0xff] %v2655_v60  ;;  %2912 = vst [vmem:[%s5602_s19 + $0x770] sm:$0xff] %v2281_v62  ;;  %1863 = vrot.lane.b32.xlu0 %v7225_v24, %s3688_s24  ;;  %v2026_v14 = vsel %vm1903_vm0, %v7230_v22, %v8658_v23  ;;  %v7251_v23 = vld [vmem:[%s3926_s8 + $0x3a0] sm:$0xff]  ;;  %v8669_v30 = vld [vmem:[#allocation256_spill] sm:$0xff] }
 0x397   : > { %v7237_v56 = vpop.permute.xlu1 %1570  ;;  %v2155_v20 = vsel %vm2032_vm1, %v2026_v14, %v8661_v53  ;;  %v2029_v53 = vsel %vm1903_vm0, %v7251_v23, %v8668_v6  ;;  %v7260_v62 = vld [vmem:[%s3926_s8 + $0x398] sm:$0xff]  ;;  %v8670_v24 = vld [vmem:[#allocation184_spill] sm:$0xff] }
 0x398   : > { %v2285_v45 = vsel %vm2161_vm2, %v2156_v42, %v7237_v56  ;;  %v7243_v17 = vpop.permute.xlu0 %1568  ;;  %v2028_v60 = vsel %vm1903_vm0, %v7260_v62, %v8665_v8  ;;  %v2158_v14 = vsel %vm2032_vm1, %v2029_v53, %v8669_v30  ;;  %v7279_v8 = vld [vmem:[%s3926_s8 + $0x3b0] sm:$0xff] }
 0x399   : > { %2920 = vst [vmem:[%s5602_s19 + $0x7b0] sm:$0xff] %v2285_v45  ;;  %v2284_v15 = vsel %vm2161_vm2, %v2155_v20, %v7243_v17  ;;  %3283 = vrot.lane.b32.xlu1 %v8557_v1, %s3688_s24  ;;  %v2157_v20 = vsel %vm2032_vm1, %v2028_v60, %v8666_v36  ;;  %v2031_v53 = vsel %vm1903_vm0, %v7279_v8, %v8670_v24  ;;  %v7288_v36 = vld [vmem:[%s3926_s8 + $0x3a8] sm:$0xff]  ;;  %v8671_v60 = vld [vmem:[#allocation185_spill] sm:$0xff] }
 0x39a   : > { %2918 = vst [vmem:[%s5602_s19 + $0x7a0] sm:$0xff] %v2284_v15  ;;  %3278 = vrot.lane.b32.xlu0 %v8557_v1, %s3688_s24 }
 0x39b   : > { %v7267_v42 = vpop.permute.xlu1 %1574 }
 0x39c   : > { %v2287_v45 = vsel %vm2161_vm2, %v2158_v14, %v7267_v42  ;;  %v7273_v15 = vpop.permute.xlu0 %1572  ;;  %v2030_v14 = vsel %vm1903_vm0, %v7288_v36, %v8671_v60 }
 0x39d   : > { %2924 = vst [vmem:[%s5602_s19 + $0x7d0] sm:$0xff] %v2287_v45  ;;  %v2286_v4 = vsel %vm2161_vm2, %v2157_v20, %v7273_v15  ;;  %v2160_v20 = vsel %vm2032_vm1, %v2031_v53, %v5715_v2  ;;  %v2159_v30 = vsel %vm2032_vm1, %v2030_v14, %v5556_v48 }
 0x39e   : > { %2922 = vst [vmem:[%s5602_s19 + $0x7c0] sm:$0xff] %v2286_v4  ;;  %3288 = vrot.lane.b32.xlu0 %v8557_v1, %s3688_s24 }
 0x39f   : > { %v7293_v45 = vpop.permute.xlu1 %1578 }
 0x3a0   : > { %v2289_v4 = vsel %vm2161_vm2, %v2160_v20, %v7293_v45  ;;  %v7301_v24 = vpop.permute.xlu0 %1576 }
 0x3a1   : > { %2928 = vst [vmem:[%s5602_s19 + $0x7f0] sm:$0xff] %v2289_v4  ;;  %v2288_v1 = vsel %vm2161_vm2, %v2159_v30, %v7301_v24 }
 0x3a2   : > { %2926 = vst [vmem:[%s5602_s19 + $0x7e0] sm:$0xff] %v2288_v1 }
 0x3a3   : > { %v7307_v60 = vpop.permute.xlu1 %1702 }
 0x3a4   : > { %v7309_v6 = vpop.permute.xlu0 %3238 }
 0x3a5   : > { %8672 = vst [vmem:[#allocation112_spill] sm:$0xff] %v7309_v6  ;;  %v7324_v30 = vunpack.i.l.bf16 %v7309_v6 }
 0x3a7   : > { %v7311_v2 = vpop.permute.xlu1 %1706  ;;  %v2290_v7 = vsel %vm1903_vm0, %v3487_v52, %v7324_v30  ;;  %v3489_v52 = vld [vmem:[%s3926_s8 + $0x48] sm:$0xff] }
 0x3a8   : > { %v7313_v53 = vpop.permute.xlu0 %1704 }
 0x3ab   : > { %v7315_v48 = vpop.permute.xlu1 %1710 }
 0x3ac   : > { %v7317_v14 = vpop.permute.xlu0 %1708 }
 0x3af   : > { %v7319_v20 = vpop.permute.xlu1 %1714 }
 0x3b0   : > { %v7321_v4 = vpop.permute.xlu0 %1712 }
 0x3b1   : > { %8673 = vst [vmem:[#allocation22_spill] sm:$0xff] %v7321_v4 }
 0x3b3   : > { %v7326_v1 = vpop.permute.xlu1 %3248 }
 0x3b4   : > { %8674 = vst [vmem:[#allocation103_spill] sm:$0xff] %v7326_v1  ;;  %v7328_v13 = vpop.permute.xlu0 %3243  ;;  %v3488_v1 = vld [vmem:[%s3926_s8 + $0x88] sm:$0xff] }
 0x3b5   : > { %8675 = vst [vmem:[#allocation31_spill] sm:$0xff] %v7328_v13  ;;  %v2306_v13 = vsel %vm1903_vm0, %v3488_v1, %v7324_v30 }
 0x3b7   : > { %v1748_v41 = vpop.permute.xlu1 %1747 }
 0x3b8   : > { %v2418_v51 = vsel %vm2032_vm1, %v2290_v7, %v1748_v41  ;;  %v7334_v57 = vpop.permute.xlu0 %3253  ;;  %v2298_v7 = vsel %vm1903_vm0, %v3489_v52, %v7324_v30 }
 0x3b9   : > { %v2546_v4 = vsel %vm2161_vm2, %v2418_v51, %v5765_v29 }
 0x3ba   : > { %2675 = vst [vmem:[%s5602_s19 + $0x8] sm:$0xff] %v2546_v4 }
 0x3bb   : > { %v1752_v6 = vpop.permute.xlu1 %1751 }
 0x3bc   : > { %v2434_v35 = vsel %vm2032_vm1, %v2306_v13, %v1752_v6  ;;  %v1750_v31 = vpop.permute.xlu0 %1749  ;;  %v3490_v13 = vld [vmem:[%s3926_s8 + $0x108] sm:$0xff] }
 0x3bd   : > { %v2562_v41 = vsel %vm2161_vm2, %v2434_v35, %v5970_v47  ;;  %v2426_v29 = vsel %vm2032_vm1, %v2298_v7, %v1750_v31  ;;  %v2322_v6 = vsel %vm1903_vm0, %v3490_v13, %v7324_v30  ;;  %v2314_v47 = vsel %vm1903_vm0, %v3491_v33, %v7324_v30 }
 0x3be   : > { %2707 = vst [vmem:[%s5602_s19 + $0x108] sm:$0xff] %v2562_v41  ;;  %v2554_v51 = vsel %vm2161_vm2, %v2426_v29, %v5852_v12  ;;  %v3492_v41 = vld [vmem:[%s3926_s8 + $0x188] sm:$0xff] }
 0x3bf   : > { %2691 = vst [vmem:[%s5602_s19 + $0x88] sm:$0xff] %v2554_v51  ;;  %v1756_v4 = vpop.permute.xlu1 %1755  ;;  %v2338_v29 = vsel %vm1903_vm0, %v3492_v41, %v7324_v30  ;;  %v2370_v41 = vsel %vm1903_vm0, %v6788_v46, %v7324_v30 }
 0x3c0   : > { %v2450_v1 = vsel %vm2032_vm1, %v2322_v6, %v1756_v4  ;;  %v1754_v52 = vpop.permute.xlu0 %1753  ;;  %v3493_v4 = vld [vmem:[%s3926_s8 + $0x148] sm:$0xff] }
 0x3c1   : > { %v2578_v35 = vsel %vm2161_vm2, %v2450_v1, %v6178_v28  ;;  %v2442_v12 = vsel %vm2032_vm1, %v2314_v47, %v1754_v52  ;;  %v2330_v28 = vsel %vm1903_vm0, %v3493_v4, %v7324_v30  ;;  %v2354_v52 = vsel %vm1903_vm0, %v6592_v16, %v7324_v30 }
 0x3c2   : > { %2739 = vst [vmem:[%s5602_s19 + $0x208] sm:$0xff] %v2578_v35  ;;  %v2570_v31 = vsel %vm2161_vm2, %v2442_v12, %v6060_v11  ;;  %v3494_v12 = vld [vmem:[%s3926_s8 + $0x1c8] sm:$0xff] }
 0x3c3   : > { %2723 = vst [vmem:[%s5602_s19 + $0x188] sm:$0xff] %v2570_v31  ;;  %v1760_v7 = vpop.permute.xlu1 %1759 }
 0x3c4   : > { %v2466_v51 = vsel %vm2032_vm1, %v2338_v29, %v1760_v7  ;;  %v1758_v33 = vpop.permute.xlu0 %1757 }
 0x3c5   : > { %v2594_v13 = vsel %vm2161_vm2, %v2466_v51, %v6393_v54  ;;  %v2458_v11 = vsel %vm2032_vm1, %v2330_v28, %v1758_v33  ;;  %v2346_v54 = vsel %vm1903_vm0, %v3494_v12, %v7324_v30  ;;  %v2386_v28 = vsel %vm1903_vm0, %v6992_v10, %v7324_v30 }
 0x3c6   : > { %2771 = vst [vmem:[%s5602_s19 + $0x308] sm:$0xff] %v2594_v13  ;;  %v2586_v6 = vsel %vm2161_vm2, %v2458_v11, %v6269_v38 }
 0x3c7   : > { %2755 = vst [vmem:[%s5602_s19 + $0x288] sm:$0xff] %v2586_v6  ;;  %v1764_v1 = vpop.permute.xlu1 %1763 }
 0x3c8   : > { %v2482_v47 = vsel %vm2032_vm1, %v2354_v52, %v1764_v1  ;;  %v1762_v35 = vpop.permute.xlu0 %1761  ;;  %v2402_v1 = vsel %vm1903_vm0, %v7230_v22, %v7324_v30  ;;  %v2404_v22 = vsel %vm1903_vm0, %v7260_v62, %v7313_v53  ;;  %v2406_v53 = vsel %vm1903_vm0, %v7288_v36, %v7317_v14 }
 0x3c9   : > { %v2610_v31 = vsel %vm2161_vm2, %v2482_v47, %v6605_v34  ;;  %v2474_v38 = vsel %vm2032_vm1, %v2346_v54, %v1762_v35  ;;  %v2362_v34 = vsel %vm1903_vm0, %v6673_v44, %v7324_v30  ;;  %v2378_v44 = vsel %vm1903_vm0, %v6869_v58, %v7324_v30 }
 0x3ca   : > { %2803 = vst [vmem:[%s5602_s19 + $0x408] sm:$0xff] %v2610_v31  ;;  %v2602_v7 = vsel %vm2161_vm2, %v2474_v38, %v6488_v49 }
 0x3cb   : > { %2787 = vst [vmem:[%s5602_s19 + $0x388] sm:$0xff] %v2602_v7  ;;  %v1768_v16 = vpop.permute.xlu1 %1767 }
 0x3cc   : > { %v2498_v29 = vsel %vm2032_vm1, %v2370_v41, %v1768_v16  ;;  %v1766_v51 = vpop.permute.xlu0 %1765 }
 0x3cd   : > { %v2626_v33 = vsel %vm2161_vm2, %v2498_v29, %v6801_v32  ;;  %v2490_v49 = vsel %vm2032_vm1, %v2362_v34, %v1766_v51  ;;  %v8676_v34 = vld [vmem:[#allocation258_spill] sm:$0xff] }
 0x3ce   : > { %2835 = vst [vmem:[%s5602_s19 + $0x508] sm:$0xff] %v2626_v33  ;;  %v2618_v4 = vsel %vm2161_vm2, %v2490_v49, %v6687_v63 }
 0x3cf   : > { %2819 = vst [vmem:[%s5602_s19 + $0x488] sm:$0xff] %v2618_v4  ;;  %v1772_v46 = vpop.permute.xlu1 %1771 }
 0x3d0   : > { %v2514_v13 = vsel %vm2032_vm1, %v2386_v28, %v1772_v46  ;;  %v1770_v11 = vpop.permute.xlu0 %1769 }
 0x3d1   : > { %v2642_v32 = vsel %vm2161_vm2, %v2514_v13, %v7005_v25  ;;  %v2506_v63 = vsel %vm2032_vm1, %v2378_v44, %v1770_v11  ;;  %v2394_v25 = vsel %vm1903_vm0, %v7088_v61, %v7324_v30  ;;  %v2403_v61 = vsel %vm1903_vm0, %v7217_v50, %v7307_v60  ;;  %v3496_v13 = vld [vmem:[%s3926_s8 + $0x38] sm:$0xff] }
 0x3d2   : > { %2867 = vst [vmem:[%s5602_s19 + $0x608] sm:$0xff] %v2642_v32  ;;  %v2634_v6 = vsel %vm2161_vm2, %v2506_v63, %v6883_v0  ;;  %v2405_v60 = vsel %vm1903_vm0, %v7251_v23, %v7311_v2  ;;  %v2407_v23 = vsel %vm1903_vm0, %v7279_v8, %v7315_v48  ;;  %v3236_v8 = vunpack.i.h.bf16 %v8676_v34  ;;  %v3495_v48 = vld [vmem:[%s3926_s8 + $0x3c8] sm:$0xff] }
 0x3d3   : > { %2851 = vst [vmem:[%s5602_s19 + $0x588] sm:$0xff] %v2634_v6  ;;  %v1776_v10 = vpop.permute.xlu1 %1775  ;;  %v2410_v33 = vsel %vm1903_vm0, %v3495_v48, %v7324_v30  ;;  %v2296_v30 = vsel %vm1903_vm0, %v3496_v13, %v8460_v40  ;;  %v3256_v11 = vunpack.i.h.bf16 %v7334_v57  ;;  %v2312_v40 = vsel %vm1903_vm0, %v7023_v27, %v8500_v26 }
 0x3d4   : > { %v2530_v52 = vsel %vm2032_vm1, %v2402_v1, %v1776_v10  ;;  %v1774_v58 = vpop.permute.xlu0 %1773  ;;  %v2424_v44 = vsel %vm2032_vm1, %v2296_v30, %v8466_v39  ;;  %v2304_v39 = vsel %vm1903_vm0, %v6978_v37, %v8477_v21  ;;  %v8677_v37 = vld [vmem:[#allocation93_spill] sm:$0xff]  ;;  %v8693_v30 = vld [vmem:[#allocation150_spill] sm:$0xff] }
 0x3d5   : > { %v2658_v47 = vsel %vm2161_vm2, %v2530_v52, %v7243_v17  ;;  %v2522_v0 = vsel %vm2032_vm1, %v2394_v25, %v1774_v58  ;;  %v2417_v1 = vsel %vm1903_vm0, 0.0, %v3256_v11  ;;  %v2440_v52 = vsel %vm2032_vm1, %v2312_v40, %v8506_v9  ;;  %v8694_v11 = vld [vmem:[#allocation253_spill] sm:$0xff]  ;;  %v8696_v40 = vld [vmem:[#allocation224_spill] sm:$0xff] }
 0x3d6   : > { %2899 = vst [vmem:[%s5602_s19 + $0x708] sm:$0xff] %v2658_v47  ;;  %v2650_v35 = vsel %vm2161_vm2, %v2522_v0, %v7105_v59  ;;  %v2432_v47 = vsel %vm2032_vm1, %v2304_v39, %v8482_v19  ;;  %v2328_v9 = vsel %vm1903_vm0, %v7059_v3, %v8534_v5  ;;  %v2320_v19 = vsel %vm1903_vm0, %v7012_v18, %v8517_v43  ;;  %v8679_v3 = vld [vmem:[#allocation126_spill] sm:$0xff]  ;;  %v8681_v43 = vld [vmem:[#allocation113_spill] sm:$0xff]  ;;  %v8682_v18 = vld [vmem:[#allocation248_spill] sm:$0xff] }
 0x3d7   : > { %2883 = vst [vmem:[%s5602_s19 + $0x688] sm:$0xff] %v2650_v35  ;;  %v1780_v12 = vpop.permute.xlu1 %1779 }
 0x3d8   : > { %v2532_v54 = vsel %vm2032_vm1, %v2404_v22, %v1780_v12  ;;  %v1778_v17 = vpop.permute.xlu0 %1777  ;;  %v8678_v22 = vld [vmem:[#allocation77_spill] sm:$0xff] }
 0x3d9   : > { %v2660_v31 = vsel %vm2161_vm2, %v2532_v54, %v7273_v15  ;;  %v2531_v59 = vsel %vm2032_vm1, %v2403_v61, %v1778_v17  ;;  %v2448_v12 = vsel %vm2032_vm1, %v2320_v19, %v8678_v22  ;;  %v8680_v17 = vld [vmem:[#allocation251_spill] sm:$0xff] }
 0x3da   : > { %2903 = vst [vmem:[%s5602_s19 + $0x728] sm:$0xff] %v2660_v31  ;;  %v2659_v62 = vsel %vm2161_vm2, %v2531_v59, %v7237_v56  ;;  %v2344_v31 = vsel %vm1903_vm0, %v8680_v17, %v8679_v3  ;;  %v2336_v59 = vsel %vm1903_vm0, %v8682_v18, %v8681_v43  ;;  %v8705_v17 = vld [vmem:[#allocation112_spill] sm:$0xff]  ;;  %v8706_v43 = vld [vmem:[#allocation22_spill] sm:$0xff]  ;;  %v8707_v18 = vld [vmem:[#allocation21_spill] sm:$0xff] }
 0x3db   : > { %2901 = vst [vmem:[%s5602_s19 + $0x718] sm:$0xff] %v2659_v62  ;;  %v1784_v50 = vpop.permute.xlu1 %1783  ;;  %v8683_v62 = vld [vmem:[#allocation125_spill] sm:$0xff] }
 0x3dc   : > { %v2534_v38 = vsel %vm2032_vm1, %v2406_v53, %v1784_v50  ;;  %v1782_v15 = vpop.permute.xlu0 %1781  ;;  %v2472_v53 = vsel %vm2032_vm1, %v2344_v31, %v8683_v62  ;;  %v3241_v31 = vunpack.i.h.bf16 %v8705_v17  ;;  %v8708_v62 = vld [vmem:[#allocation103_spill] sm:$0xff] }
 0x3dd   : > { %v2662_v7 = vsel %vm2161_vm2, %v2534_v38, %v7301_v24  ;;  %v2533_v56 = vsel %vm2032_vm1, %v2405_v60, %v1782_v15  ;;  %v8684_v60 = vld [vmem:[#allocation100_spill] sm:$0xff] }
 0x3de   : > { %2907 = vst [vmem:[%s5602_s19 + $0x748] sm:$0xff] %v2662_v7  ;;  %v2661_v36 = vsel %vm2161_vm2, %v2533_v56, %v7267_v42  ;;  %v2409_v42 = vsel %vm1903_vm0, 0.0, %v7319_v20  ;;  %v2464_v38 = vsel %vm2032_vm1, %v2336_v59, %v8684_v60  ;;  %v2408_v59 = vsel %vm1903_vm0, %v8707_v18, %v8706_v43 }
 0x3df   : > { %2905 = vst [vmem:[%s5602_s19 + $0x738] sm:$0xff] %v2661_v36  ;;  %v7465_v14 = vpop.permute.xlu1 %1787  ;;  %v8685_v36 = vld [vmem:[#allocation142_spill] sm:$0xff] }
 0x3e0   : > { %v1786_v2 = vpop.permute.xlu0 %1785 }
 0x3e1   : > { %v2535_v16 = vsel %vm2032_vm1, %v2407_v23, %v1786_v2  ;;  %v8686_v23 = vld [vmem:[#allocation17_spill] sm:$0xff] }
 0x3e2   : > { %v2663_v24 = vsel %vm2161_vm2, %v2535_v16, %v7293_v45  ;;  %v2360_v2 = vsel %vm1903_vm0, %v8686_v23, %v8685_v36  ;;  %v8687_v16 = vld [vmem:[#allocation134_spill] sm:$0xff] }
 0x3e3   : > { %2909 = vst [vmem:[%s5602_s19 + $0x758] sm:$0xff] %v2663_v24  ;;  %v7474_v41 = vpop.permute.xlu1 %3258  ;;  %v8688_v24 = vld [vmem:[#allocation186_spill] sm:$0xff] }
 0x3e4   : > { %v3260_v29 = vunpack.i.l.bf16 %v7474_v41  ;;  %v1790_v51 = vpop.permute.xlu0 %1789  ;;  %v3261_v23 = vunpack.i.h.bf16 %v7474_v41  ;;  %v3498_v41 = vld [vmem:[%s3926_s8 + $0x3e8] sm:$0xff] }
 0x3e5   : > { %v2537_v49 = vsel %vm2032_vm1, %v2409_v42, %v1790_v51  ;;  %v2352_v42 = vsel %vm1903_vm0, %v8688_v24, %v8687_v16 }
 0x3e6   : > { %v2538_v45 = vsel %vm2032_vm1, %v2410_v33, %v3260_v29  ;;  %v2665_v4 = vsel %vm2161_vm2, %v2537_v49, %v5567_v55  ;;  %v8689_v29 = vld [vmem:[#allocation213_spill] sm:$0xff] }
 0x3e7   : > { %v2666_v46 = vsel %vm2161_vm2, %v2538_v45, %v3236_v8  ;;  %2913 = vst [vmem:[%s5602_s19 + $0x778] sm:$0xff] %v2665_v4  ;;  %v7489_v20 = vpop.permute.xlu1 %3268  ;;  %v2488_v51 = vsel %vm2032_vm1, %v2360_v2, %v8689_v29  ;;  %v8690_v8 = vld [vmem:[#allocation196_spill] sm:$0xff]  ;;  %v8691_v4 = vld [vmem:[#allocation158_spill] sm:$0xff] }
 0x3e8   : > { %2915 = vst [vmem:[%s5602_s19 + $0x788] sm:$0xff] %v2666_v46  ;;  %v7492_v28 = vpop.permute.xlu0 %3263  ;;  %v2480_v48 = vsel %vm2032_vm1, %v2352_v42, %v8690_v8  ;;  %v8692_v46 = vld [vmem:[#allocation19_spill] sm:$0xff]  ;;  %v3270_v24 = vunpack.i.l.bf16 %v7489_v20 }
 0x3e9   : > { %v2376_v13 = vsel %vm1903_vm0, %v8692_v46, %v8691_v4  ;;  %v3266_v42 = vunpack.i.h.bf16 %v7492_v28  ;;  %v3265_v8 = vunpack.i.l.bf16 %v7492_v28  ;;  %v3255_v46 = vunpack.i.l.bf16 %v7334_v57 }
 0x3ea   : > { %v3271_v28 = vunpack.i.h.bf16 %v7489_v20 }
 0x3eb   : > { %v1838_v32 = vpop.permute.xlu1 %1837 }
 0x3ec   : > { %v2552_v63 = vsel %vm2161_vm2, %v2424_v44, %v1838_v32  ;;  %v7501_v6 = vpop.permute.xlu0 %3273  ;;  %v2368_v44 = vsel %vm1903_vm0, %v8694_v11, %v8693_v30  ;;  %v8695_v32 = vld [vmem:[#allocation240_spill] sm:$0xff] }
 0x3ed   : > { %2687 = vst [vmem:[%s5602_s19 + $0x68] sm:$0xff] %v2552_v63  ;;  %v3276_v10 = vunpack.i.h.bf16 %v7501_v6  ;;  %v2504_v63 = vsel %vm2032_vm1, %v2376_v13, %v8695_v32 }
 0x3ef   : > { %v2545_v58 = vsel %vm2032_vm1, %v2417_v1, %v3276_v10  ;;  %v1842_v25 = vpop.permute.xlu1 %1841  ;;  %v2496_v1 = vsel %vm2032_vm1, %v2368_v44, %v8696_v40 }
 0x3f0   : > { %v2673_v0 = vsel %vm2161_vm2, %v2545_v58, %v5567_v55  ;;  %v2568_v26 = vsel %vm2161_vm2, %v2440_v52, %v1842_v25  ;;  %v1840_v27 = vpop.permute.xlu0 %1839  ;;  %v2456_v55 = vsel %vm2032_vm1, %v2328_v9, %v8677_v37  ;;  %v8697_v25 = vld [vmem:[#allocation174_spill] sm:$0xff]  ;;  %v8701_v9 = vld [vmem:[#allocation252_spill] sm:$0xff] }
 0x3f1   : > { %2929 = vst [vmem:[%s5602_s19 + $0x7f8] sm:$0xff] %v2673_v0  ;;  %2719 = vst [vmem:[%s5602_s19 + $0x168] sm:$0xff] %v2568_v26  ;;  %v2560_v21 = vsel %vm2161_vm2, %v2432_v47, %v1840_v27  ;;  %v8698_v47 = vld [vmem:[#allocation29_spill] sm:$0xff]  ;;  %v8699_v26 = vld [vmem:[#allocation166_spill] sm:$0xff] }
 0x3f2   : > { %2703 = vst [vmem:[%s5602_s19 + $0xe8] sm:$0xff] %v2560_v21  ;;  %v2392_v0 = vsel %vm1903_vm0, %v8698_v47, %v8697_v25  ;;  %v8700_v27 = vld [vmem:[#allocation18_spill] sm:$0xff] }
 0x3f3   : > { %v1846_v35 = vpop.permute.xlu1 %1845  ;;  %v2384_v21 = vsel %vm1903_vm0, %v8700_v27, %v8699_v26  ;;  %v2520_v19 = vsel %vm2032_vm1, %v2392_v0, %v8701_v9  ;;  %v3501_v0 = vld [vmem:[%s3926_s8 + $0x3f0] sm:$0xff]  ;;  %v8711_v26 = vld [vmem:[#allocation242_spill] sm:$0xff] }
 0x3f4   : > { %v2584_v61 = vsel %vm2161_vm2, %v2456_v55, %v1846_v35  ;;  %v1844_v54 = vpop.permute.xlu0 %1843  ;;  %v8702_v55 = vld [vmem:[#allocation245_spill] sm:$0xff]  ;;  %v2416_v27 = vsel %vm1903_vm0, %v8711_v26, %v3255_v46 }
 0x3f5   : > { %2751 = vst [vmem:[%s5602_s19 + $0x268] sm:$0xff] %v2584_v61  ;;  %v2576_v5 = vsel %vm2161_vm2, %v2448_v12, %v1844_v54  ;;  %v2512_v35 = vsel %vm2032_vm1, %v2384_v21, %v8702_v55  ;;  %v8703_v54 = vld [vmem:[#allocation182_spill] sm:$0xff] }
 0x3f6   : > { %2735 = vst [vmem:[%s5602_s19 + $0x1e8] sm:$0xff] %v2576_v5  ;;  %v8704_v5 = vld [vmem:[#allocation104_spill] sm:$0xff] }
 0x3f7   : > { %v1850_v50 = vpop.permute.xlu1 %1849  ;;  %v2400_v3 = vsel %vm1903_vm0, %v8704_v5, %v8703_v54 }
 0x3f8   : > { %v2600_v15 = vsel %vm2161_vm2, %v2472_v53, %v1850_v50  ;;  %v1848_v7 = vpop.permute.xlu0 %1847  ;;  %v3250_v53 = vunpack.i.l.bf16 %v8708_v62  ;;  %v8709_v50 = vld [vmem:[#allocation31_spill] sm:$0xff] }
 0x3f9   : > { %2783 = vst [vmem:[%s5602_s19 + $0x368] sm:$0xff] %v2600_v15  ;;  %v2592_v56 = vsel %vm2161_vm2, %v2464_v38, %v1848_v7  ;;  %v3246_v60 = vunpack.i.h.bf16 %v8709_v50  ;;  %v3245_v38 = vunpack.i.l.bf16 %v8709_v50  ;;  %v2536_v15 = vsel %vm2032_vm1, %v2408_v59, %v7465_v14 }
 0x3fa   : > { %2767 = vst [vmem:[%s5602_s19 + $0x2e8] sm:$0xff] %v2592_v56  ;;  %v8710_v56 = vld [vmem:[#allocation256_spill] sm:$0xff] }
 0x3fb   : > { %v1854_v34 = vpop.permute.xlu1 %1853  ;;  %v2528_v36 = vsel %vm2032_vm1, %v2400_v3, %v8710_v56 }
 0x3fc   : > { %v2616_v33 = vsel %vm2161_vm2, %v2488_v51, %v1854_v34  ;;  %v1852_v49 = vpop.permute.xlu0 %1851  ;;  %v3497_v51 = vld [vmem:[%s3926_s8 + $0x3d0] sm:$0xff]  ;;  %v3251_v34 = vunpack.i.h.bf16 %v8708_v62 }
 0x3fd   : > { %2815 = vst [vmem:[%s5602_s19 + $0x468] sm:$0xff] %v2616_v33  ;;  %v2608_v45 = vsel %vm2161_vm2, %v2480_v48, %v1852_v49  ;;  %v2411_v14 = vsel %vm1903_vm0, %v3497_v51, %v3241_v31  ;;  %v2414_v48 = vsel %vm1903_vm0, %v3498_v41, %v3250_v53  ;;  %v3499_v33 = vld [vmem:[%s3926_s8 + $0x3e0] sm:$0xff] }
 0x3fe   : > { %2799 = vst [vmem:[%s5602_s19 + $0x3e8] sm:$0xff] %v2608_v45  ;;  %v2413_v49 = vsel %vm1903_vm0, %v3499_v33, %v3246_v60  ;;  %v3500_v45 = vld [vmem:[%s3926_s8 + $0x3d8] sm:$0xff]  ;;  %v2539_v30 = vsel %vm2032_vm1, %v2411_v14, %v3261_v23 }
 0x3ff   : > { %v1858_v10 = vpop.permute.xlu1 %1857  ;;  %v2412_v4 = vsel %vm1903_vm0, %v3500_v45, %v3245_v38 }
 0x400   : > { %v2632_v39 = vsel %vm2161_vm2, %v2504_v63, %v1858_v10  ;;  %v1856_v52 = vpop.permute.xlu0 %1855  ;;  %v2542_v63 = vsel %vm2032_vm1, %v2414_v48, %v3270_v24  ;;  %v2541_v10 = vsel %vm2032_vm1, %v2413_v49, %v3266_v42 }
 0x401   : > { %2847 = vst [vmem:[%s5602_s19 + $0x568] sm:$0xff] %v2632_v39  ;;  %v2624_v58 = vsel %vm2161_vm2, %v2496_v1, %v1856_v52  ;;  %v2540_v1 = vsel %vm2032_vm1, %v2412_v4, %v3265_v8  ;;  %v3275_v39 = vunpack.i.l.bf16 %v7501_v6  ;;  %v2415_v6 = vsel %vm1903_vm0, %v3501_v0, %v3251_v34 }
 0x402   : > { %2831 = vst [vmem:[%s5602_s19 + $0x4e8] sm:$0xff] %v2624_v58 }
 0x403   : > { %v1862_v37 = vpop.permute.xlu1 %1861 }
 0x404   : > { %v2648_v22 = vsel %vm2161_vm2, %v2520_v19, %v1862_v37  ;;  %v1860_v12 = vpop.permute.xlu0 %1859  ;;  %v2543_v19 = vsel %vm2032_vm1, %v2415_v6, %v3271_v28  ;;  %v2544_v37 = vsel %vm2032_vm1, %v2416_v27, %v3275_v39 }
 0x405   : > { %2879 = vst [vmem:[%s5602_s19 + $0x668] sm:$0xff] %v2648_v22  ;;  %v2640_v61 = vsel %vm2161_vm2, %v2512_v35, %v1860_v12 }
 0x406   : > { %2863 = vst [vmem:[%s5602_s19 + $0x5e8] sm:$0xff] %v2640_v61 }
 0x407   : > { %v1866_v7 = vpop.permute.xlu1 %1865 }
 0x408   : > { %v2664_v2 = vsel %vm2161_vm2, %v2536_v15, %v1866_v7  ;;  %v1864_v16 = vpop.permute.xlu0 %1863 }
 0x409   : > { %2911 = vst [vmem:[%s5602_s19 + $0x768] sm:$0xff] %v2664_v2  ;;  %v2656_v29 = vsel %vm2161_vm2, %v2528_v36, %v1864_v16 }
 0x40a   : > { %2895 = vst [vmem:[%s5602_s19 + $0x6e8] sm:$0xff] %v2656_v29 }
 0x40b   : > { %v3284_v13 = vpop.permute.xlu1 %3283 }
 0x40c   : > { %v3286_v11 = vunpack.i.h.bf16 %v3284_v13  ;;  %v3285_v44 = vunpack.i.l.bf16 %v3284_v13  ;;  %v3279_v32 = vpop.permute.xlu0 %3278 }
 0x40d   : > { %v3281_v40 = vunpack.i.h.bf16 %v3279_v32  ;;  %v3280_v57 = vunpack.i.l.bf16 %v3279_v32 }
 0x40e   : > { %v2669_v52 = vsel %vm2161_vm2, %v2541_v10, %v3285_v44  ;;  %v2670_v20 = vsel %vm2161_vm2, %v2542_v63, %v3286_v11 }
 0x40f   : > { %2921 = vst [vmem:[%s5602_s19 + $0x7b8] sm:$0xff] %v2669_v52  ;;  %2923 = vst [vmem:[%s5602_s19 + $0x7c8] sm:$0xff] %v2670_v20  ;;  %v2667_v58 = vsel %vm2161_vm2, %v2539_v30, %v3280_v57  ;;  %v2668_v25 = vsel %vm2161_vm2, %v2540_v1, %v3281_v40 }
 0x410   : > { %2917 = vst [vmem:[%s5602_s19 + $0x798] sm:$0xff] %v2667_v58  ;;  %2919 = vst [vmem:[%s5602_s19 + $0x7a8] sm:$0xff] %v2668_v25  ;;  %v3289_v47 = vpop.permute.xlu0 %3288 }
 0x411   : > { %v3291_v21 = vunpack.i.h.bf16 %v3289_v47  ;;  %v3290_v9 = vunpack.i.l.bf16 %v3289_v47 }
 0x413   : > { %v2671_v55 = vsel %vm2161_vm2, %v2543_v19, %v3290_v9  ;;  %v2672_v35 = vsel %vm2161_vm2, %v2544_v37, %v3291_v21 }
 0x414   : > { %2925 = vst [vmem:[%s5602_s19 + $0x7d8] sm:$0xff] %v2671_v55  ;;  %2927 = vst [vmem:[%s5602_s19 + $0x7e8] sm:$0xff] %v2672_v35 }
 0x415   : > { %3605 = shalt.err (!%p3602_p13)
}
 0x416   : > { %s3606_s4 = scalar_lea.hbm %s7649_s16, 32768  ;;  %s3610_s7 = scalar_lea.hbm %s7709_s3, 65536 }
 0x417   : > { %p3607_p11 = scmp.ne.s32.totalorder %s7649_s16, %s3606_s4  ;;  %p3611_p7 = scmp.lt.u32.totalorder %s7649_s16, %s7709_s3 }
 0x418   : > { %p3612_p4 = scmp.lt.u32.totalorder %s3610_s7, %s3606_s4  ;;  %p3614_p0 = scmp.lt.u32.totalorder %s3606_s4, %s7649_s16 }
 0x419   : > { %p3608_p2 = pnand %p3607_p11, %p8712_p10 }
 0x41a   : > { %p3613_p3 = por %p3612_p4, %p3611_p7 }
 0x41b   : > { %p3609_p5 = pneg %p3608_p2 }
 0x41c   : > { %p3615_p8 = por %p3614_p0, %p3613_p3 }
 0x41e   : > { %p3616_p9 = pnand %p3615_p8, %p3609_p5 }
 0x420   : > { %3619 = shalt.err (!%p3616_p9)
}
 0x421   : > { %s3690_s6 = smov 256   ;;  %s3691_s18 = smov 16  }
 0x422   : > { %3118 = dma.vmem_to_hbm [thread:$0]  (%p8712_p10), %s7651_s28, 32768, %s7649_s16, %s2931_s1, %s3690_s6, %s3690_s6, %s3691_s18  }
 0x423 PF: > { %s2962_s24 = sand.u32 1, %s3658_s12   ;;  %p8713_p12 = scmp.ne.s32.totalorder %s8032_s27, 0 }
 0x424   : > { %p8714_p1 = scmp.ge.s32.totalorder %s3678_s17, 2  ;;  %s2963_s26 = scalar_lea.sflag [#allocation4], %s2962_s24 }
 0x426   : > { %p3131_p6 = pnand %p8714_p1, %p8713_p12 }
 0x428   : > { %3653 = dma.done.wait (!%p3131_p6), %s2963_s26, 32768  }
 0x429   : > { %3655 = vsyncadd (!%p3131_p6), %s2963_s26, 4294934528  ;;  %s22_s17 = sadd.s32 1, %s3678_s17   ;;  %s8715_s19 = sld [smem:[#allocation14_spill]] }
 0x42a   : > { %p19_p13 = scmp.ge.s32.totalorder %s22_s17, 4   ;;  %s8716_s15 = sld [smem:[#allocation12_spill]] }
 0x42b   : > { %s8717_s16 = sld [smem:[#allocation13_spill]]  ;;  %s8718_s12 = smov %s3662_s13 }
 0x42c   : > { %s8719_s13 = smov %s3666_s14  ;;  %21 = sbr.rel (!%p19_p13) target bundleno = 10 (0xa), region = 101 }
 0x42f   : > { %s8720_s14 = smov %s8715_s19 }
 0x433   :  { %2968 = vsyncpa [#allocation3], 1 }
 0x434   :  { %2970 = vsyncpa [#allocation3 + $0x1], 1 }
 0x435   :  { %2971 = vsyncpa [#allocation6], 1 }
 0x436   :  { %2973 = vsyncpa [#allocation6 + $0x1], 1 }
 0x437   :  { %2974 = vsyncpa [#allocation4], 1 }
 0x438   :  { %2976 = vsyncpa [#allocation4 + $0x1], 1 }

</bundles_post_ra>
